<compile_context>
chip_gen: v5e
topology: v5e:2x2
jax: 0.10.0
libtpu: 0.0.40
codegen_flags: <defaults>
</compile_context>

<pallas_src>
import math

import jax
import jax.numpy as jnp
from jax.experimental import pallas as pl
from jax.experimental.pallas import tpu as pltpu

N_FEAT = 64
BN_EPS = 1e-5


# ----------------------------------------------------------------------------
# Pallas kernel: G graphs per grid step.  Feature transforms on stacked (G*N, 64)
# rows; aggregation / BatchNorm / mean-pool per graph on the (G, N, .) view.
# ----------------------------------------------------------------------------
def q_learning_kernel(adj_ref, nf_ref, w64_ref, vec_ref, q_ref):
    f32, bf16 = jnp.float32, jnp.bfloat16
    G, N, _ = adj_ref.shape
    GN = G * N

    at = adj_ref[...]                               # (G, N, N) bf16, adj_t[dst, src]
    nf = nf_ref[...]                                # (G, N, 2) f32 : (w, x_v)
    w3 = nf[:, :, 0:1].astype(bf16)                 # (G, N, 1) node weights (stage 1)
    xv = nf[:, :, 1:2].reshape(GN, 1)               # (GN, 1)

    vec = vec_ref[...]                              # (16, 64) small-parameter slab
    fc1_w, fc1_b = vec[0:1], vec[1:2]
    g1_w, g1_b = vec[2:3], vec[3:4]
    fc2_b, fc3_b, fc4_b = vec[4:5], vec[5:6], vec[6:7]
    g2_b, g3_b, g4_b = vec[7:8], vec[8:9], vec[9:10]
    qfc2_b, qfc3_b = vec[10:11], vec[11:12]
    qfc1_wg, qfc1_wp = vec[12:13], vec[13:14]       # pre-split 128->1 head weight
    qfc1_b = vec[14:15, 0:1]                        # (1, 1)

    def dotf(a, b):                                 # stacked f32 feature transform
        return jnp.dot(a, b, preferred_element_type=f32)

    def agg(x):                                     # per-graph in-neighbor sum
        c = x.shape[-1]
        xg = x.reshape(G, N, c).astype(bf16)        # only the (N, C) operand is cast
        y = jax.lax.dot_general(
            at, xg, dimension_numbers=(((2,), (1,)), ((0,), (0,))),
            preferred_element_type=f32)             # bf16 MXU, f32 accumulation
        return y.reshape(GN, c)

    def bn(x):                                      # per-graph BatchNorm1d (train mode)
        xg = x.reshape(G, N, N_FEAT)
        mean = jnp.mean(xg, axis=1, keepdims=True)
        var = jnp.mean(xg * xg, axis=1, keepdims=True) - mean * mean
        var = jnp.maximum(var, 0.0)                 # guard single-pass cancellation
        return ((xg - mean) * jax.lax.rsqrt(var + BN_EPS)).reshape(GN, N_FEAT)

    relu = lambda v: jnp.maximum(v, 0.0)

    # ---- stage 1 (fc1 / GIN1 / BN1 / relu) -----------------------------------
    # GINConv(eps=-1) with a Linear(1,64) nn: nn(sum_{u in N(v)} w_u).
    # deg = adj_t @ w is a [N,1] matvec; the 1->64 expansion happens after.
    deg = jax.lax.dot_general(
        at, w3, dimension_numbers=(((2,), (1,)), ((0,), (0,))),
        preferred_element_type=f32).reshape(GN, 1)
    xv2 = xv * fc1_w + fc1_b                                      # Linear(1, 64)
    prob = relu(bn(deg * g1_w + g1_b + xv2))

    # ---- stage 2 -------------------------------------------------------------
    xv3 = dotf(xv2, w64_ref[0]) + fc2_b
    prob = relu(bn(dotf(agg(prob), w64_ref[3]) + g2_b + xv3))

    # ---- stage 3 -------------------------------------------------------------
    xv4 = dotf(xv3, w64_ref[1]) + fc3_b
    prob = relu(bn(dotf(agg(prob), w64_ref[4]) + g3_b + xv4))

    # ---- stage 4 (no batch-norm) ---------------------------------------------
    xv5 = dotf(xv4, w64_ref[2]) + fc4_b
    prob = relu(dotf(agg(prob), w64_ref[5]) + g4_b + xv5)

    # ---- Q head --------------------------------------------------------------
    gf = jnp.mean(prob.reshape(G, N, N_FEAT), axis=1)             # per-graph mean pool
    wgf = relu(dotf(gf, w64_ref[6]) + qfc2_b)                     # (G, 64)
    wp = relu(dotf(prob, w64_ref[7]) + qfc3_b)                    # (GN, 64)

    # Q_full_connect1(relu(cat([wgf.expand, wp], 1))) split into its two 64-wide
    # halves; both emitted as NT matmuls producing a lane-dense (1, GN) row.
    wgf_e = jnp.broadcast_to(wgf[:, None, :], (G, N, N_FEAT)).reshape(GN, N_FEAT)

    def nt(vrow, x):  # (1,64) x (GN,64) -> (1, GN)
        return jax.lax.dot_general(
            vrow, x, dimension_numbers=(((1,), (1,)), ((), ())),
            preferred_element_type=f32)

    q_ref[0] = nt(qfc1_wp, wp) + nt(qfc1_wg, wgf_e) + qfc1_b


# ----------------------------------------------------------------------------
# Parameter init (matches torch.nn.Linear defaults) and slab packing
# ----------------------------------------------------------------------------
def init_linear(key, fan_in, fan_out):
    kw, kb = jax.random.split(key)
    bound = 1.0 / math.sqrt(fan_in)
    w = jax.random.uniform(kw, (fan_in, fan_out), jnp.float32, -bound, bound)
    b = jax.random.uniform(kb, (1, fan_out), jnp.float32, -bound, bound)
    return w, b


def init_params(key):
    keys = jax.random.split(key, 11)
    p = {}
    p["fc1"] = init_linear(keys[0], 1, 64)     # full_connect1
    p["fc2"] = init_linear(keys[1], 64, 64)    # full_connect2
    p["fc3"] = init_linear(keys[2], 64, 64)    # full_connect3
    p["fc4"] = init_linear(keys[3], 64, 64)    # full_connect4
    p["g1"] = init_linear(keys[4], 1, 64)      # conv1.nn = MLP([1, 64])
    p["g2"] = init_linear(keys[5], 64, 64)     # conv2.nn
    p["g3"] = init_linear(keys[6], 64, 64)     # conv3.nn
    p["g4"] = init_linear(keys[7], 64, 64)     # conv4.nn
    p["qfc2"] = init_linear(keys[8], 64, 64)   # Q_full_connect2
    p["qfc3"] = init_linear(keys[9], 64, 64)   # Q_full_connect3
    p["qfc1"] = init_linear(keys[10], 128, 1)  # Q_full_connect1
    return p


def pack_params(params):
    """Two slabs: [8,64,64] square weights + [16,64] vectors (small weights / biases)."""
    w64 = jnp.stack([
        params["fc2"][0], params["fc3"][0], params["fc4"][0],
        params["g2"][0], params["g3"][0], params["g4"][0],
        params["qfc2"][0], params["qfc3"][0]], axis=0)
    qfc1_w, qfc1_b = params["qfc1"]
    rows = [
        params["fc1"][0].reshape(N_FEAT),   # 0: fc1 weight (1->64)
        params["fc1"][1].reshape(N_FEAT),   # 1: fc1 bias
        params["g1"][0].reshape(N_FEAT),    # 2: g1 weight (1->64)
        params["g1"][1].reshape(N_FEAT),    # 3: g1 bias
        params["fc2"][1].reshape(N_FEAT),   # 4
        params["fc3"][1].reshape(N_FEAT),   # 5
        params["fc4"][1].reshape(N_FEAT),   # 6
        params["g2"][1].reshape(N_FEAT),    # 7
        params["g3"][1].reshape(N_FEAT),    # 8
        params["g4"][1].reshape(N_FEAT),    # 9
        params["qfc2"][1].reshape(N_FEAT),  # 10
        params["qfc3"][1].reshape(N_FEAT),  # 11
        qfc1_w[:N_FEAT, 0],                 # 12: Q head weight, graph-feature half
        qfc1_w[N_FEAT:, 0],                 # 13: Q head weight, per-node half
        jnp.broadcast_to(qfc1_b.reshape(1), (N_FEAT,)),   # 14: Q head bias
        jnp.zeros((N_FEAT,), jnp.float32),  # 15: pad
    ]
    vec = jnp.stack(rows, axis=0)
    return w64, vec


def _graphs_per_step(batch_size, n_nodes):
    # Stack enough graphs that the fused matmul M-dim covers >=128 rows
    # (one v5e MXU tile; half a v6e/v7x 256-row tile).  Kept at 128 so small
    # batches still give >=2 grid steps per v7x TensorCore for pipeline overlap.
    g = max(1, -(-128 // n_nodes))
    return min(g, batch_size)


# ----------------------------------------------------------------------------
# Batched forward: B independent graphs (each N nodes) through one pallas_call.
# ----------------------------------------------------------------------------
@jax.jit
def q_learning_forward_batch(ws, edge_indices, x_vs, params):
    """ws, x_vs: [B, N]; edge_indices: [B, 2, E]  ->  (Q [B,N,1], mask [B,N], adj [B,N,N])."""
    B, N = ws.shape

    # adj_t[dst, src] built directly (kernel aggregation operand, one scatter).
    def one_adj_t(ei):
        return jnp.zeros((N, N), jnp.float32).at[ei[1], ei[0]].add(1.0)

    adj_t = jax.vmap(one_adj_t)(edge_indices)                    # [B, N, N]
    adj = jnp.swapaxes(adj_t, 1, 2)                              # to_dense_adj [src,dst] (return only)

    G = _graphs_per_step(B, N)
    steps = -(-B // G)
    b_pad = steps * G
    pad = b_pad - B

    adj_k = jnp.pad(adj_t, ((0, pad), (0, 0), (0, 0))).astype(jnp.bfloat16)
    node_feats = jnp.pad(
        jnp.stack([ws, x_vs], axis=-1).astype(jnp.float32), ((0, pad), (0, 0), (0, 0)))
    w64, vec = pack_params(params)

    GN = G * N
    # VMEM budget from actual block sizes: x2 double-buffering, x2 margin for the
    # f32 intermediates, + headroom for compiler scratch (well under 64 MiB on v7x).
    bytes_per_step = (G * N * N * 2 + G * N * 2 * 4
                      + 8 * N_FEAT * N_FEAT * 4 + 16 * N_FEAT * 4 + GN * 4)
    vmem_bytes = int(min(64 << 20, 4 * bytes_per_step + (8 << 20)))

    q = pl.pallas_call(
        q_learning_kernel,
        out_shape=jax.ShapeDtypeStruct((steps, 1, GN), jnp.float32),
        grid=(steps,),
        in_specs=[
            pl.BlockSpec((G, N, N), lambda b: (b, 0, 0)),            # G adjacencies / step
            pl.BlockSpec((G, N, 2), lambda b: (b, 0, 0)),            # G node-feature blocks
            pl.BlockSpec((8, N_FEAT, N_FEAT), lambda b: (0, 0, 0)),  # weight slab (grid-constant)
            pl.BlockSpec((16, N_FEAT), lambda b: (0, 0)),            # vector slab (grid-constant)
        ],
        out_specs=pl.BlockSpec((1, 1, GN), lambda b: (b, 0, 0)),     # lane-dense Q rows
        compiler_params=pltpu.CompilerParams(
            dimension_semantics=("parallel",),
            vmem_limit_bytes=vmem_bytes),
    )(adj_k, node_feats, w64, vec)

    q_dense = q.reshape(b_pad, N, 1)[:B]         # to_dense_batch layout, drop padding graphs
    mask = jnp.ones((B, N), dtype=bool)
    return q_dense, mask, adj


def q_learning_forward(w, edge_index, batch, x_v, params):
    """Module-signature wrapper (single graph, matches the PyTorch forward)."""
    del batch  # single-graph case; kept jit-friendly (no host sync)
    n = w.shape[0]
    return q_learning_forward_batch(
        w.reshape(1, n), edge_index.reshape(1, 2, -1), x_v.reshape(1, n), params)


# ----------------------------------------------------------------------------
# Pure-JAX f32 reference (literal translation of the module) for verification.
# ----------------------------------------------------------------------------
def reference_forward(w, edge_index, x_v, params):
    n = w.shape[0]
    src, dst = edge_index[0], edge_index[1]
    A = jnp.zeros((n, n), jnp.float32).at[src, dst].add(1.0)
    AT = A.T

    def lin(x, wb):
        return x @ wb[0] + wb[1]

    def gin(x, wb):                       # eps = -1 -> nn(neighbor sum)
        return lin(AT @ x, wb)

    def bn(x):                            # two-pass train-mode BatchNorm
        mean = jnp.mean(x, axis=0, keepdims=True)
        var = jnp.mean((x - mean) ** 2, axis=0, keepdims=True)
        return (x - mean) * jax.lax.rsqrt(var + BN_EPS)

    xv2 = lin(x_v.reshape(n, 1), params["fc1"])
    prob = jax.nn.relu(bn(gin(w.reshape(n, 1), params["g1"]) + xv2))
    xv3 = lin(xv2, params["fc2"])
    prob = jax.nn.relu(bn(gin(prob, params["g2"]) + xv3))
    xv4 = lin(xv3, params["fc3"])
    prob = jax.nn.relu(bn(gin(prob, params["g3"]) + xv4))
    xv5 = lin(xv4, params["fc4"])
    prob = jax.nn.relu(gin(prob, params["g4"]) + xv5)

    gf = jnp.mean(prob, axis=0, keepdims=True)
    wgf = lin(gf, params["qfc2"])
    wp = lin(prob, params["qfc3"])
    cat = jnp.concatenate([jnp.broadcast_to(wgf, wp.shape), wp], axis=1)
    q = lin(jax.nn.relu(cat), params["qfc1"])
    return q, A


if __name__ == "__main__":
    N_NODES, N_EDGES, B = 16, 40, 32          # B=32, G=8 -> 4 grid steps of 128 stacked rows
    key = jax.random.PRNGKey(0)
    k_w, k_x, k_src, k_dst = jax.random.split(key, 4)

    ws = jax.random.uniform(k_w, (B, N_NODES), jnp.float32)
    x_vs = jax.random.uniform(k_x, (B, N_NODES), jnp.float32)
    src = jax.random.randint(k_src, (B, N_EDGES), 0, N_NODES)
    dst = jax.random.randint(k_dst, (B, N_EDGES), 0, N_NODES)
    edge_indices = jnp.stack([src, dst], axis=1).astype(jnp.int32)   # [B, 2, E]

    params = init_params(jax.random.PRNGKey(42))

    # Batched call: 8 graphs per grid step, grid=(4,), "parallel".
    q_dense, q_mask, adj = q_learning_forward_batch(ws, edge_indices, x_vs, params)
    jax.block_until_ready((q_dense, q_mask, adj))
    assert q_dense.shape == (B, N_NODES, 1) and q_mask.shape == (B, N_NODES)
    assert adj.shape == (B, N_NODES, N_NODES)

    # f32 reference over the whole batch.  Tolerance 5e-2 absorbs the intentional
    # bf16 neighbor-aggregation path (typical error ~1e-3 relative).
    ref_q, ref_adj = jax.jit(
        jax.vmap(lambda w_, e_, x_: reference_forward(w_, e_, x_, params))
    )(ws, edge_indices, x_vs)
    jax.block_until_ready((ref_q, ref_adj))
    assert jnp.array_equal(adj, ref_adj)
    max_err = float(jnp.max(jnp.abs(q_dense - ref_q)))
    assert jnp.allclose(q_dense, ref_q, atol=5e-2, rtol=5e-2), f"mismatch vs reference, max_err={max_err}"

    # Module-signature (single-graph) wrapper.
    batch0 = jnp.zeros((N_NODES,), jnp.int32)
    q1, m1, a1 = q_learning_forward(ws[0], edge_indices[0], batch0, x_vs[0], params)
    jax.block_until_ready(q1)
    assert q1.shape == (1, N_NODES, 1) and m1.shape == (1, N_NODES)

    print("KERNEL_OK")
</pallas_src>

<mosaic_0001>
module attributes {stable_mosaic.version = 11 : i64} {
  func.func @q_learning_kernel(%arg0: i32, %arg1: memref<8x16x16xbf16, #tpu.memory_space<vmem>>, %arg2: memref<8x16x2xf32, #tpu.memory_space<vmem>>, %arg3: memref<8x64x64xf32, #tpu.memory_space<vmem>>, %arg4: memref<16x64xf32, #tpu.memory_space<vmem>>, %arg5: memref<1x1x128xf32, #tpu.memory_space<vmem>>) attributes {dimension_semantics = [#tpu.dimension_semantics<parallel>], iteration_bounds = array<i64: 4>, scalar_prefetch = 0 : i64, scratch_operands = 0 : i64, tpu.core_type = #tpu.core_type<tc>, window_params = [{transform_indices = @transform_0, window_bounds = array<i64: 8, 16, 16>}, {transform_indices = @transform_1, window_bounds = array<i64: 8, 16, 2>}, {pipeline_mode = #tpu.pipeline_mode<synchronous>, transform_indices = @transform_2, window_bounds = array<i64: 8, 64, 64>}, {pipeline_mode = #tpu.pipeline_mode<synchronous>, transform_indices = @transform_3, window_bounds = array<i64: 16, 64>}, {transform_indices = @transform_4, window_bounds = array<i64: 1, 1, 128>}]} {
    %c0 = arith.constant 0 : index
    %c0_0 = arith.constant 0 : index
    %c0_1 = arith.constant 0 : index
    %0 = vector.load %arg1[%c0, %c0_0, %c0_1] : memref<8x16x16xbf16, #tpu.memory_space<vmem>>, vector<8x16x16xbf16>
    %c0_2 = arith.constant 0 : index
    %c0_3 = arith.constant 0 : index
    %c0_4 = arith.constant 0 : index
    %1 = vector.load %arg2[%c0_2, %c0_3, %c0_4] : memref<8x16x2xf32, #tpu.memory_space<vmem>>, vector<8x16x2xf32>
    %2 = vector.extract_strided_slice %1 {offsets = [0, 0, 0], sizes = [8, 16, 1], strides = [1, 1, 1]} : vector<8x16x2xf32> to vector<8x16x1xf32>
    %3 = arith.truncf %2 : vector<8x16x1xf32> to vector<8x16x1xbf16>
    %4 = vector.extract_strided_slice %1 {offsets = [0, 0, 1], sizes = [8, 16, 1], strides = [1, 1, 1]} : vector<8x16x2xf32> to vector<8x16x1xf32>
    %5 = vector.shape_cast %4 : vector<8x16x1xf32> to vector<128x1xf32>
    %c0_5 = arith.constant 0 : index
    %c0_6 = arith.constant 0 : index
    %6 = vector.load %arg4[%c0_5, %c0_6] : memref<16x64xf32, #tpu.memory_space<vmem>>, vector<16x64xf32>
    %7 = vector.extract_strided_slice %6 {offsets = [0, 0], sizes = [1, 64], strides = [1, 1]} : vector<16x64xf32> to vector<1x64xf32>
    %8 = vector.extract_strided_slice %6 {offsets = [1, 0], sizes = [1, 64], strides = [1, 1]} : vector<16x64xf32> to vector<1x64xf32>
    %9 = vector.extract_strided_slice %6 {offsets = [2, 0], sizes = [1, 64], strides = [1, 1]} : vector<16x64xf32> to vector<1x64xf32>
    %10 = vector.extract_strided_slice %6 {offsets = [3, 0], sizes = [1, 64], strides = [1, 1]} : vector<16x64xf32> to vector<1x64xf32>
    %11 = vector.extract_strided_slice %6 {offsets = [4, 0], sizes = [1, 64], strides = [1, 1]} : vector<16x64xf32> to vector<1x64xf32>
    %12 = vector.extract_strided_slice %6 {offsets = [5, 0], sizes = [1, 64], strides = [1, 1]} : vector<16x64xf32> to vector<1x64xf32>
    %13 = vector.extract_strided_slice %6 {offsets = [6, 0], sizes = [1, 64], strides = [1, 1]} : vector<16x64xf32> to vector<1x64xf32>
    %14 = vector.extract_strided_slice %6 {offsets = [7, 0], sizes = [1, 64], strides = [1, 1]} : vector<16x64xf32> to vector<1x64xf32>
    %15 = vector.extract_strided_slice %6 {offsets = [8, 0], sizes = [1, 64], strides = [1, 1]} : vector<16x64xf32> to vector<1x64xf32>
    %16 = vector.extract_strided_slice %6 {offsets = [9, 0], sizes = [1, 64], strides = [1, 1]} : vector<16x64xf32> to vector<1x64xf32>
    %17 = vector.extract_strided_slice %6 {offsets = [10, 0], sizes = [1, 64], strides = [1, 1]} : vector<16x64xf32> to vector<1x64xf32>
    %18 = vector.extract_strided_slice %6 {offsets = [11, 0], sizes = [1, 64], strides = [1, 1]} : vector<16x64xf32> to vector<1x64xf32>
    %19 = vector.extract_strided_slice %6 {offsets = [12, 0], sizes = [1, 64], strides = [1, 1]} : vector<16x64xf32> to vector<1x64xf32>
    %20 = vector.extract_strided_slice %6 {offsets = [13, 0], sizes = [1, 64], strides = [1, 1]} : vector<16x64xf32> to vector<1x64xf32>
    %21 = vector.extract_strided_slice %6 {offsets = [14, 0], sizes = [1, 1], strides = [1, 1]} : vector<16x64xf32> to vector<1x1xf32>
    %cst = arith.constant dense<0.000000e+00> : vector<8x16x1xf32>
    %22 = tpu.matmul %0, %3, %cst {dimension_numbers = #tpu.dot_dimension_numbers<[2], [1], [1], [2], [0, 0, 0, 1, 1, 2], [0], [0]>} : vector<8x16x16xbf16>, vector<8x16x1xbf16>, vector<8x16x1xf32> -> vector<8x16x1xf32>
    %23 = vector.shape_cast %22 : vector<8x16x1xf32> to vector<128x1xf32>
    %24 = vector.broadcast %5 : vector<128x1xf32> to vector<128x64xf32>
    %25 = vector.broadcast %7 : vector<1x64xf32> to vector<128x64xf32>
    %26 = arith.mulf %24, %25 : vector<128x64xf32>
    %27 = vector.broadcast %8 : vector<1x64xf32> to vector<128x64xf32>
    %28 = arith.addf %26, %27 : vector<128x64xf32>
    %29 = vector.broadcast %23 : vector<128x1xf32> to vector<128x64xf32>
    %30 = vector.broadcast %9 : vector<1x64xf32> to vector<128x64xf32>
    %31 = arith.mulf %29, %30 : vector<128x64xf32>
    %32 = vector.broadcast %10 : vector<1x64xf32> to vector<128x64xf32>
    %33 = arith.addf %31, %32 : vector<128x64xf32>
    %34 = arith.addf %33, %28 : vector<128x64xf32>
    %35 = vector.shape_cast %34 : vector<128x64xf32> to vector<8x16x64xf32>
    %cst_7 = arith.constant dense<0.000000e+00> : vector<8x64xf32>
    %36 = vector.multi_reduction <add>, %35, %cst_7 [1] : vector<8x16x64xf32> to vector<8x64xf32>
    %37 = vector.shape_cast %36 : vector<8x64xf32> to vector<8x1x64xf32>
    %cst_8 = arith.constant 1.600000e+01 : f32
    %38 = vector.broadcast %cst_8 : f32 to vector<8x1x64xf32>
    %39 = arith.divf %37, %38 : vector<8x1x64xf32>
    %40 = arith.mulf %35, %35 : vector<8x16x64xf32>
    %cst_9 = arith.constant dense<0.000000e+00> : vector<8x64xf32>
    %41 = vector.multi_reduction <add>, %40, %cst_9 [1] : vector<8x16x64xf32> to vector<8x64xf32>
    %42 = vector.shape_cast %41 : vector<8x64xf32> to vector<8x1x64xf32>
    %cst_10 = arith.constant 1.600000e+01 : f32
    %43 = vector.broadcast %cst_10 : f32 to vector<8x1x64xf32>
    %44 = arith.divf %42, %43 : vector<8x1x64xf32>
    %45 = arith.mulf %39, %39 : vector<8x1x64xf32>
    %46 = arith.subf %44, %45 : vector<8x1x64xf32>
    %cst_11 = arith.constant 0.000000e+00 : f32
    %47 = vector.broadcast %cst_11 : f32 to vector<8x1x64xf32>
    %48 = arith.maximumf %46, %47 : vector<8x1x64xf32>
    %49 = vector.broadcast %39 : vector<8x1x64xf32> to vector<8x16x64xf32>
    %50 = arith.subf %35, %49 : vector<8x16x64xf32>
    %cst_12 = arith.constant 9.99999974E-6 : f32
    %51 = vector.broadcast %cst_12 : f32 to vector<8x1x64xf32>
    %52 = arith.addf %48, %51 : vector<8x1x64xf32>
    %53 = math.rsqrt %52 : vector<8x1x64xf32>
    %54 = vector.broadcast %53 : vector<8x1x64xf32> to vector<8x16x64xf32>
    %55 = arith.mulf %50, %54 : vector<8x16x64xf32>
    %56 = vector.shape_cast %55 : vector<8x16x64xf32> to vector<128x64xf32>
    %cst_13 = arith.constant 0.000000e+00 : f32
    %57 = vector.broadcast %cst_13 : f32 to vector<128x64xf32>
    %58 = arith.maximumf %56, %57 : vector<128x64xf32>
    %c0_14 = arith.constant 0 : index
    %c0_15 = arith.constant 0 : index
    %c0_16 = arith.constant 0 : index
    %59 = vector.load %arg3[%c0_14, %c0_15, %c0_16] : memref<8x64x64xf32, #tpu.memory_space<vmem>>, vector<1x64x64xf32>
    %60 = vector.shape_cast %59 : vector<1x64x64xf32> to vector<64x64xf32>
    %cst_17 = arith.constant dense<0.000000e+00> : vector<128x64xf32>
    %61 = tpu.matmul %28, %60, %cst_17 {dimension_numbers = #tpu.dot_dimension_numbers<[1], [0], [0], [1], [0, 0, 1, 1], [], []>} : vector<128x64xf32>, vector<64x64xf32>, vector<128x64xf32> -> vector<128x64xf32>
    %62 = vector.broadcast %11 : vector<1x64xf32> to vector<128x64xf32>
    %63 = arith.addf %61, %62 : vector<128x64xf32>
    %64 = vector.shape_cast %58 : vector<128x64xf32> to vector<8x16x64xf32>
    %65 = arith.truncf %64 : vector<8x16x64xf32> to vector<8x16x64xbf16>
    %cst_18 = arith.constant dense<0.000000e+00> : vector<8x16x64xf32>
    %66 = tpu.matmul %0, %65, %cst_18 {dimension_numbers = #tpu.dot_dimension_numbers<[2], [1], [1], [2], [0, 0, 0, 1, 1, 2], [0], [0]>} : vector<8x16x16xbf16>, vector<8x16x64xbf16>, vector<8x16x64xf32> -> vector<8x16x64xf32>
    %67 = vector.shape_cast %66 : vector<8x16x64xf32> to vector<128x64xf32>
    %c3 = arith.constant 3 : index
    %c0_19 = arith.constant 0 : index
    %c0_20 = arith.constant 0 : index
    %68 = vector.load %arg3[%c3, %c0_19, %c0_20] : memref<8x64x64xf32, #tpu.memory_space<vmem>>, vector<1x64x64xf32>
    %69 = vector.shape_cast %68 : vector<1x64x64xf32> to vector<64x64xf32>
    %cst_21 = arith.constant dense<0.000000e+00> : vector<128x64xf32>
    %70 = tpu.matmul %67, %69, %cst_21 {dimension_numbers = #tpu.dot_dimension_numbers<[1], [0], [0], [1], [0, 0, 1, 1], [], []>} : vector<128x64xf32>, vector<64x64xf32>, vector<128x64xf32> -> vector<128x64xf32>
    %71 = vector.broadcast %14 : vector<1x64xf32> to vector<128x64xf32>
    %72 = arith.addf %70, %71 : vector<128x64xf32>
    %73 = arith.addf %72, %63 : vector<128x64xf32>
    %74 = vector.shape_cast %73 : vector<128x64xf32> to vector<8x16x64xf32>
    %cst_22 = arith.constant dense<0.000000e+00> : vector<8x64xf32>
    %75 = vector.multi_reduction <add>, %74, %cst_22 [1] : vector<8x16x64xf32> to vector<8x64xf32>
    %76 = vector.shape_cast %75 : vector<8x64xf32> to vector<8x1x64xf32>
    %cst_23 = arith.constant 1.600000e+01 : f32
    %77 = vector.broadcast %cst_23 : f32 to vector<8x1x64xf32>
    %78 = arith.divf %76, %77 : vector<8x1x64xf32>
    %79 = arith.mulf %74, %74 : vector<8x16x64xf32>
    %cst_24 = arith.constant dense<0.000000e+00> : vector<8x64xf32>
    %80 = vector.multi_reduction <add>, %79, %cst_24 [1] : vector<8x16x64xf32> to vector<8x64xf32>
    %81 = vector.shape_cast %80 : vector<8x64xf32> to vector<8x1x64xf32>
    %cst_25 = arith.constant 1.600000e+01 : f32
    %82 = vector.broadcast %cst_25 : f32 to vector<8x1x64xf32>
    %83 = arith.divf %81, %82 : vector<8x1x64xf32>
    %84 = arith.mulf %78, %78 : vector<8x1x64xf32>
    %85 = arith.subf %83, %84 : vector<8x1x64xf32>
    %cst_26 = arith.constant 0.000000e+00 : f32
    %86 = vector.broadcast %cst_26 : f32 to vector<8x1x64xf32>
    %87 = arith.maximumf %85, %86 : vector<8x1x64xf32>
    %88 = vector.broadcast %78 : vector<8x1x64xf32> to vector<8x16x64xf32>
    %89 = arith.subf %74, %88 : vector<8x16x64xf32>
    %cst_27 = arith.constant 9.99999974E-6 : f32
    %90 = vector.broadcast %cst_27 : f32 to vector<8x1x64xf32>
    %91 = arith.addf %87, %90 : vector<8x1x64xf32>
    %92 = math.rsqrt %91 : vector<8x1x64xf32>
    %93 = vector.broadcast %92 : vector<8x1x64xf32> to vector<8x16x64xf32>
    %94 = arith.mulf %89, %93 : vector<8x16x64xf32>
    %95 = vector.shape_cast %94 : vector<8x16x64xf32> to vector<128x64xf32>
    %cst_28 = arith.constant 0.000000e+00 : f32
    %96 = vector.broadcast %cst_28 : f32 to vector<128x64xf32>
    %97 = arith.maximumf %95, %96 : vector<128x64xf32>
    %c1 = arith.constant 1 : index
    %c0_29 = arith.constant 0 : index
    %c0_30 = arith.constant 0 : index
    %98 = vector.load %arg3[%c1, %c0_29, %c0_30] : memref<8x64x64xf32, #tpu.memory_space<vmem>>, vector<1x64x64xf32>
    %99 = vector.shape_cast %98 : vector<1x64x64xf32> to vector<64x64xf32>
    %cst_31 = arith.constant dense<0.000000e+00> : vector<128x64xf32>
    %100 = tpu.matmul %63, %99, %cst_31 {dimension_numbers = #tpu.dot_dimension_numbers<[1], [0], [0], [1], [0, 0, 1, 1], [], []>} : vector<128x64xf32>, vector<64x64xf32>, vector<128x64xf32> -> vector<128x64xf32>
    %101 = vector.broadcast %12 : vector<1x64xf32> to vector<128x64xf32>
    %102 = arith.addf %100, %101 : vector<128x64xf32>
    %103 = vector.shape_cast %97 : vector<128x64xf32> to vector<8x16x64xf32>
    %104 = arith.truncf %103 : vector<8x16x64xf32> to vector<8x16x64xbf16>
    %cst_32 = arith.constant dense<0.000000e+00> : vector<8x16x64xf32>
    %105 = tpu.matmul %0, %104, %cst_32 {dimension_numbers = #tpu.dot_dimension_numbers<[2], [1], [1], [2], [0, 0, 0, 1, 1, 2], [0], [0]>} : vector<8x16x16xbf16>, vector<8x16x64xbf16>, vector<8x16x64xf32> -> vector<8x16x64xf32>
    %106 = vector.shape_cast %105 : vector<8x16x64xf32> to vector<128x64xf32>
    %c4 = arith.constant 4 : index
    %c0_33 = arith.constant 0 : index
    %c0_34 = arith.constant 0 : index
    %107 = vector.load %arg3[%c4, %c0_33, %c0_34] : memref<8x64x64xf32, #tpu.memory_space<vmem>>, vector<1x64x64xf32>
    %108 = vector.shape_cast %107 : vector<1x64x64xf32> to vector<64x64xf32>
    %cst_35 = arith.constant dense<0.000000e+00> : vector<128x64xf32>
    %109 = tpu.matmul %106, %108, %cst_35 {dimension_numbers = #tpu.dot_dimension_numbers<[1], [0], [0], [1], [0, 0, 1, 1], [], []>} : vector<128x64xf32>, vector<64x64xf32>, vector<128x64xf32> -> vector<128x64xf32>
    %110 = vector.broadcast %15 : vector<1x64xf32> to vector<128x64xf32>
    %111 = arith.addf %109, %110 : vector<128x64xf32>
    %112 = arith.addf %111, %102 : vector<128x64xf32>
    %113 = vector.shape_cast %112 : vector<128x64xf32> to vector<8x16x64xf32>
    %cst_36 = arith.constant dense<0.000000e+00> : vector<8x64xf32>
    %114 = vector.multi_reduction <add>, %113, %cst_36 [1] : vector<8x16x64xf32> to vector<8x64xf32>
    %115 = vector.shape_cast %114 : vector<8x64xf32> to vector<8x1x64xf32>
    %cst_37 = arith.constant 1.600000e+01 : f32
    %116 = vector.broadcast %cst_37 : f32 to vector<8x1x64xf32>
    %117 = arith.divf %115, %116 : vector<8x1x64xf32>
    %118 = arith.mulf %113, %113 : vector<8x16x64xf32>
    %cst_38 = arith.constant dense<0.000000e+00> : vector<8x64xf32>
    %119 = vector.multi_reduction <add>, %118, %cst_38 [1] : vector<8x16x64xf32> to vector<8x64xf32>
    %120 = vector.shape_cast %119 : vector<8x64xf32> to vector<8x1x64xf32>
    %cst_39 = arith.constant 1.600000e+01 : f32
    %121 = vector.broadcast %cst_39 : f32 to vector<8x1x64xf32>
    %122 = arith.divf %120, %121 : vector<8x1x64xf32>
    %123 = arith.mulf %117, %117 : vector<8x1x64xf32>
    %124 = arith.subf %122, %123 : vector<8x1x64xf32>
    %cst_40 = arith.constant 0.000000e+00 : f32
    %125 = vector.broadcast %cst_40 : f32 to vector<8x1x64xf32>
    %126 = arith.maximumf %124, %125 : vector<8x1x64xf32>
    %127 = vector.broadcast %117 : vector<8x1x64xf32> to vector<8x16x64xf32>
    %128 = arith.subf %113, %127 : vector<8x16x64xf32>
    %cst_41 = arith.constant 9.99999974E-6 : f32
    %129 = vector.broadcast %cst_41 : f32 to vector<8x1x64xf32>
    %130 = arith.addf %126, %129 : vector<8x1x64xf32>
    %131 = math.rsqrt %130 : vector<8x1x64xf32>
    %132 = vector.broadcast %131 : vector<8x1x64xf32> to vector<8x16x64xf32>
    %133 = arith.mulf %128, %132 : vector<8x16x64xf32>
    %134 = vector.shape_cast %133 : vector<8x16x64xf32> to vector<128x64xf32>
    %cst_42 = arith.constant 0.000000e+00 : f32
    %135 = vector.broadcast %cst_42 : f32 to vector<128x64xf32>
    %136 = arith.maximumf %134, %135 : vector<128x64xf32>
    %c2 = arith.constant 2 : index
    %c0_43 = arith.constant 0 : index
    %c0_44 = arith.constant 0 : index
    %137 = vector.load %arg3[%c2, %c0_43, %c0_44] : memref<8x64x64xf32, #tpu.memory_space<vmem>>, vector<1x64x64xf32>
    %138 = vector.shape_cast %137 : vector<1x64x64xf32> to vector<64x64xf32>
    %cst_45 = arith.constant dense<0.000000e+00> : vector<128x64xf32>
    %139 = tpu.matmul %102, %138, %cst_45 {dimension_numbers = #tpu.dot_dimension_numbers<[1], [0], [0], [1], [0, 0, 1, 1], [], []>} : vector<128x64xf32>, vector<64x64xf32>, vector<128x64xf32> -> vector<128x64xf32>
    %140 = vector.broadcast %13 : vector<1x64xf32> to vector<128x64xf32>
    %141 = arith.addf %139, %140 : vector<128x64xf32>
    %142 = vector.shape_cast %136 : vector<128x64xf32> to vector<8x16x64xf32>
    %143 = arith.truncf %142 : vector<8x16x64xf32> to vector<8x16x64xbf16>
    %cst_46 = arith.constant dense<0.000000e+00> : vector<8x16x64xf32>
    %144 = tpu.matmul %0, %143, %cst_46 {dimension_numbers = #tpu.dot_dimension_numbers<[2], [1], [1], [2], [0, 0, 0, 1, 1, 2], [0], [0]>} : vector<8x16x16xbf16>, vector<8x16x64xbf16>, vector<8x16x64xf32> -> vector<8x16x64xf32>
    %145 = vector.shape_cast %144 : vector<8x16x64xf32> to vector<128x64xf32>
    %c5 = arith.constant 5 : index
    %c0_47 = arith.constant 0 : index
    %c0_48 = arith.constant 0 : index
    %146 = vector.load %arg3[%c5, %c0_47, %c0_48] : memref<8x64x64xf32, #tpu.memory_space<vmem>>, vector<1x64x64xf32>
    %147 = vector.shape_cast %146 : vector<1x64x64xf32> to vector<64x64xf32>
    %cst_49 = arith.constant dense<0.000000e+00> : vector<128x64xf32>
    %148 = tpu.matmul %145, %147, %cst_49 {dimension_numbers = #tpu.dot_dimension_numbers<[1], [0], [0], [1], [0, 0, 1, 1], [], []>} : vector<128x64xf32>, vector<64x64xf32>, vector<128x64xf32> -> vector<128x64xf32>
    %149 = vector.broadcast %16 : vector<1x64xf32> to vector<128x64xf32>
    %150 = arith.addf %148, %149 : vector<128x64xf32>
    %151 = arith.addf %150, %141 : vector<128x64xf32>
    %cst_50 = arith.constant 0.000000e+00 : f32
    %152 = vector.broadcast %cst_50 : f32 to vector<128x64xf32>
    %153 = arith.maximumf %151, %152 : vector<128x64xf32>
    %154 = vector.shape_cast %153 : vector<128x64xf32> to vector<8x16x64xf32>
    %cst_51 = arith.constant dense<0.000000e+00> : vector<8x64xf32>
    %155 = vector.multi_reduction <add>, %154, %cst_51 [1] : vector<8x16x64xf32> to vector<8x64xf32>
    %cst_52 = arith.constant 1.600000e+01 : f32
    %156 = vector.broadcast %cst_52 : f32 to vector<8x64xf32>
    %157 = arith.divf %155, %156 : vector<8x64xf32>
    %c6 = arith.constant 6 : index
    %c0_53 = arith.constant 0 : index
    %c0_54 = arith.constant 0 : index
    %158 = vector.load %arg3[%c6, %c0_53, %c0_54] : memref<8x64x64xf32, #tpu.memory_space<vmem>>, vector<1x64x64xf32>
    %159 = vector.shape_cast %158 : vector<1x64x64xf32> to vector<64x64xf32>
    %cst_55 = arith.constant dense<0.000000e+00> : vector<8x64xf32>
    %160 = tpu.matmul %157, %159, %cst_55 {dimension_numbers = #tpu.dot_dimension_numbers<[1], [0], [0], [1], [0, 0, 1, 1], [], []>} : vector<8x64xf32>, vector<64x64xf32>, vector<8x64xf32> -> vector<8x64xf32>
    %161 = vector.broadcast %17 : vector<1x64xf32> to vector<8x64xf32>
    %162 = arith.addf %160, %161 : vector<8x64xf32>
    %cst_56 = arith.constant 0.000000e+00 : f32
    %163 = vector.broadcast %cst_56 : f32 to vector<8x64xf32>
    %164 = arith.maximumf %162, %163 : vector<8x64xf32>
    %c7 = arith.constant 7 : index
    %c0_57 = arith.constant 0 : index
    %c0_58 = arith.constant 0 : index
    %165 = vector.load %arg3[%c7, %c0_57, %c0_58] : memref<8x64x64xf32, #tpu.memory_space<vmem>>, vector<1x64x64xf32>
    %166 = vector.shape_cast %165 : vector<1x64x64xf32> to vector<64x64xf32>
    %cst_59 = arith.constant dense<0.000000e+00> : vector<128x64xf32>
    %167 = tpu.matmul %153, %166, %cst_59 {dimension_numbers = #tpu.dot_dimension_numbers<[1], [0], [0], [1], [0, 0, 1, 1], [], []>} : vector<128x64xf32>, vector<64x64xf32>, vector<128x64xf32> -> vector<128x64xf32>
    %168 = vector.broadcast %18 : vector<1x64xf32> to vector<128x64xf32>
    %169 = arith.addf %167, %168 : vector<128x64xf32>
    %cst_60 = arith.constant 0.000000e+00 : f32
    %170 = vector.broadcast %cst_60 : f32 to vector<128x64xf32>
    %171 = arith.maximumf %169, %170 : vector<128x64xf32>
    %172 = vector.shape_cast %164 : vector<8x64xf32> to vector<8x1x64xf32>
    %173 = vector.shape_cast %172 : vector<8x1x64xf32> to vector<8x1x64xf32>
    %174 = vector.broadcast %173 : vector<8x1x64xf32> to vector<8x16x64xf32>
    %175 = vector.shape_cast %174 : vector<8x16x64xf32> to vector<128x64xf32>
    %cst_61 = arith.constant dense<0.000000e+00> : vector<1x128xf32>
    %176 = tpu.matmul %20, %171, %cst_61 {dimension_numbers = #tpu.dot_dimension_numbers<[1], [1], [0], [0], [0, 0, 1, 0], [], []>} : vector<1x64xf32>, vector<128x64xf32>, vector<1x128xf32> -> vector<1x128xf32>
    %cst_62 = arith.constant dense<0.000000e+00> : vector<1x128xf32>
    %177 = tpu.matmul %19, %175, %cst_62 {dimension_numbers = #tpu.dot_dimension_numbers<[1], [1], [0], [0], [0, 0, 1, 0], [], []>} : vector<1x64xf32>, vector<128x64xf32>, vector<1x128xf32> -> vector<1x128xf32>
    %178 = arith.addf %176, %177 : vector<1x128xf32>
    %179 = vector.broadcast %21 : vector<1x1xf32> to vector<1x128xf32>
    %180 = arith.addf %178, %179 : vector<1x128xf32>
    %c0_63 = arith.constant 0 : index
    %c0_64 = arith.constant 0 : index
    %c0_65 = arith.constant 0 : index
    %181 = vector.load %arg5[%c0_63, %c0_64, %c0_65] : memref<1x1x128xf32, #tpu.memory_space<vmem>>, vector<1x1x128xf32>
    %182 = vector.shape_cast %181 : vector<1x1x128xf32> to vector<1x128xf32>
    %183 = vector.shape_cast %180 : vector<1x128xf32> to vector<1x1x128xf32>
    tpu.vector_store %arg5[%c0_63, %c0_64, %c0_65], %183 {strides = array<i32>} : memref<1x1x128xf32, #tpu.memory_space<vmem>>, vector<1x1x128xf32>,
    return
  }
  func.func @transform_0(%arg0: i32) -> (i32, i32, i32) {
    %c0_i32 = arith.constant 0 : i32
    %c0_i32_0 = arith.constant 0 : i32
    %c0_i32_1 = arith.constant 0 : i32
    return %arg0, %c0_i32, %c0_i32_0 : i32, i32, i32
  }
  func.func @transform_1(%arg0: i32) -> (i32, i32, i32) {
    %c0_i32 = arith.constant 0 : i32
    %c0_i32_0 = arith.constant 0 : i32
    %c0_i32_1 = arith.constant 0 : i32
    return %arg0, %c0_i32, %c0_i32_0 : i32, i32, i32
  }
  func.func @transform_2(%arg0: i32) -> (i32, i32, i32) {
    %c0_i32 = arith.constant 0 : i32
    %c0_i32_0 = arith.constant 0 : i32
    %c0_i32_1 = arith.constant 0 : i32
    %c0_i32_2 = arith.constant 0 : i32
    return %c0_i32, %c0_i32_0, %c0_i32_1 : i32, i32, i32
  }
  func.func @transform_3(%arg0: i32) -> (i32, i32) {
    %c0_i32 = arith.constant 0 : i32
    %c0_i32_0 = arith.constant 0 : i32
    %c0_i32_1 = arith.constant 0 : i32
    return %c0_i32, %c0_i32_0 : i32, i32
  }
  func.func @transform_4(%arg0: i32) -> (i32, i32, i32) {
    %c0_i32 = arith.constant 0 : i32
    %c0_i32_0 = arith.constant 0 : i32
    %c0_i32_1 = arith.constant 0 : i32
    return %arg0, %c0_i32, %c0_i32_0 : i32, i32, i32
  }
}

</mosaic_0001>

<bundles_post_ra>
// kernel: q_learning_forward_batch.1
= control target key start
LH: loop header
LB: loop body
LE: loop exit
PB: predicated region body
PF: predicated region fallthrough
CT: control target
= control target key end

     0   :  { %s4011_s15 = smov 0   ;;  %s5772_s0 = inlined_call_operand.vmem [shape: bf16[32,16,16], index: 0, kind: input, shape index: {}]   ;;  %s5773_s1 = inlined_call_operand.vmem [shape: f32[32,16,2], index: 1, kind: input, shape index: {}]   ;;  %s5774_s2 = inlined_call_operand.vmem [shape: f32[8,64,64], index: 2, kind: input, shape index: {}]   ;;  %s5775_s3 = inlined_call_operand.vmem [shape: f32[16,64], index: 3, kind: input, shape index: {}]   ;;  %s5776_s4 = inlined_call_operand.vmem [shape: f32[4,1,128], index: 4, kind: output, shape index: {}]  }
   0x1 LB: > { %s4017_s16 = sadd.s32 4294967295, %s3981_s15   ;;  %p3560_p0 = scmp.ge.s32.totalorder %s3981_s15, 1  ;;  %s3981_s15 = sphi %s4011_s15, %s14_s15  }
   0x2   : > { %p176_p1 = scmp.lt.s32.totalorder %s3981_s15, 5 }
   0x4   : > { %p177_p2 = pnand %p3560_p0, %p176_p1 }
   0x5   : > { %s3561_s17 = sshll.u32 (!%p177_p2), %s4017_s16, 3  ;;  %p221_p4 = scmp.lt.s32.totalorder (!%p177_p2), %s4017_s16, 3 }
   0x6   : > { %180 = sbr.rel (%p177_p2) target bundleno = 1857 (0x741), region = 36  ;;  %p208_p3 = scmp.lt.s32.totalorder (!%p177_p2), %s3561_s17, 31 }
   0xb   : > { %s5778_s17 = smov (!%p208_p3, %s3561_s17), 31  ;;  %v3983_v0 = vmov 1   ;;  %v3984_v1 = vmov 0   ;;  %vm286_vm0 = vcmask 130048   ;;  %vm744_vm1 = vcmask 523264   ;;  %s5780_s16 = smov (!%p221_p4, %s4017_s16), 3 }
   0xc   : > { %s3837_s18 = sshll.u32 %s5778_s17, 4  ;;  %3881 = vset.pattern.permute.xlu0 %v3983_v0  ;;  %3883 = vset.pattern.permute.xlu1 %v3984_v1  ;;  %s3836_s22 = sshll.u32 %s5778_s17, 3 }
   0xd   : > { %s4025_s21 = scalar_lea.vmem %s5773_s1, %s3837_s18  ;;  %3882 = vset.pattern.permute.xlu2 %v3983_v0  ;;  %s4045_s25 = scalar_lea.vmem %s5772_s0, %s3836_s22 }
   0xe   : > { %v241_v2 = vld [vmem:[%s4025_s21] sm:$0xff]  ;;  %v242_v3 = vld [vmem:[%s4025_s21 + $0x8] sm:$0xff]  ;;  %v243_v6 = vld [vmem:[%s4025_s21 + $0x10] sm:$0xff]  ;;  %s223_s28 = scalar_lea.vmem %s5776_s4, %s5780_s16 }
   0xf   : > { %v257_v4 = vpack.c.bf16 %v241_v2, %v241_v2  ;;  %v258_v5 = vpack.c.bf16 %v242_v3, %v242_v3  ;;  %v244_v7 = vld [vmem:[%s4025_s21 + $0x18] sm:$0xff]  ;;  %v4035_v8 = vld [vmem:[%s4025_s21 + $0x20] sm:$0xff]  ;;  %502 = vperm.xlu0 %3881, %v241_v2   ;;  %v259_v9 = vpack.c.bf16 %v243_v6, %v243_v6  ;;  %v4038_v11 = vld [vmem:[%s4025_s21 + $0x28] sm:$0xff]  ;;  %512 = vperm.xlu2 %3882, %v243_v6  }
  0x10   : > { %v260_v10 = vpack.c.bf16 %v244_v7, %v244_v7  ;;  %v261_v12 = vpack.c.bf16 %v4035_v8, %v4035_v8  ;;  %v262_v15 = vpack.c.bf16 %v4038_v11, %v4038_v11  ;;  %v4050_v16 = vld [vmem:[%s4025_s21 + $0x30] sm:$0xff]  ;;  %v4053_v17 = vld [vmem:[%s4025_s21 + $0x38] sm:$0xff]  ;;  %v4058_v22 = vld [vmem:[%s4025_s21 + $0x40] sm:$0xff] }
  0x11   : > { %v282_v13 = vunpack.c.l.b16 %v257_v4  ;;  %v283_v14 = vunpack.c.l.b16 %v258_v5  ;;  %v311_v18 = vunpack.c.l.b16 %v259_v9  ;;  %v263_v21 = vpack.c.bf16 %v4050_v16, %v4050_v16  ;;  %v4061_v23 = vld [vmem:[%s4025_s21 + $0x48] sm:$0xff]  ;;  %v4068_v28 = vld [vmem:[%s4025_s21 + $0x50] sm:$0xff]  ;;  %v4071_v29 = vld [vmem:[%s4025_s21 + $0x58] sm:$0xff] }
  0x12   : > { %v312_v19 = vunpack.c.l.b16 %v260_v10  ;;  %v339_v20 = vunpack.c.l.b16 %v261_v12  ;;  %v340_v25 = vunpack.c.l.b16 %v262_v15  ;;  %v264_v26 = vpack.c.bf16 %v4053_v17, %v4053_v17  ;;  %v4074_v30 = vld [vmem:[%s4045_s25] sm:$0xff]  ;;  %v4084_v36 = vld [vmem:[%s4025_s21 + $0x68] sm:$0xff]  ;;  %v4092_v42 = vld [vmem:[%s4025_s21 + $0x70] sm:$0xff] }
  0x13   : > { %v284_v24 = vpack.c.b16 %v283_v14, %v282_v13  ;;  %v265_v27 = vpack.c.bf16 %v4058_v22, %v4058_v22  ;;  %v367_v32 = vunpack.c.l.b16 %v263_v21  ;;  %v266_v33 = vpack.c.bf16 %v4061_v23, %v4061_v23  ;;  %v4081_v35 = vld [vmem:[%s4025_s21 + $0x60] sm:$0xff]  ;;  %v4087_v38 = vld [vmem:[%s4045_s25 + $0x8] sm:$0xff]  ;;  %v4095_v43 = vld [vmem:[%s4025_s21 + $0x78] sm:$0xff] }
  0x14   : > { %v313_v31 = vpack.c.b16 %v312_v19, %v311_v18  ;;  %v267_v34 = vpack.c.bf16 %v4068_v28, %v4068_v28  ;;  %v341_v37 = vpack.c.b16 %v340_v25, %v339_v20  ;;  %v368_v39 = vunpack.c.l.b16 %v264_v26  ;;  %v4098_v44 = vld [vmem:[%s4045_s25 + $0x10] sm:$0xff]  ;;  %v3841_v53 = vld [vmem:[%s4045_s25 + $0x18] sm:$0xff]  ;;  %v3842_v62 = vld [vmem:[%s4045_s25 + $0x20] sm:$0xff] }
  0x15   : > { %297 = vmatpush.bf16.msra.mxu0 %v284_v24  ;;  %v395_v40 = vunpack.c.l.b16 %v265_v27  ;;  %v268_v41 = vpack.c.bf16 %v4071_v29, %v4071_v29  ;;  %v396_v45 = vunpack.c.l.b16 %v266_v33  ;;  %v269_v47 = vpack.c.bf16 %v4081_v35, %v4081_v35  ;;  %v3843_v63 = vld [vmem:[%s4045_s25 + $0x28] sm:$0xff]  ;;  %v3844_v2 = vld [vmem:[%s4045_s25 + $0x30] sm:$0xff]  ;;  %v1092_v20 = vld [vmem:[%s5774_s2 + $0x20] sm:$0xff] }
  0x16   : > { %325 = vmatpush.bf16.msra.mxu1 %v313_v31  ;;  %v423_v46 = vunpack.c.l.b16 %v267_v34  ;;  %v270_v48 = vpack.c.bf16 %v4084_v36, %v4084_v36  ;;  %353 = vmatpush.bf16.msra.mxu2 %v341_v37  ;;  %v369_v49 = vpack.c.b16 %v368_v39, %v367_v32  ;;  %v271_v51 = vpack.c.bf16 %v4092_v42, %v4092_v42  ;;  %v1094_v18 = vld [vmem:[%s5774_s2 + $0x30] sm:$0xff]  ;;  %v1093_v19 = vld [vmem:[%s5774_s2 + $0x28] sm:$0xff] }
  0x17   : > { %v424_v50 = vunpack.c.l.b16 %v268_v41  ;;  %v272_v52 = vpack.c.bf16 %v4095_v43, %v4095_v43  ;;  %507 = vperm.xlu0 %3881, %v242_v3   ;;  %v397_v54 = vpack.c.b16 %v396_v45, %v395_v40  ;;  %v451_v55 = vunpack.c.l.b16 %v269_v47  ;;  %517 = vperm.xlu2 %3882, %v244_v7   ;;  %v3845_v3 = vld [vmem:[%s4045_s25 + $0x38] sm:$0xff]  ;;  %v1090_v25 = vld [vmem:[%s5774_s2 + $0x10] sm:$0xff]  ;;  %v1089_v31 = vld [vmem:[%s5774_s2 + $0x8] sm:$0xff] }
  0x18   : > { %3571 = vmatmul.msk.bf16.vlgmr.msra.gmra.mxu0 %vm286_vm0, %v4074_v30  ;;  %v452_v56 = vunpack.c.l.b16 %v270_v48  ;;  %381 = vmatpush.bf16.msra.mxu3 %v369_v49  ;;  %v479_v58 = vunpack.c.l.b16 %v271_v51 }
  0x19   : > { %3576 = vmatmul.msk.bf16.vlgmr.msra.gmra.mxu1 %vm286_vm0, %v4087_v38  ;;  %v425_v57 = vpack.c.b16 %v424_v50, %v423_v46  ;;  %v480_v59 = vunpack.c.l.b16 %v272_v52  ;;  %3581 = vmatmul.msk.bf16.vlgmr.msra.gmra.mxu2 %vm286_vm0, %v4098_v44 }
  0x1a   : > { %409 = vmatpush.bf16.msrb.mxu0 %v397_v54  ;;  %v453_v60 = vpack.c.b16 %v452_v56, %v451_v55 }
  0x1b   : > { %437 = vmatpush.bf16.msrb.mxu1 %v425_v57  ;;  %v481_v61 = vpack.c.b16 %v480_v59, %v479_v58  ;;  %3586 = vmatmul.msk.bf16.vlgmr.msra.gmra.mxu3 %vm286_vm0, %v3841_v53  ;;  %v3985_v53 = vmov 16.0  }
  0x1c   : > { %465 = vmatpush.bf16.msrb.mxu2 %v453_v60  ;;  %3900 = vrcp.f32 %v3985_v53 }
  0x1d   : > { %493 = vmatpush.bf16.msrb.mxu3 %v481_v61 }
  0x1f   : > { %3884 = vset.pattern.permute.xlu0 %v3984_v1  ;;  %522 = vperm.xlu2 %3882, %v4035_v8  }
  0x22   : > { %v3901_v56 = vpop.eup %3900 }
  0x23   : > { %v818_v61 = vmul.f32 16.0, %v3901_v56  ;;  %vm822_vm2 = vweird.f32 %v3901_v56 }
  0x27   : > { %3886 = vset.pattern.permute.xlu2 %v3984_v1 }
  0x28   : > { %3591 = vmatmul.msk.bf16.vlgmr.msrb.gmra.mxu0 %vm286_vm0, %v3842_v62 }
  0x29   : > { %3596 = vmatmul.msk.bf16.vlgmr.msrb.gmra.mxu1 %vm286_vm0, %v3843_v63  ;;  %3601 = vmatmul.msk.bf16.vlgmr.msrb.gmra.mxu2 %vm286_vm0, %v3844_v2 }
  0x2b   : > { %3606 = vmatmul.msk.bf16.vlgmr.msrb.gmra.mxu3 %vm286_vm0, %v3845_v3 }
  0x69   : > { %v513_v37 = vpop.permute.xlu2 %512 }
  0x71   : > { %v518_v45 = vpop.permute.xlu2 %517 }
  0x81   : > { %v503_v26 = vpop.permute.xlu0 %502 }
  0x89   : > { %v508_v34 = vpop.permute.xlu0 %507 }
  0x95   : > { %v299_v4 = vpop.f32.mrf.mxu0 }
  0x96   : > { %616 = vperm.xlu1 %3883, %v299_v4   ;;  %v327_v5 = vpop.f32.mrf.mxu1 }
  0x97   : > { %626 = vperm.xlu0 %3884, %v327_v5  }
  0x9c   : > { %v355_v7 = vpop.f32.mrf.mxu2 }
  0x9d   : > { %v301_v6 = vpop.f32.mrf.mxu0  ;;  %636 = vperm.xlu2 %3886, %v355_v7   ;;  %v819_v7 = vsub.f32 1.0, %v818_v61 }
  0x9e   : > { %621 = vperm.xlu1 %3883, %v301_v6   ;;  %v329_v8 = vpop.f32.mrf.mxu1  ;;  %v383_v10 = vpop.f32.mrf.mxu3 }
  0xa4   : > { %v357_v9 = vpop.f32.mrf.mxu2 }
  0xa5   : > { %641 = vperm.xlu0 %3884, %v357_v9   ;;  %3887 = vset.pattern.permute.xlu2 %v3983_v0  ;;  %v411_v12 = vpop.f32.mrf.mxu0 }
  0xa6   : > { %631 = vperm.xlu1 %3883, %v329_v8   ;;  %537 = vperm.xlu2 %3887, %v4053_v17   ;;  %v385_v15 = vpop.f32.mrf.mxu3  ;;  %v439_v17 = vpop.f32.mrf.mxu1 }
  0xac   : > { %v467_v14 = vpop.f32.mrf.mxu2 }
  0xad   : > { %646 = vperm.xlu0 %3884, %v383_v10   ;;  %v413_v13 = vpop.f32.mrf.mxu0 }
  0xae   : > { %3885 = vset.pattern.permute.xlu1 %v3983_v0  ;;  %542 = vperm.xlu2 %3887, %v4058_v22   ;;  %v495_v21 = vpop.f32.mrf.mxu3  ;;  %v1091_v22 = vld [vmem:[%s5774_s2 + $0x18] sm:$0xff]  ;;  %v441_v33 = vpop.f32.mrf.mxu1 }
  0xaf   : > { %527 = vperm.xlu1 %3885, %v4038_v11  }
  0xb4   : > { %v469_v11 = vpop.f32.mrf.mxu2 }
  0xb5   : > { %3889 = vset.pattern.permute.xlu0 %v3983_v0 }
  0xb6   : > { %547 = vperm.xlu0 %3889, %v4061_v23   ;;  %3890 = vset.pattern.permute.xlu2 %v3984_v1  ;;  %v273_v23 = vld [vmem:[%s5775_s3] sm:$0xff]  ;;  %v497_v48 = vpop.f32.mrf.mxu3 }
  0xb7   : > { %532 = vperm.xlu1 %3885, %v4050_v16   ;;  %661 = vperm.xlu2 %3890, %v413_v13   ;;  %v1095_v16 = vld [vmem:[%s5774_s2 + $0x38] sm:$0xff]  ;;  %v4160_v24 = vperm.slane %v273_v23, 0  ;;  %v4167_v27 = vperm.slane %v273_v23, 1  ;;  %v4198_v50 = vperm.slane %v273_v23, 2  ;;  %v4200_v52 = vperm.slane %v273_v23, 3 }
  0xb8   : > { %1153 = vmatpush.msra.mxu0 %v1095_v16 }
  0xb9   : > { %v583_v40 = vmul.f32 %v4160_v24, %v513_v37  ;;  %v584_v46 = vmul.f32 %v4160_v24, %v518_v45 }
  0xba   : > { %1154 = vmatpush.msra.mxu0 %v1094_v18 }
  0xbb   : > { %v600_v41 = vadd.f32 %v4167_v27, %v583_v40  ;;  %v601_v47 = vadd.f32 %v4167_v27, %v584_v46 }
  0xbc   : > { %1155 = vmatpush.msra.mxu0 %v1093_v19 }
  0xbe   : > { %3893 = vset.pattern.permute.xlu0 %v3984_v1  ;;  %1156 = vmatpush.msra.mxu0 %v1092_v20  ;;  %v820_v20 = vmul.f32 %v3901_v56, %v819_v7 }
  0xbf   : > { %3888 = vset.pattern.permute.xlu1 %v3984_v1  ;;  %666 = vperm.xlu0 %3893, %v439_v17  }
  0xc0   : > { %651 = vperm.xlu1 %3888, %v385_v15   ;;  %3892 = vset.pattern.permute.xlu2 %v3983_v0 }
  0xc1   : > { %557 = vperm.xlu2 %3892, %v4071_v29   ;;  %1157 = vmatpush.msra.mxu0 %v1091_v22  ;;  %v581_v29 = vmul.f32 %v4160_v24, %v503_v26 }
  0xc3   : > { %1158 = vmatpush.msra.mxu0 %v1090_v25  ;;  %v598_v32 = vadd.f32 %v4167_v27, %v581_v29 }
  0xc5   : > { %1159 = vmatpush.msra.mxu0 %v1089_v31 }
  0xc7   : > { %681 = vperm.xlu0 %3893, %v469_v11  }
  0xc8   : > { %656 = vperm.xlu1 %3888, %v411_v12  }
  0xc9   : > { %562 = vperm.xlu2 %3892, %v4081_v35   ;;  %v582_v35 = vmul.f32 %v4160_v24, %v508_v34 }
  0xcb   : > { %v599_v39 = vadd.f32 %v4167_v27, %v582_v35 }
  0xcf   : > { %686 = vperm.xlu0 %3893, %v495_v21  }
  0xd0   : > { %3891 = vset.pattern.permute.xlu1 %v3983_v0 }
  0xd1   : > { %552 = vperm.xlu1 %3891, %v4068_v28   ;;  %3896 = vset.pattern.permute.xlu2 %v3984_v1  ;;  %v1088_v28 = vld [vmem:[%s5774_s2] sm:$0xff] }
  0xd2   : > { %676 = vperm.xlu2 %3896, %v467_v14   ;;  %1160 = vmatpush.msra.mxu0 %v1088_v28  ;;  %v821_v28 = vadd.f32 %v3901_v56, %v820_v20 }
  0xd3   : > { %3607 = vmatmul.msk.f32.vlgmr.msra.gmra.mxu0 %vm744_vm1, %v598_v32 }
  0xd9   : > { %3894 = vset.pattern.permute.xlu1 %v3984_v1 }
  0xda   : > { %671 = vperm.xlu1 %3894, %v441_v33   ;;  %3897 = vset.pattern.permute.xlu2 %v3983_v0 }
  0xdb   : > { %577 = vperm.xlu2 %3897, %v4095_v43   ;;  %3608 = vmatmul.msk.f32.gmra.mxu0 %vm744_vm1, %v599_v39  ;;  %v523_v43 = vpop.permute.xlu2 %522 }
  0xe2   : > { %3895 = vset.pattern.permute.xlu1 %v3983_v0  ;;  %v585_v0 = vmul.f32 %v4160_v24, %v523_v43 }
  0xe3   : > { %567 = vperm.xlu1 %3895, %v4084_v36   ;;  %3899 = vset.pattern.permute.xlu2 %v3984_v1 }
  0xe4   : > { %3609 = vmatmul.msk.f32.gmra.mxu0 %vm744_vm1, %v600_v41  ;;  %v602_v36 = vadd.f32 %v4167_v27, %v585_v0 }
  0xeb   : > { %572 = vperm.xlu1 %3895, %v4092_v42  }
  0xec   : > { %3610 = vmatmul.msk.f32.gmra.mxu0 %vm744_vm1, %v601_v47 }
  0xf3   : > { %3898 = vset.pattern.permute.xlu1 %v3984_v1 }
  0xf4   : > { %691 = vperm.xlu1 %3898, %v497_v48   ;;  %3611 = vmatmul.msk.f32.gmra.mxu0 %vm744_vm1, %v602_v36 }
  0xf7   : > { %v637_v49 = vpop.permute.xlu2 %636 }
  0xf8   : > { %v699_v5 = vmul.f32 %v4198_v50, %v637_v49 }
  0xfa   : > { %v716_v19 = vadd.f32 %v4200_v52, %v699_v5 }
 0x100   : > { %v4203_v54 = vpop.permute.xlu2 %537 }
 0x108   : > { %v617_v51 = vpop.permute.xlu1 %616  ;;  %v4216_v4 = vpop.permute.xlu2 %542 }
 0x109   : > { %v695_v42 = vmul.f32 %v4198_v50, %v617_v51  ;;  %v627_v1 = vpop.permute.xlu0 %626 }
 0x10a   : > { %v697_v60 = vmul.f32 %v4198_v50, %v627_v1 }
 0x10b   : > { %v712_v55 = vadd.f32 %v4200_v52, %v695_v42  ;;  %v4247_v42 = vsel %vm822_vm2, %v3901_v56, %v821_v28 }
 0x10c   : > { %v714_v3 = vadd.f32 %v4200_v52, %v697_v60 }
 0x10d   : > { %v4206_v58 = vadd.f32 %v712_v55, %v598_v32  ;;  %v4236_v32 = vadd.f32 %v716_v19, %v602_v36 }
 0x10e   : > { %v4227_v17 = vadd.f32 %v714_v3, %v600_v41 }
 0x10f   : > { %v832_v63 = vmul.f32 %v4206_v58, %v4206_v58  ;;  %v745_v6 = vsel %vm744_vm1, %v4206_v58, 0.0  ;;  %v836_v53 = vmul.f32 %v4236_v32, %v4236_v32 }
 0x110   : > { %v622_v57 = vpop.permute.xlu1 %621  ;;  %v834_v25 = vmul.f32 %v4227_v17, %v4227_v17  ;;  %v754_v33 = vsel %vm744_vm1, %v4227_v17, 0.0 }
 0x111   : > { %v696_v59 = vmul.f32 %v4198_v50, %v622_v57  ;;  %v848_v14 = vsel %vm744_vm1, %v832_v63, 0.0  ;;  %v662_v37 = vpop.permute.xlu2 %661 }
 0x112   : > { %v857_v45 = vsel %vm744_vm1, %v834_v25, 0.0  ;;  %v704_v19 = vmul.f32 %v4198_v50, %v662_v37  ;;  %v588_v37 = vmul.f32 %v4160_v24, %v4203_v54 }
 0x113   : > { %v713_v62 = vadd.f32 %v4200_v52, %v696_v59 }
 0x115   : > { %v4213_v2 = vadd.f32 %v713_v62, %v599_v39 }
 0x117   : > { %v746_v8 = vsel %vm744_vm1, %v4213_v2, 0.0  ;;  %v833_v9 = vmul.f32 %v4213_v2, %v4213_v2  ;;  %v642_v13 = vpop.permute.xlu0 %641 }
 0x118   : > { %v747_v10 = vadd.f32 %v746_v8, %v745_v6  ;;  %v632_v12 = vpop.permute.xlu1 %631  ;;  %v763_v6 = vsel %vm744_vm1, %v4236_v32, 0.0 }
 0x119   : > { %v849_v15 = vsel %vm744_vm1, %v833_v9, 0.0  ;;  %v698_v11 = vmul.f32 %v4198_v50, %v632_v12  ;;  %v866_v12 = vsel %vm744_vm1, %v836_v53, 0.0 }
 0x11a   : > { %v748_v16 = vrot.slane %v747_v10, 4  ;;  %v850_v18 = vadd.f32 %v849_v15, %v848_v14 }
 0x11b   : > { %v715_v21 = vadd.f32 %v4200_v52, %v698_v11  ;;  %v558_v8 = vpop.permute.xlu2 %557 }
 0x11c   : > { %v749_v22 = vadd.f32 %v748_v16, %v747_v10  ;;  %v851_v23 = vrot.slane %v850_v18, 4 }
 0x11d   : > { %v4234_v26 = vadd.f32 %v715_v21, %v601_v47  ;;  %v700_v47 = vmul.f32 %v4198_v50, %v642_v13 }
 0x11e   : > { %v750_v29 = vrot.slane %v749_v22, 2  ;;  %v852_v31 = vadd.f32 %v851_v23, %v850_v18 }
 0x11f   : > { %v755_v34 = vsel %vm744_vm1, %v4234_v26, 0.0  ;;  %v835_v35 = vmul.f32 %v4234_v26, %v4234_v26  ;;  %v647_v0 = vpop.permute.xlu0 %646  ;;  %v717_v61 = vadd.f32 %v4200_v52, %v700_v47 }
 0x120   : > { %v751_v39 = vadd.f32 %v750_v29, %v749_v22  ;;  %v853_v40 = vrot.slane %v852_v31, 2  ;;  %v756_v41 = vadd.f32 %v755_v34, %v754_v33 }
 0x121   : > { %v858_v46 = vsel %vm744_vm1, %v835_v35, 0.0  ;;  %v528_v43 = vpop.permute.xlu1 %527 }
 0x122   : > { %v752_v48 = vrot.slane %v751_v39, 1  ;;  %v854_v36 = vadd.f32 %v853_v40, %v852_v31  ;;  %v757_v49 = vrot.slane %v756_v41, 4  ;;  %v859_v51 = vadd.f32 %v858_v46, %v857_v45 }
 0x123   : > { %v586_v55 = vmul.f32 %v4160_v24, %v528_v43  ;;  %v701_v31 = vmul.f32 %v4198_v50, %v647_v0  ;;  %v721_v43 = vadd.f32 %v4200_v52, %v704_v19 }
 0x124   : > { %v753_v1 = vadd.f32 %v752_v48, %v751_v39  ;;  %v855_v57 = vrot.slane %v854_v36, 1  ;;  %v758_v59 = vadd.f32 %v757_v49, %v756_v41  ;;  %v860_v60 = vrot.slane %v859_v51, 4 }
 0x125   : > { %v603_v62 = vadd.f32 %v4167_v27, %v586_v55  ;;  %v718_v48 = vadd.f32 %v4200_v52, %v701_v31 }
 0x126   : > { %v4255_v63 = vmul.f32 %v4247_v42, %v753_v1  ;;  %v856_v3 = vadd.f32 %v855_v57, %v854_v36  ;;  %v759_v5 = vrot.slane %v758_v59, 2  ;;  %v861_v56 = vadd.f32 %v860_v60, %v859_v51  ;;  %v563_v57 = vpop.permute.xlu2 %562 }
 0x127   : > { %v4259_v7 = vadd.f32 %v717_v61, %v603_v62  ;;  %3612 = vmatmul.msk.f32.gmra.mxu0 %vm744_vm1, %v603_v62  ;;  %v589_v36 = vmul.f32 %v4160_v24, %v4216_v4 }
 0x128   : > { %v920_v9 = vmul.f32 %v856_v3, %v4247_v42  ;;  %v928_v10 = vmul.f32 %v4255_v63, %v4255_v63  ;;  %v760_v13 = vadd.f32 %v759_v5, %v758_v59  ;;  %v862_v14 = vrot.slane %v861_v56, 2  ;;  %v548_v18 = vpop.permute.xlu0 %547 }
 0x129   : > { %v764_v15 = vsel %vm744_vm1, %v4259_v7, 0.0  ;;  %v837_v11 = vmul.f32 %v4259_v7, %v4259_v7  ;;  %v533_v16 = vpop.permute.xlu1 %532  ;;  %v590_v28 = vmul.f32 %v4160_v24, %v548_v18  ;;  %v605_v3 = vadd.f32 %v4167_v27, %v588_v37 }
 0x12a   : > { %v936_v20 = vsub.f32 %v920_v9, %v928_v10  ;;  %v761_v21 = vrot.slane %v760_v13, 1  ;;  %v765_v22 = vadd.f32 %v764_v15, %v763_v6  ;;  %v587_v23 = vmul.f32 %v4160_v24, %v533_v16 }
 0x12b   : > { %v863_v25 = vadd.f32 %v862_v14, %v861_v56  ;;  %v867_v29 = vsel %vm744_vm1, %v837_v11, 0.0  ;;  %v4286_v49 = vadd.f32 %v4167_v27, %v590_v28  ;;  %v606_v10 = vadd.f32 %v4167_v27, %v589_v36 }
 0x12c   : > { %v762_v33 = vadd.f32 %v761_v21, %v760_v13  ;;  %v766_v34 = vrot.slane %v765_v22, 4  ;;  %v868_v35 = vadd.f32 %v867_v29, %v866_v12  ;;  %v604_v39 = vadd.f32 %v4167_v27, %v587_v23 }
 0x12d   : > { %v864_v40 = vrot.slane %v863_v25, 1  ;;  %v944_v41 = vmax.f32 %v936_v20, 0.0  ;;  %v4299_v56 = vadd.f32 %v721_v43, %v4286_v49  ;;  %v953_v12 = vsub.f32 %v4213_v2, %v4255_v63 }
 0x12e   : > { %v4279_v45 = vmul.f32 %v4247_v42, %v762_v33  ;;  %v767_v46 = vadd.f32 %v766_v34, %v765_v22  ;;  %v869_v47 = vrot.slane %v868_v35, 4  ;;  %v4294_v61 = vadd.f32 %v718_v48, %v604_v39 }
 0x12f   : > { %v865_v0 = vadd.f32 %v864_v40, %v863_v25  ;;  %3613 = vmatmul.msk.f32.gmra.mxu0 %vm744_vm1, %v604_v39  ;;  %v4291_v55 = vadd.f32 1e-05, %v944_v41  ;;  %v592_v14 = vmul.f32 %v4160_v24, %v558_v8  ;;  %v952_v15 = vsub.f32 %v4206_v58, %v4255_v63 }
 0x130   : > { %v929_v54 = vmul.f32 %v4279_v45, %v4279_v45  ;;  %v768_v51 = vrot.slane %v767_v46, 2  ;;  %v870_v53 = vadd.f32 %v869_v47, %v868_v35  ;;  %v838_v18 = vmul.f32 %v4294_v61, %v4294_v61 }
 0x131   : > { %v921_v1 = vmul.f32 %v865_v0, %v4247_v42  ;;  %3902 = vrsqrt.f32 %v4291_v55  ;;  %v955_v20 = vsub.f32 %v4234_v26, %v4279_v45  ;;  %v772_v21 = vsel %vm744_vm1, %v4294_v61, 0.0  ;;  %v667_v31 = vpop.permute.xlu0 %666 }
 0x132   : > { %v769_v59 = vadd.f32 %v768_v51, %v767_v46  ;;  %v871_v60 = vrot.slane %v870_v53, 2  ;;  %v652_v4 = vpop.permute.xlu1 %651  ;;  %v782_v8 = vsel %vm744_vm1, %v4299_v56, 0.0  ;;  %v841_v29 = vmul.f32 %v4299_v56, %v4299_v56  ;;  %v677_v51 = vpop.permute.xlu2 %676 }
 0x133   : > { %v937_v62 = vsub.f32 %v921_v1, %v929_v54  ;;  %v702_v5 = vmul.f32 %v4198_v50, %v652_v4  ;;  %v4332_v35 = vadd.f32 %v4167_v27, %v592_v14  ;;  %v705_v39 = vmul.f32 %v4198_v50, %v667_v31 }
 0x134   : > { %v770_v6 = vrot.slane %v769_v59, 1  ;;  %v872_v9 = vadd.f32 %v871_v60, %v870_v53  ;;  %v875_v46 = vsel %vm744_vm1, %v838_v18, 0.0  ;;  %v593_v54 = vmul.f32 %v4160_v24, %v563_v57 }
 0x135   : > { %v719_v13 = vadd.f32 %v4200_v52, %v702_v5  ;;  %v945_v19 = vmax.f32 %v937_v62, 0.0  ;;  %v885_v4 = vsel %vm744_vm1, %v841_v29, 0.0  ;;  %v722_v62 = vadd.f32 %v4200_v52, %v705_v39 }
 0x136   : > { %v771_v11 = vadd.f32 %v770_v6, %v769_v59  ;;  %v873_v16 = vrot.slane %v872_v9, 1  ;;  %vm982_vm3 = vweird.f32 %v4291_v55 }
 0x137   : > { %v4315_v22 = vadd.f32 %v719_v13, %v605_v3  ;;  %3614 = vmatmul.msk.f32.gmra.mxu0 %vm744_vm1, %v605_v3  ;;  %v4325_v28 = vadd.f32 1e-05, %v945_v19  ;;  %v3903_v40 = vpop.eup %3902  ;;  %v4355_v19 = vadd.f32 %v4167_v27, %v593_v54 }
 0x138   : > { %v4321_v23 = vmul.f32 %v4247_v42, %v771_v11  ;;  %v874_v25 = vadd.f32 %v873_v16, %v872_v9  ;;  %v977_v36 = vmul.f32 %v3903_v40, %v4291_v55  ;;  %v707_v9 = vmul.f32 %v4198_v50, %v677_v51 }
 0x139   : > { %v773_v33 = vsel %vm744_vm1, %v4315_v22, 0.0  ;;  %v839_v34 = vmul.f32 %v4315_v22, %v4315_v22  ;;  %3904 = vrsqrt.f32 %v4325_v28  ;;  %v954_v11 = vsub.f32 %v4227_v17, %v4279_v45 }
 0x13a   : > { %v922_v37 = vmul.f32 %v874_v25, %v4247_v42  ;;  %v930_v41 = vmul.f32 %v4321_v23, %v4321_v23  ;;  %v774_v47 = vadd.f32 %v773_v33, %v772_v21  ;;  %v657_v43 = vpop.permute.xlu1 %656  ;;  %v978_v3 = vmul.f32 %v3903_v40, %v977_v36 }
 0x13b   : > { %v876_v0 = vsel %vm744_vm1, %v839_v34, 0.0  ;;  %v703_v48 = vmul.f32 %v4198_v50, %v657_v43  ;;  %vm983_vm4 = vweird.f32 %v3903_v40  ;;  %vm992_vm6 = vweird.f32 %v4325_v28 }
 0x13c   : > { %v938_v53 = vsub.f32 %v922_v37, %v930_v41  ;;  %v775_v1 = vrot.slane %v774_v47, 4  ;;  %v877_v59 = vadd.f32 %v876_v0, %v875_v46  ;;  %v979_v57 = vmul.f32 0.5, %v978_v3  ;;  %v682_v37 = vpop.permute.xlu0 %681  ;;  %vm984_vm5 = vmor %vm982_vm3, %vm983_vm4 }
 0x13d   : > { %v720_v60 = vadd.f32 %v4200_v52, %v703_v48  ;;  %v724_v41 = vadd.f32 %v4200_v52, %v707_v9  ;;  %v708_v48 = vmul.f32 %v4198_v50, %v682_v37 }
 0x13e   : > { %v776_v5 = vadd.f32 %v775_v1, %v774_v47  ;;  %v878_v6 = vrot.slane %v877_v59, 4  ;;  %v946_v13 = vmax.f32 %v938_v53, 0.0  ;;  %v980_v29 = vsub.f32 1.5, %v979_v57 }
 0x13f   : > { %v4348_v14 = vadd.f32 %v720_v60, %v606_v10  ;;  %3615 = vmatmul.msk.f32.gmra.mxu0 %vm744_vm1, %v606_v10  ;;  %v3905_v31 = vpop.eup %3904  ;;  %v4388_v2 = vadd.f32 %v724_v41, %v4355_v19 }
 0x140   : > { %v777_v16 = vrot.slane %v776_v5, 2  ;;  %v879_v18 = vadd.f32 %v878_v6, %v877_v59  ;;  %v4361_v10 = vadd.f32 1e-05, %v946_v13  ;;  %v981_v43 = vmul.f32 %v3903_v40, %v980_v29 }
 0x141   : > { %v781_v21 = vsel %vm744_vm1, %v4348_v14, 0.0  ;;  %v840_v25 = vmul.f32 %v4348_v14, %v4348_v14  ;;  %v987_v0 = vmul.f32 %v3905_v31, %v4325_v28  ;;  %vm993_vm7 = vweird.f32 %v3905_v31 }
 0x142   : > { %v778_v33 = vadd.f32 %v777_v16, %v776_v5  ;;  %v880_v34 = vrot.slane %v879_v18, 2  ;;  %v783_v39 = vadd.f32 %v782_v8, %v781_v21  ;;  %v985_v1 = vsel %vm984_vm5, %v3903_v40, %v981_v43  ;;  %vm994_vm8 = vmor %vm992_vm6, %vm993_vm7 }
 0x143   : > { %v884_v46 = vsel %vm744_vm1, %v840_v25, 0.0  ;;  %v553_v47 = vpop.permute.xlu1 %552  ;;  %v988_v59 = vmul.f32 %v3905_v31, %v987_v0  ;;  %3906 = vrsqrt.f32 %v4361_v10  ;;  %v1057_v55 = vmul.f32 %v985_v1, %v953_v12 }
 0x144   : > { %v779_v36 = vrot.slane %v778_v33, 1  ;;  %v881_v54 = vadd.f32 %v880_v34, %v879_v18  ;;  %v784_v51 = vrot.slane %v783_v39, 4  ;;  %v886_v53 = vadd.f32 %v885_v4, %v884_v46 }
 0x145   : > { %v591_v8 = vmul.f32 %v4160_v24, %v553_v47  ;;  %v1056_v4 = vmul.f32 %v985_v1, %v952_v15  ;;  %v989_v13 = vmul.f32 0.5, %v988_v59  ;;  %v1073_v29 = vmax.f32 %v1057_v55, 0.0 }
 0x146   : > { %v780_v60 = vadd.f32 %v779_v36, %v778_v33  ;;  %v882_v3 = vrot.slane %v881_v54, 1  ;;  %v785_v5 = vadd.f32 %v784_v51, %v783_v39  ;;  %v887_v6 = vrot.slane %v886_v53, 4 }
 0x147   : > { %v608_v9 = vadd.f32 %v4167_v27, %v591_v8  ;;  %3616 = vmatmul.msk.f32.gmra.mxu0 %vm744_vm1, %v4286_v49  ;;  %v1072_v25 = vmax.f32 %v1056_v4, 0.0  ;;  %v990_v58 = vsub.f32 1.5, %v989_v13  ;;  %v4394_v34 = vadd.f32 %v4200_v52, %v708_v48 }
 0x148   : > { %v4382_v40 = vmul.f32 %v4247_v42, %v780_v60  ;;  %v883_v57 = vadd.f32 %v882_v3, %v881_v54  ;;  %v786_v16 = vrot.slane %v785_v5, 2  ;;  %v888_v18 = vadd.f32 %v887_v6, %v886_v53 }
 0x149   : > { %v4384_v21 = vadd.f32 %v722_v62, %v608_v9  ;;  %v4390_v63 = vpop.eup %3906  ;;  %v1210_v33 = vpack.c.bf16 %v1072_v25, %v1072_v25  ;;  %v1211_v37 = vpack.c.bf16 %v1073_v29, %v1073_v29  ;;  %v991_v47 = vmul.f32 %v3905_v31, %v990_v58 }
 0x14a   : > { %v787_v15 = vadd.f32 %v786_v16, %v785_v5  ;;  %v923_v49 = vmul.f32 %v883_v57, %v4247_v42  ;;  %v889_v12 = vrot.slane %v888_v18, 2  ;;  %v931_v62 = vmul.f32 %v4382_v40, %v4382_v40 }
 0x14b   : > { %v842_v41 = vmul.f32 %v4384_v21, %v4384_v21  ;;  %v1228_v0 = vunpack.c.l.b16 %v1210_v33  ;;  %v1229_v54 = vunpack.c.l.b16 %v1211_v37  ;;  %v995_v51 = vsel %vm994_vm8, %v3905_v31, %v991_v47 }
 0x14c   : > { %v788_v39 = vrot.slane %v787_v15, 1  ;;  %v672_v46 = vpop.permute.xlu1 %671  ;;  %v890_v43 = vadd.f32 %v889_v12, %v888_v18  ;;  %v997_v53 = vmul.f32 %v4390_v63, %v4361_v10  ;;  %v1058_v59 = vmul.f32 %v995_v51, %v954_v11 }
 0x14d   : > { %v706_v36 = vmul.f32 %v4198_v50, %v672_v46  ;;  %v1059_v60 = vmul.f32 %v995_v51, %v955_v20  ;;  %v790_v31 = vsel %vm744_vm1, %v4384_v21, 0.0  ;;  %v1230_v3 = vpack.c.b16 %v1229_v54, %v1228_v0 }
 0x14e   : > { %v789_v48 = vadd.f32 %v788_v39, %v787_v15  ;;  %v891_v8 = vrot.slane %v890_v43, 1  ;;  %v998_v5 = vmul.f32 %v4390_v63, %v997_v53  ;;  %v1074_v17 = vmax.f32 %v1058_v59, 0.0 }
 0x14f   : > { %v723_v1 = vadd.f32 %v4200_v52, %v706_v36  ;;  %3617 = vmatmul.msk.f32.gmra.mxu0 %vm744_vm1, %v608_v9  ;;  %v1075_v11 = vmax.f32 %v1059_v60, 0.0  ;;  %v939_v55 = vsub.f32 %v923_v49, %v931_v62  ;;  %v893_v45 = vsel %vm744_vm1, %v842_v41, 0.0  ;;  %1239 = vmatpush.bf16.msra.mxu1 %v1230_v3 }
 0x150   : > { %v4415_v28 = vmul.f32 %v4247_v42, %v789_v48  ;;  %v892_v6 = vadd.f32 %v891_v8, %v890_v43  ;;  %v999_v20 = vmul.f32 0.5, %v998_v5  ;;  %v1212_v16 = vpack.c.bf16 %v1074_v17, %v1074_v17 }
 0x151   : > { %v4421_v4 = vadd.f32 %v723_v1, %v4332_v35  ;;  %v1213_v25 = vpack.c.bf16 %v1075_v11, %v1075_v11  ;;  %v956_v29 = vsub.f32 %v4236_v32, %v4321_v23  ;;  %vm1003_vm9 = vweird.f32 %v4390_v63  ;;  %v687_v11 = vpop.permute.xlu0 %686 }
 0x152   : > { %v932_v26 = vmul.f32 %v4415_v28, %v4415_v28  ;;  %v924_v9 = vmul.f32 %v892_v6, %v4247_v42  ;;  %v1000_v58 = vsub.f32 1.5, %v999_v20  ;;  %3623 = vmatmul.msk.bf16.vlgmr.msra.gmra.mxu1 %vm286_vm0, %v4074_v30  ;;  %v1248_v12 = vunpack.c.l.b16 %v1212_v16 }
 0x153   : > { %v791_v13 = vsel %vm744_vm1, %v4421_v4, 0.0  ;;  %v843_v57 = vmul.f32 %v4421_v4, %v4421_v4  ;;  %v1249_v37 = vunpack.c.l.b16 %v1213_v25  ;;  %v844_v47 = vmul.f32 %v4388_v2, %v4388_v2 }
 0x154   : > { %v792_v18 = vadd.f32 %v791_v13, %v790_v31  ;;  %v940_v15 = vsub.f32 %v924_v9, %v932_v26  ;;  %v1001_v32 = vmul.f32 %v4390_v63, %v1000_v58  ;;  %vm1002_vm10 = vweird.f32 %v4361_v10  ;;  %v578_v58 = vpop.permute.xlu2 %577 }
 0x155   : > { %v894_v49 = vsel %vm744_vm1, %v843_v57, 0.0  ;;  %v568_v33 = vpop.permute.xlu1 %567  ;;  %v947_v30 = vmax.f32 %v939_v55, 0.0  ;;  %v1250_v0 = vpack.c.b16 %v1249_v37, %v1248_v12  ;;  %vm1004_vm11 = vmor %vm1002_vm10, %vm1003_vm9  ;;  %v957_v48 = vsub.f32 %v4259_v7, %v4321_v23 }
 0x156   : > { %v793_v62 = vrot.slane %v792_v18, 4  ;;  %v895_v39 = vadd.f32 %v894_v49, %v893_v45  ;;  %v594_v46 = vmul.f32 %v4160_v24, %v568_v33  ;;  %v1005_v54 = vsel %vm1004_vm11, %v4390_v63, %v1001_v32 }
 0x157   : > { %3618 = vmatmul.msk.f32.gmra.mxu0 %vm744_vm1, %v4332_v35  ;;  %v4450_v51 = vadd.f32 1e-05, %v947_v30  ;;  %v948_v53 = vmax.f32 %v940_v15, 0.0  ;;  %1259 = vmatpush.bf16.msra.mxu2 %v1250_v0  ;;  %v1060_v1 = vmul.f32 %v1005_v54, %v956_v29  ;;  %v799_v59 = vsel %vm744_vm1, %v4388_v2, 0.0 }
 0x158   : > { %v794_v43 = vadd.f32 %v793_v62, %v792_v18  ;;  %v896_v41 = vrot.slane %v895_v39, 4  ;;  %v4445_v36 = vadd.f32 %v4167_v27, %v594_v46  ;;  %v902_v60 = vsel %vm744_vm1, %v844_v47, 0.0 }
 0x159   : > { %v1061_v31 = vmul.f32 %v1005_v54, %v957_v48  ;;  %3908 = vrsqrt.f32 %v4450_v51  ;;  %v4466_v55 = vadd.f32 1e-05, %v948_v53  ;;  %v709_v29 = vmul.f32 %v4198_v50, %v687_v11 }
 0x15a   : > { %v795_v10 = vrot.slane %v794_v43, 2  ;;  %v897_v8 = vadd.f32 %v896_v41, %v895_v39  ;;  %v4454_v35 = vadd.f32 %v4394_v34, %v4445_v36  ;;  %3624 = vmatmul.msk.bf16.vlgmr.msra.gmra.mxu2 %vm286_vm0, %v4087_v38  ;;  %v1076_v34 = vmax.f32 %v1060_v1, 0.0 }
 0x15b   : > { %v1077_v6 = vmax.f32 %v1061_v31, 0.0  ;;  %3910 = vrsqrt.f32 %v4466_v55  ;;  %v726_v48 = vadd.f32 %v4200_v52, %v709_v29  ;;  %v959_v1 = vsub.f32 %v4315_v22, %v4382_v40 }
 0x15c   : > { %v796_v7 = vadd.f32 %v795_v10, %v794_v43  ;;  %v898_v23 = vrot.slane %v897_v8, 2  ;;  %v800_v63 = vsel %vm744_vm1, %v4454_v35, 0.0  ;;  %v845_v3 = vmul.f32 %v4454_v35, %v4454_v35 }
 0x15d   : > { %v801_v5 = vadd.f32 %v800_v63, %v799_v59  ;;  %v573_v17 = vpop.permute.xlu1 %572  ;;  %v1214_v16 = vpack.c.bf16 %v1076_v34, %v1076_v34  ;;  %v1215_v18 = vpack.c.bf16 %v1077_v6, %v1077_v6  ;;  %v596_v43 = vmul.f32 %v4160_v24, %v578_v58 }
 0x15e   : > { %v797_v26 = vrot.slane %v796_v7, 1  ;;  %v899_v45 = vadd.f32 %v898_v23, %v897_v8  ;;  %v903_v20 = vsel %vm744_vm1, %v845_v3, 0.0  ;;  %v595_v9 = vmul.f32 %v4160_v24, %v573_v17 }
 0x15f   : > { %v802_v13 = vrot.slane %v801_v5, 4  ;;  %v904_v57 = vadd.f32 %v903_v20, %v902_v60  ;;  %3619 = vmatmul.msk.f32.gmra.mxu0 %vm744_vm1, %v4355_v19  ;;  %v3909_v15 = vpop.eup %3908  ;;  %v1268_v33 = vunpack.c.l.b16 %v1214_v16  ;;  %v1269_v62 = vunpack.c.l.b16 %v1215_v18 }
 0x160   : > { %v798_v38 = vadd.f32 %v797_v26, %v796_v7  ;;  %v900_v25 = vrot.slane %v899_v45, 1  ;;  %v612_v46 = vadd.f32 %v4167_v27, %v595_v9  ;;  %v1007_v19 = vmul.f32 %v3909_v15, %v4450_v51 }
 0x161   : > { %v803_v49 = vadd.f32 %v802_v13, %v801_v5  ;;  %v905_v12 = vrot.slane %v904_v57, 4  ;;  %v1270_v30 = vpack.c.b16 %v1269_v62, %v1268_v33  ;;  %v3911_v8 = vpop.eup %3910  ;;  %v4490_v63 = vadd.f32 %v4167_v27, %v596_v43 }
 0x162   : > { %v4475_v39 = vmul.f32 %v4247_v42, %v798_v38  ;;  %v901_v37 = vadd.f32 %v900_v25, %v899_v45  ;;  %v1008_v10 = vmul.f32 %v3909_v15, %v1007_v19  ;;  %v4486_v60 = vadd.f32 %v726_v48, %v612_v46 }
 0x163   : > { %v804_v47 = vrot.slane %v803_v49, 2  ;;  %v906_v32 = vadd.f32 %v905_v12, %v904_v57  ;;  %1279 = vmatpush.bf16.msra.mxu3 %v1270_v30  ;;  %v958_v22 = vsub.f32 %v4294_v61, %v4382_v40  ;;  %vm1012_vm12 = vweird.f32 %v4450_v51 }
 0x164   : > { %v925_v41 = vmul.f32 %v901_v37, %v4247_v42  ;;  %v933_v0 = vmul.f32 %v4475_v39, %v4475_v39  ;;  %v1009_v3 = vmul.f32 0.5, %v1008_v10  ;;  %v1017_v5 = vmul.f32 %v3911_v8, %v4466_v55 }
 0x165   : > { %v805_v54 = vadd.f32 %v804_v47, %v803_v49  ;;  %v907_v53 = vrot.slane %v906_v32, 2  ;;  %v808_v17 = vsel %vm744_vm1, %v4486_v60, 0.0  ;;  %vm1013_vm13 = vweird.f32 %v3909_v15 }
 0x166   : > { %v941_v59 = vsub.f32 %v925_v41, %v933_v0  ;;  %v692_v31 = vpop.permute.xlu1 %691  ;;  %3625 = vmatmul.msk.bf16.vlgmr.msra.gmra.mxu3 %vm286_vm0, %v4098_v44  ;;  %v1018_v11 = vmul.f32 %v3911_v8, %v1017_v5  ;;  %v846_v45 = vmul.f32 %v4486_v60, %v4486_v60  ;;  %vm1022_vm14 = vweird.f32 %v4466_v55  ;;  %vm1014_vm15 = vmor %vm1012_vm12, %vm1013_vm13 }
 0x167   : > { %v806_v24 = vrot.slane %v805_v54, 1  ;;  %v908_v7 = vadd.f32 %v907_v53, %v906_v32  ;;  %v710_v23 = vmul.f32 %v4198_v50, %v692_v31  ;;  %3620 = vmatmul.msk.f32.gmra.mxu0 %vm744_vm1, %v4445_v36  ;;  %v1010_v36 = vsub.f32 1.5, %v1009_v3 }
 0x168   : > { %v949_v27 = vmax.f32 %v941_v59, 0.0  ;;  %v1019_v20 = vmul.f32 0.5, %v1018_v11  ;;  %vm1023_vm2 = vweird.f32 %v3911_v8  ;;  %v911_v12 = vsel %vm744_vm1, %v846_v45, 0.0 }
 0x169   : > { %v807_v34 = vadd.f32 %v806_v24, %v805_v54  ;;  %v909_v6 = vrot.slane %v908_v7, 1  ;;  %v727_v50 = vadd.f32 %v4200_v52, %v710_v23  ;;  %v1011_v52 = vmul.f32 %v3909_v15, %v1010_v36  ;;  %vm1024_vm3 = vmor %vm1022_vm14, %vm1023_vm2 }
 0x16a   : > { %v4509_v26 = vadd.f32 1e-05, %v949_v27  ;;  %v1020_v25 = vsub.f32 1.5, %v1019_v20  ;;  %v3950_v20 = vld [vmem:[%s4045_s25 + $0x18] sm:$0xff] }
 0x16b   : > { %v4504_v44 = vmul.f32 %v4247_v42, %v807_v34  ;;  %v910_v61 = vadd.f32 %v909_v6, %v908_v7  ;;  %v4507_v40 = vadd.f32 %v727_v50, %v4490_v63  ;;  %v1015_v38 = vsel %vm1014_vm15, %v3909_v15, %v1011_v52 }
 0x16c   : > { %v1062_v58 = vmul.f32 %v1015_v38, %v958_v22  ;;  %v1063_v49 = vmul.f32 %v1015_v38, %v959_v1  ;;  %3912 = vrsqrt.f32 %v4509_v26  ;;  %v1021_v62 = vmul.f32 %v3911_v8, %v1020_v25  ;;  %v4534_v1 = vpop.f32.mrf.mxu0 }
 0x16d   : > { %v926_v9 = vmul.f32 %v910_v61, %v4247_v42  ;;  %v934_v13 = vmul.f32 %v4504_v44, %v4504_v44  ;;  %v809_v57 = vsel %vm744_vm1, %v4507_v40, 0.0  ;;  %v847_v18 = vmul.f32 %v4507_v40, %v4507_v40 }
 0x16e   : > { %v810_v16 = vadd.f32 %v809_v57, %v808_v17  ;;  %v1078_v19 = vmax.f32 %v1062_v58, 0.0  ;;  %v1079_v47 = vmax.f32 %v1063_v49, 0.0  ;;  %v960_v15 = vsub.f32 %v4348_v14, %v4415_v28 }
 0x16f   : > { %v942_v29 = vsub.f32 %v926_v9, %v934_v13  ;;  %3621 = vmatmul.msk.f32.gmra.mxu0 %vm744_vm1, %v612_v46  ;;  %v912_v51 = vsel %vm744_vm1, %v847_v18, 0.0  ;;  %v961_v46 = vsub.f32 %v4299_v56, %v4415_v28  ;;  %v1025_v30 = vsel %vm1024_vm3, %v3911_v8, %v1021_v62 }
 0x170   : > { %v811_v33 = vrot.slane %v810_v16, 4  ;;  %v913_v37 = vadd.f32 %v912_v51, %v911_v12  ;;  %v1216_v0 = vpack.c.bf16 %v1078_v19, %v1078_v19  ;;  %v1217_v48 = vpack.c.bf16 %v1079_v47, %v1079_v47  ;;  %v3951_v51 = vld [vmem:[%s4045_s25 + $0x20] sm:$0xff] }
 0x171   : > { %v950_v43 = vmax.f32 %v942_v29, 0.0  ;;  %v1064_v54 = vmul.f32 %v1025_v30, %v960_v15  ;;  %v1065_v10 = vmul.f32 %v1025_v30, %v961_v46  ;;  %vm1032_vm5 = vweird.f32 %v4509_v26 }
 0x172   : > { %v812_v32 = vadd.f32 %v811_v33, %v810_v16  ;;  %v914_v41 = vrot.slane %v913_v37, 4  ;;  %v3913_v14 = vpop.eup %3912  ;;  %v1288_v55 = vunpack.c.l.b16 %v1216_v0  ;;  %v1289_v24 = vunpack.c.l.b16 %v1217_v48 }
 0x173   : > { %v4536_v59 = vadd.f32 1e-05, %v950_v43  ;;  %v1080_v7 = vmax.f32 %v1064_v54, 0.0  ;;  %v1081_v56 = vmax.f32 %v1065_v10, 0.0  ;;  %v1027_v28 = vmul.f32 %v3913_v14, %v4509_v26 }
 0x174   : > { %v813_v53 = vrot.slane %v812_v32, 2  ;;  %v915_v31 = vadd.f32 %v914_v41, %v913_v37  ;;  %v1290_v22 = vpack.c.b16 %v1289_v24, %v1288_v55  ;;  %vm1033_vm4 = vweird.f32 %v3913_v14  ;;  %v4550_v18 = vpop.f32.mrf.mxu0 }
 0x175   : > { %v1218_v3 = vpack.c.bf16 %v1080_v7, %v1080_v7  ;;  %3914 = vrsqrt.f32 %v4536_v59  ;;  %v1219_v34 = vpack.c.bf16 %v1081_v56, %v1081_v56  ;;  %v1028_v6 = vmul.f32 %v3913_v14, %v1027_v28  ;;  %vm1034_vm6 = vmor %vm1032_vm5, %vm1033_vm4  ;;  %v3952_v7 = vld [vmem:[%s4045_s25 + $0x28] sm:$0xff] }
 0x176   : > { %v814_v23 = vadd.f32 %v813_v53, %v812_v32  ;;  %v916_v8 = vrot.slane %v915_v31, 2  ;;  %1299 = vmatpush.bf16.msrb.mxu1 %v1290_v22  ;;  %v963_v25 = vsub.f32 %v4421_v4, %v4475_v39  ;;  %v962_v58 = vsub.f32 %v4384_v21, %v4475_v39  ;;  %v4575_v22 = vld [vmem:[%s5774_s2 + $0x78] sm:$0xff] }
 0x177   : > { %3622 = vmatmul.msk.f32.gmra.mxu0 %vm744_vm1, %v4490_v63  ;;  %v1308_v27 = vunpack.c.l.b16 %v1218_v3  ;;  %v1309_v36 = vunpack.c.l.b16 %v1219_v34  ;;  %v1029_v11 = vmul.f32 0.5, %v1028_v6  ;;  %v964_v21 = vsub.f32 %v4388_v2, %v4504_v44  ;;  %v4583_v34 = vld [vmem:[%s5774_s2 + $0x70] sm:$0xff] }
 0x178   : > { %v815_v5 = vrot.slane %v814_v23, 1  ;;  %v917_v50 = vadd.f32 %v916_v8, %v915_v31  ;;  %vm1042_vm8 = vweird.f32 %v4536_v59  ;;  %v965_v0 = vsub.f32 %v4454_v35, %v4504_v44  ;;  %v3638_v35 = vld [vmem:[%s5774_s2 + $0xf8] sm:$0xff] }
 0x179   : > { %v1310_v52 = vpack.c.b16 %v1309_v36, %v1308_v27  ;;  %3626 = vmatmul.msk.bf16.vlgmr.msrb.gmra.mxu1 %vm286_vm0, %v3950_v20  ;;  %v1030_v9 = vsub.f32 1.5, %v1029_v11  ;;  %1452 = vmatpush.msrb.mxu0 %v3638_v35  ;;  %v4590_v27 = vld [vmem:[%s5774_s2 + $0x68] sm:$0xff] }
 0x17a   : > { %v816_v17 = vadd.f32 %v815_v5, %v814_v23  ;;  %v918_v61 = vrot.slane %v917_v50, 1 }
 0x17b   : > { %v3915_v63 = vpop.eup %3914  ;;  %1319 = vmatpush.bf16.msrb.mxu2 %v1310_v52  ;;  %v1031_v16 = vmul.f32 %v3913_v14, %v1030_v9 }
 0x17c   : > { %v4543_v45 = vmul.f32 %v4247_v42, %v816_v17  ;;  %v919_v13 = vadd.f32 %v918_v61, %v917_v50  ;;  %v1037_v38 = vmul.f32 %v3915_v63, %v4536_v59  ;;  %vm1043_vm7 = vweird.f32 %v3915_v63  ;;  %v4565_v48 = vpop.f32.mrf.mxu0  ;;  %v3953_v50 = vld [vmem:[%s4045_s25 + $0x30] sm:$0xff]  ;;  %v4600_v61 = vld [vmem:[%s5774_s2 + $0x60] sm:$0xff] }
 0x17d   : > { %v1035_v49 = vsel %vm1034_vm6, %v3913_v14, %v1031_v16  ;;  %vm1044_vm9 = vmor %vm1042_vm8, %vm1043_vm7 }
 0x17e   : > { %v935_v57 = vmul.f32 %v4543_v45, %v4543_v45  ;;  %v927_v29 = vmul.f32 %v919_v13, %v4247_v42  ;;  %v1038_v12 = vmul.f32 %v3915_v63, %v1037_v38  ;;  %3627 = vmatmul.msk.bf16.vlgmr.msrb.gmra.mxu2 %vm286_vm0, %v3951_v51  ;;  %v1066_v26 = vmul.f32 %v1035_v49, %v962_v58  ;;  %v3656_v38 = vld [vmem:[%s5774_s2 + $0x48] sm:$0xff]  ;;  %v3655_v51 = vld [vmem:[%s5774_s2 + $0x40] sm:$0xff] }
 0x17f   : > { %v1067_v62 = vmul.f32 %v1035_v49, %v963_v25  ;;  %v967_v36 = vsub.f32 %v4507_v40, %v4543_v45  ;;  %v966_v11 = vsub.f32 %v4486_v60, %v4543_v45  ;;  %v4606_v40 = vld [vmem:[%s5774_s2 + $0x58] sm:$0xff]  ;;  %v4612_v45 = vld [vmem:[%s5774_s2 + $0x50] sm:$0xff] }
 0x180   : > { %v943_v33 = vsub.f32 %v927_v29, %v935_v57  ;;  %v1039_v37 = vmul.f32 0.5, %v1038_v12  ;;  %v1082_v19 = vmax.f32 %v1066_v26, 0.0  ;;  %v3637_v25 = vld [vmem:[%s5774_s2 + $0xf0] sm:$0xff]  ;;  %v3636_v29 = vld [vmem:[%s5774_s2 + $0xe8] sm:$0xff]  ;;  %v4628_v12 = vld [vmem:[%s5775_s3] sm:$0xff] }
 0x181   : > { %v1083_v47 = vmax.f32 %v1067_v62, 0.0  ;;  %1453 = vmatpush.msrb.mxu0 %v3637_v25  ;;  %v3635_v62 = vld [vmem:[%s5774_s2 + $0xe0] sm:$0xff] }
 0x182   : > { %v951_v15 = vmax.f32 %v943_v33, 0.0  ;;  %v1040_v46 = vsub.f32 1.5, %v1039_v37  ;;  %v1220_v4 = vpack.c.bf16 %v1082_v19, %v1082_v19  ;;  %v4631_v33 = vperm.slane %v4628_v12, 4 }
 0x183   : > { %v1221_v32 = vpack.c.bf16 %v1083_v47, %v1083_v47  ;;  %1454 = vmatpush.msrb.mxu0 %v3636_v29  ;;  %v3955_v47 = vld [vmem:[%s4045_s25 + $0x38] sm:$0xff] }
 0x184   : > { %v975_v30 = vadd.f32 1e-05, %v951_v15  ;;  %v1041_v39 = vmul.f32 %v3915_v63, %v1040_v46  ;;  %v1328_v43 = vunpack.c.l.b16 %v1220_v4  ;;  %v4577_v3 = vpop.f32.mrf.mxu0  ;;  %v4641_v37 = vadd.f32 %v4550_v18, %v4631_v33  ;;  %v3634_v15 = vld [vmem:[%s5774_s2 + $0xd8] sm:$0xff]  ;;  %v3633_v18 = vld [vmem:[%s5774_s2 + $0xd0] sm:$0xff]  ;;  %v3632_v46 = vld [vmem:[%s5774_s2 + $0xc8] sm:$0xff] }
 0x185   : > { %v1329_v41 = vunpack.c.l.b16 %v1221_v32  ;;  %1455 = vmatpush.msrb.mxu0 %v3635_v62  ;;  %v4662_v4 = vadd.f32 %v4565_v48, %v4631_v33 }
 0x186   : > { %3916 = vrsqrt.f32 %v975_v30  ;;  %v1045_v54 = vsel %vm1044_vm9, %v3915_v63, %v1041_v39  ;;  %vm1052_vm11 = vweird.f32 %v975_v30 }
 0x187   : > { %v1330_v53 = vpack.c.b16 %v1329_v41, %v1328_v43  ;;  %v1068_v10 = vmul.f32 %v1045_v54, %v964_v21  ;;  %v1069_v14 = vmul.f32 %v1045_v54, %v965_v0  ;;  %1456 = vmatpush.msrb.mxu0 %v3634_v15  ;;  %v4673_v21 = vadd.f32 %v4577_v3, %v4631_v33 }
 0x189   : > { %1339 = vmatpush.bf16.msrb.mxu3 %v1330_v53  ;;  %v1084_v31 = vmax.f32 %v1068_v10, 0.0  ;;  %v1085_v2 = vmax.f32 %v1069_v14, 0.0  ;;  %1457 = vmatpush.msrb.mxu0 %v3633_v18 }
 0x18b   : > { %v1222_v24 = vpack.c.bf16 %v1084_v31, %v1084_v31  ;;  %v1223_v59 = vpack.c.bf16 %v1085_v2, %v1085_v2  ;;  %1458 = vmatpush.msrb.mxu0 %v3632_v46 }
 0x18c   : > { %v3917_v55 = vpop.eup %3916  ;;  %3628 = vmatmul.msk.bf16.vlgmr.msrb.gmra.mxu3 %vm286_vm0, %v3952_v7  ;;  %v1174_v13 = vpop.f32.mrf.mxu0 }
 0x18d   : > { %v1047_v23 = vmul.f32 %v3917_v55, %v975_v30  ;;  %v1348_v44 = vunpack.c.l.b16 %v1222_v24  ;;  %v1349_v56 = vunpack.c.l.b16 %v1223_v59  ;;  %3846 = vmatpush.msra.mxu3 %v3638_v35  ;;  %vm1053_vm10 = vweird.f32 %v3917_v55  ;;  %v3631_v30 = vld [vmem:[%s5774_s2 + $0xc0] sm:$0xff] }
 0x18e   : > { %vm1054_vm12 = vmor %vm1052_vm11, %vm1053_vm10  ;;  %1459 = vmatpush.msrb.mxu0 %v3631_v30  ;;  %v4682_v43 = vadd.f32 %v1174_v13, %v4631_v33 }
 0x18f   : > { %v1048_v28 = vmul.f32 %v3917_v55, %v1047_v23  ;;  %v1350_v8 = vpack.c.b16 %v1349_v56, %v1348_v44  ;;  %3847 = vmatpush.msra.mxu3 %v3637_v25 }
 0x190   : > { %1927 = vmatpush.msra.mxu0 %v4575_v22 }
 0x191   : > { %v1049_v5 = vmul.f32 0.5, %v1048_v28  ;;  %1359 = vmatpush.bf16.msra.mxu1 %v1350_v8  ;;  %3848 = vmatpush.msra.mxu3 %v3636_v29 }
 0x192   : > { %1928 = vmatpush.msra.mxu0 %v4583_v34 }
 0x193   : > { %v1050_v6 = vsub.f32 1.5, %v1049_v5  ;;  %3849 = vmatpush.msra.mxu3 %v3635_v62 }
 0x194   : > { %3629 = vmatmul.msk.bf16.vlgmr.msra.gmra.mxu1 %vm286_vm0, %v3953_v50  ;;  %1929 = vmatpush.msra.mxu0 %v4590_v27 }
 0x195   : > { %3854 = vmatpush.msrb.mxu1 %v4575_v22  ;;  %v1051_v17 = vmul.f32 %v3917_v55, %v1050_v6  ;;  %3850 = vmatpush.msra.mxu3 %v3634_v15 }
 0x196   : > { %1930 = vmatpush.msra.mxu0 %v4600_v61 }
 0x197   : > { %3856 = vmatpush.msrb.mxu1 %v4583_v34  ;;  %v1055_v52 = vsel %vm1054_vm12, %v3917_v55, %v1051_v17  ;;  %3851 = vmatpush.msra.mxu3 %v3633_v18 }
 0x198   : > { %v1070_v20 = vmul.f32 %v1055_v52, %v966_v11  ;;  %v1071_v9 = vmul.f32 %v1055_v52, %v967_v36  ;;  %1931 = vmatpush.msra.mxu0 %v4606_v40 }
 0x199   : > { %3858 = vmatpush.msrb.mxu1 %v4590_v27  ;;  %3852 = vmatpush.msra.mxu3 %v3632_v46 }
 0x19a   : > { %v1086_v63 = vmax.f32 %v1070_v20, 0.0  ;;  %v1087_v60 = vmax.f32 %v1071_v9, 0.0  ;;  %1932 = vmatpush.msra.mxu0 %v4612_v45 }
 0x19b   : > { %3860 = vmatpush.msrb.mxu1 %v4600_v61  ;;  %3853 = vmatpush.msra.mxu3 %v3631_v30 }
 0x19c   : > { %v1224_v57 = vpack.c.bf16 %v1086_v63, %v1086_v63  ;;  %v1225_v16 = vpack.c.bf16 %v1087_v60, %v1087_v60  ;;  %1933 = vmatpush.msra.mxu0 %v3656_v38  ;;  %v4763_v60 = vperm.slane %v4628_v12, 7 }
 0x19d   : > { %3862 = vmatpush.msrb.mxu1 %v4606_v40 }
 0x19e   : > { %v1368_v58 = vunpack.c.l.b16 %v1224_v57  ;;  %v1369_v49 = vunpack.c.l.b16 %v1225_v16  ;;  %1934 = vmatpush.msra.mxu0 %v3655_v51 }
 0x19f   : > { %3864 = vmatpush.msrb.mxu1 %v4612_v45 }
 0x1a0   : > { %v1370_v26 = vpack.c.b16 %v1369_v49, %v1368_v58 }
 0x1a1   : > { %3866 = vmatpush.msrb.mxu1 %v3656_v38 }
 0x1a2   : > { %1379 = vmatpush.bf16.msra.mxu2 %v1370_v26 }
 0x1a3   : > { %3868 = vmatpush.msrb.mxu1 %v3655_v51 }
 0x1a4   : > { %v1177_v19 = vpop.f32.mrf.mxu0  ;;  %3664 = vmatmul.msk.f32.vlgmr.msrb.gmra.mxu1 %vm744_vm1, %v4641_v37 }
 0x1a5   : > { %3630 = vmatmul.msk.bf16.vlgmr.msra.gmra.mxu2 %vm286_vm0, %v3955_v47  ;;  %v4689_v0 = vadd.f32 %v1177_v19, %v4631_v33 }
 0x1a6   : > { %3855 = vmatpush.msrb.mxu2 %v4575_v22  ;;  %v1163_v22 = vadd.f32 %v4534_v1, %v4631_v33 }
 0x1a8   : > { %3857 = vmatpush.msrb.mxu2 %v4583_v34 }
 0x1aa   : > { %3859 = vmatpush.msrb.mxu2 %v4590_v27 }
 0x1ac   : > { %3861 = vmatpush.msrb.mxu2 %v4600_v61  ;;  %v1180_v32 = vpop.f32.mrf.mxu0  ;;  %3665 = vmatmul.msk.f32.gmra.mxu1 %vm744_vm1, %v4662_v4 }
 0x1ad   : > { %v4694_v54 = vadd.f32 %v1180_v32, %v4631_v33 }
 0x1ae   : > { %3863 = vmatpush.msrb.mxu2 %v4606_v40 }
 0x1b0   : > { %3865 = vmatpush.msrb.mxu2 %v4612_v45 }
 0x1b2   : > { %3867 = vmatpush.msrb.mxu2 %v3656_v38 }
 0x1b4   : > { %3869 = vmatpush.msrb.mxu2 %v3655_v51  ;;  %v1183_v39 = vpop.f32.mrf.mxu0  ;;  %3666 = vmatmul.msk.f32.gmra.mxu1 %vm744_vm1, %v4673_v21 }
 0x1b5   : > { %v4705_v31 = vadd.f32 %v1183_v39, %v4631_v33 }
 0x1bc   : > { %v1186_v41 = vpop.f32.mrf.mxu0  ;;  %3667 = vmatmul.msk.f32.gmra.mxu1 %vm744_vm1, %v4682_v43 }
 0x1bd   : > { %v4716_v59 = vadd.f32 %v1186_v41, %v4631_v33 }
 0x1c4   : > { %v1189_v48 = vpop.f32.mrf.mxu0  ;;  %3668 = vmatmul.msk.f32.gmra.mxu1 %vm744_vm1, %v4689_v0 }
 0x1c5   : > { %v4727_v44 = vadd.f32 %v1189_v48, %v4631_v33 }
 0x1cc   : > { %v1192_v53 = vpop.f32.mrf.mxu0  ;;  %3669 = vmatmul.msk.f32.gmra.mxu1 %vm744_vm1, %v4694_v54 }
 0x1cd   : > { %v4697_v10 = vadd.f32 %v1192_v53, %v4631_v33 }
 0x1cf   : > { %3673 = vmatmul.msk.f32.vlgmr.msrb.gmra.mxu2 %vm744_vm1, %v4697_v10  ;;  %v1241_v14 = vpop.f32.mrf.mxu1 }
 0x1d0   : > { %3639 = vmatmul.msk.f32.vlgmr.msrb.gmra.mxu0 %vm744_vm1, %v1241_v14 }
 0x1d4   : > { %v1195_v2 = vpop.f32.mrf.mxu0  ;;  %3670 = vmatmul.msk.f32.gmra.mxu1 %vm744_vm1, %v4705_v31 }
 0x1d5   : > { %v4708_v55 = vadd.f32 %v1195_v2, %v4631_v33 }
 0x1d7   : > { %3674 = vmatmul.msk.f32.gmra.mxu2 %vm744_vm1, %v4708_v55  ;;  %v1243_v24 = vpop.f32.mrf.mxu1 }
 0x1d8   : > { %3640 = vmatmul.msk.f32.gmra.mxu0 %vm744_vm1, %v1243_v24 }
 0x1dc   : > { %v1198_v7 = vpop.f32.mrf.mxu0  ;;  %3671 = vmatmul.msk.f32.gmra.mxu1 %vm744_vm1, %v4716_v59 }
 0x1dd   : > { %v4719_v23 = vadd.f32 %v1198_v7, %v4631_v33  ;;  %v1261_v35 = vpop.f32.mrf.mxu2 }
 0x1df   : > { %3675 = vmatmul.msk.f32.gmra.mxu2 %vm744_vm1, %v4719_v23 }
 0x1e0   : > { %3641 = vmatmul.msk.f32.gmra.mxu0 %vm744_vm1, %v1261_v35 }
 0x1e4   : > { %v1201_v56 = vpop.f32.mrf.mxu0  ;;  %3672 = vmatmul.msk.f32.gmra.mxu1 %vm744_vm1, %v4727_v44 }
 0x1e5   : > { %v4730_v28 = vadd.f32 %v1201_v56, %v4631_v33  ;;  %v1263_v8 = vpop.f32.mrf.mxu2 }
 0x1e6   : > { %3642 = vmatmul.msk.f32.vlgmr.msra.gmra.mxu3 %vm744_vm1, %v1263_v8 }
 0x1e7   : > { %3676 = vmatmul.msk.f32.gmra.mxu2 %vm744_vm1, %v4730_v28 }
 0x1e8   : > { %3663 = vmatmul.msk.f32.vlgmr.msra.gmra.mxu0 %vm744_vm1, %v1163_v22 }
 0x1e9   : > { %v1281_v34 = vpop.f32.mrf.mxu3 }
 0x1ec   : > { %v1204_v3 = vpop.f32.mrf.mxu0 }
 0x1ed   : > { %v4741_v5 = vadd.f32 %v1204_v3, %v4631_v33 }
 0x1ee   : > { %3643 = vmatmul.msk.f32.gmra.mxu3 %vm744_vm1, %v1281_v34 }
 0x1ef   : > { %3677 = vmatmul.msk.f32.gmra.mxu2 %vm744_vm1, %v4741_v5 }
 0x1f1   : > { %v1283_v27 = vpop.f32.mrf.mxu3 }
 0x1f4   : > { %v1207_v6 = vpop.f32.mrf.mxu0 }
 0x1f5   : > { %v4747_v50 = vadd.f32 %v1207_v6, %v4631_v33 }
 0x1f6   : > { %3644 = vmatmul.msk.f32.gmra.mxu3 %vm744_vm1, %v1283_v27  ;;  %v1301_v1 = vpop.f32.mrf.mxu1 }
 0x1f7   : > { %3678 = vmatmul.msk.f32.gmra.mxu2 %vm744_vm1, %v4747_v50 }
 0x1fe   : > { %3645 = vmatmul.msk.f32.gmra.mxu3 %vm744_vm1, %v1301_v1  ;;  %v1303_v17 = vpop.f32.mrf.mxu1 }
 0x201   : > { %v1321_v36 = vpop.f32.mrf.mxu2 }
 0x206   : > { %3646 = vmatmul.msk.f32.gmra.mxu3 %vm744_vm1, %v1303_v17 }
 0x209   : > { %v1323_v11 = vpop.f32.mrf.mxu2 }
 0x20e   : > { %3647 = vmatmul.msk.f32.gmra.mxu3 %vm744_vm1, %v1321_v36 }
 0x20f   : > { %v1341_v61 = vpop.f32.mrf.mxu3 }
 0x211   : > { %v1361_v20 = vpop.f32.mrf.mxu1 }
 0x216   : > { %3648 = vmatmul.msk.f32.gmra.mxu3 %vm744_vm1, %v1323_v11 }
 0x217   : > { %v1343_v52 = vpop.f32.mrf.mxu3 }
 0x219   : > { %v1363_v9 = vpop.f32.mrf.mxu1 }
 0x21e   : > { %3649 = vmatmul.msk.f32.gmra.mxu3 %vm744_vm1, %v1341_v61 }
 0x226   : > { %3650 = vmatmul.msk.f32.gmra.mxu3 %vm744_vm1, %v1343_v52 }
 0x228   : > { %v1381_v40 = vpop.f32.mrf.mxu2 }
 0x22e   : > { %3651 = vmatmul.msk.f32.gmra.mxu3 %vm744_vm1, %v1361_v20 }
 0x230   : > { %v1383_v63 = vpop.f32.mrf.mxu2 }
 0x236   : > { %3652 = vmatmul.msk.f32.gmra.mxu3 %vm744_vm1, %v1363_v9 }
 0x23e   : > { %3653 = vmatmul.msk.f32.gmra.mxu3 %vm744_vm1, %v1381_v40 }
 0x246   : > { %3654 = vmatmul.msk.f32.gmra.mxu3 %vm744_vm1, %v1383_v63 }
 0x24d   : > { %v1461_v45 = vpop.f32.mrf.mxu0 }
 0x24e   : > { %v1462_v13 = vadd.f32 %v1461_v45, %v4763_v60 }
 0x250   : > { %v4766_v57 = vadd.f32 %v1462_v13, %v1163_v22 }
 0x252   : > { %v1605_v25 = vmul.f32 %v4766_v57, %v4766_v57  ;;  %v1525_v58 = vsel %vm744_vm1, %v4766_v57, 0.0 }
 0x254   : > { %v1621_v51 = vsel %vm744_vm1, %v1605_v25, 0.0 }
 0x255   : > { %v1464_v16 = vpop.f32.mrf.mxu0 }
 0x256   : > { %v1465_v38 = vadd.f32 %v1464_v16, %v4763_v60 }
 0x258   : > { %v4772_v29 = vadd.f32 %v1465_v38, %v4641_v37 }
 0x25a   : > { %v1526_v49 = vsel %vm744_vm1, %v4772_v29, 0.0  ;;  %v1606_v12 = vmul.f32 %v4772_v29, %v4772_v29 }
 0x25b   : > { %v1527_v33 = vadd.f32 %v1526_v49, %v1525_v58 }
 0x25c   : > { %v1622_v26 = vsel %vm744_vm1, %v1606_v12, 0.0 }
 0x25d   : > { %v1528_v62 = vrot.slane %v1527_v33, 4  ;;  %v1623_v19 = vadd.f32 %v1622_v26, %v1621_v51  ;;  %v1467_v46 = vpop.f32.mrf.mxu0 }
 0x25e   : > { %v1468_v39 = vadd.f32 %v1467_v46, %v4763_v60 }
 0x25f   : > { %v1529_v47 = vadd.f32 %v1528_v62, %v1527_v33  ;;  %v1624_v15 = vrot.slane %v1623_v19, 4 }
 0x260   : > { %v4784_v2 = vadd.f32 %v1468_v39, %v4662_v4 }
 0x261   : > { %v1530_v37 = vrot.slane %v1529_v47, 2  ;;  %v1625_v18 = vadd.f32 %v1624_v15, %v1623_v19 }
 0x262   : > { %v1607_v3 = vmul.f32 %v4784_v2, %v4784_v2  ;;  %v1534_v6 = vsel %vm744_vm1, %v4784_v2, 0.0 }
 0x263   : > { %v1531_v32 = vadd.f32 %v1530_v37, %v1529_v47  ;;  %v1626_v30 = vrot.slane %v1625_v18, 2 }
 0x264   : > { %v1630_v11 = vsel %vm744_vm1, %v1607_v3, 0.0 }
 0x265   : > { %v1532_v41 = vrot.slane %v1531_v32, 1  ;;  %v1627_v48 = vadd.f32 %v1626_v30, %v1625_v18 }
 0x267   : > { %v1533_v53 = vadd.f32 %v1532_v41, %v1531_v32  ;;  %v1628_v14 = vrot.slane %v1627_v48, 1 }
 0x269   : > { %v4787_v24 = vmul.f32 %v1533_v53, %v4247_v42  ;;  %v1629_v7 = vadd.f32 %v1628_v14, %v1627_v48  ;;  %v1470_v35 = vpop.f32.mrf.mxu3 }
 0x26a   : > { %v1471_v56 = vadd.f32 %v1470_v35, %v4763_v60 }
 0x26b   : > { %v1693_v8 = vmul.f32 %v1629_v7, %v4247_v42  ;;  %v1701_v22 = vmul.f32 %v4787_v24, %v4787_v24 }
 0x26c   : > { %v4796_v34 = vadd.f32 %v1471_v56, %v4673_v21 }
 0x26d   : > { %v1709_v4 = vsub.f32 %v1693_v8, %v1701_v22 }
 0x26e   : > { %v1535_v27 = vsel %vm744_vm1, %v4796_v34, 0.0  ;;  %v1608_v1 = vmul.f32 %v4796_v34, %v4796_v34 }
 0x26f   : > { %v1717_v17 = vmax.f32 %v1709_v4, 0.0  ;;  %v1536_v36 = vadd.f32 %v1535_v27, %v1534_v6  ;;  %v1726_v6 = vsub.f32 %v4772_v29, %v4787_v24 }
 0x270   : > { %v1631_v61 = vsel %vm744_vm1, %v1608_v1, 0.0 }
 0x271   : > { %v1741_v52 = vadd.f32 1e-05, %v1717_v17  ;;  %v1537_v20 = vrot.slane %v1536_v36, 4  ;;  %v1632_v21 = vadd.f32 %v1631_v61, %v1630_v11  ;;  %v1473_v9 = vpop.f32.mrf.mxu3  ;;  %v1725_v61 = vsub.f32 %v4766_v57, %v4787_v24 }
 0x272   : > { %v1474_v45 = vadd.f32 %v1473_v9, %v4763_v60 }
 0x273   : > { %3918 = vrsqrt.f32 %v1741_v52  ;;  %v1538_v40 = vadd.f32 %v1537_v20, %v1536_v36  ;;  %v1633_v63 = vrot.slane %v1632_v21, 4  ;;  %vm1755_vm14 = vweird.f32 %v1741_v52 }
 0x274   : > { %v4808_v58 = vadd.f32 %v1474_v45, %v4682_v43 }
 0x275   : > { %v1539_v13 = vrot.slane %v1538_v40, 2  ;;  %v1634_v16 = vadd.f32 %v1633_v63, %v1632_v21 }
 0x276   : > { %v1609_v37 = vmul.f32 %v4808_v58, %v4808_v58  ;;  %v1543_v30 = vsel %vm744_vm1, %v4808_v58, 0.0 }
 0x277   : > { %v1540_v38 = vadd.f32 %v1539_v13, %v1538_v40  ;;  %v1635_v25 = vrot.slane %v1634_v16, 2 }
 0x278   : > { %v1639_v7 = vsel %vm744_vm1, %v1609_v37, 0.0 }
 0x279   : > { %v3919_v49 = vpop.eup %3918  ;;  %v1541_v12 = vrot.slane %v1540_v38, 1  ;;  %v1636_v33 = vadd.f32 %v1635_v25, %v1634_v16  ;;  %v1476_v51 = vpop.f32.mrf.mxu3 }
 0x27a   : > { %v1750_v26 = vmul.f32 %v3919_v49, %v1741_v52  ;;  %v1477_v62 = vadd.f32 %v1476_v51, %v4763_v60  ;;  %vm1756_vm13 = vweird.f32 %v3919_v49 }
 0x27b   : > { %v1542_v19 = vadd.f32 %v1541_v12, %v1540_v38  ;;  %v1637_v47 = vrot.slane %v1636_v33, 1  ;;  %vm1757_vm15 = vmor %vm1755_vm14, %vm1756_vm13 }
 0x27c   : > { %v1751_v15 = vmul.f32 %v3919_v49, %v1750_v26  ;;  %v4814_v18 = vadd.f32 %v1477_v62, %v4689_v0 }
 0x27d   : > { %v4817_v46 = vmul.f32 %v1542_v19, %v4247_v42  ;;  %v1638_v43 = vadd.f32 %v1637_v47, %v1636_v33 }
 0x27e   : > { %v1752_v32 = vmul.f32 0.5, %v1751_v15  ;;  %v1544_v39 = vsel %vm744_vm1, %v4814_v18, 0.0  ;;  %v1610_v41 = vmul.f32 %v4814_v18, %v4814_v18 }
 0x27f   : > { %v1694_v48 = vmul.f32 %v1638_v43, %v4247_v42  ;;  %v1702_v0 = vmul.f32 %v4817_v46, %v4817_v46  ;;  %v1545_v53 = vadd.f32 %v1544_v39, %v1543_v30 }
 0x280   : > { %v1753_v14 = vsub.f32 1.5, %v1752_v32  ;;  %v1640_v35 = vsel %vm744_vm1, %v1610_v41, 0.0 }
 0x281   : > { %v1710_v56 = vsub.f32 %v1694_v48, %v1702_v0  ;;  %v1546_v8 = vrot.slane %v1545_v53, 4  ;;  %v1641_v22 = vadd.f32 %v1640_v35, %v1639_v7  ;;  %v1479_v3 = vpop.f32.mrf.mxu3 }
 0x282   : > { %v1754_v4 = vmul.f32 %v3919_v49, %v1753_v14  ;;  %v1480_v11 = vadd.f32 %v1479_v3, %v4763_v60 }
 0x283   : > { %v1718_v27 = vmax.f32 %v1710_v56, 0.0  ;;  %v1547_v1 = vadd.f32 %v1546_v8, %v1545_v53  ;;  %v1642_v17 = vrot.slane %v1641_v22, 4 }
 0x284   : > { %v1758_v36 = vsel %vm1757_vm15, %v3919_v49, %v1754_v4  ;;  %v4836_v38 = vadd.f32 %v1480_v11, %v4694_v54  ;;  %v3956_v11 = vld [vmem:[%s4045_s25] sm:$0xff] }
 0x285   : > { %v1830_v20 = vmul.f32 %v1758_v36, %v1726_v6  ;;  %v1742_v21 = vadd.f32 1e-05, %v1718_v27  ;;  %v1548_v9 = vrot.slane %v1547_v1, 2  ;;  %v1643_v40 = vadd.f32 %v1642_v17, %v1641_v22 }
 0x286   : > { %v1829_v63 = vmul.f32 %v1758_v36, %v1725_v61  ;;  %v1611_v54 = vmul.f32 %v4836_v38, %v4836_v38  ;;  %v1552_v32 = vsel %vm744_vm1, %v4836_v38, 0.0 }
 0x287   : > { %v1846_v45 = vmax.f32 %v1830_v20, 0.0  ;;  %3920 = vrsqrt.f32 %v1742_v21  ;;  %v1549_v52 = vadd.f32 %v1548_v9, %v1547_v1  ;;  %v1644_v13 = vrot.slane %v1643_v40, 2 }
 0x288   : > { %v1845_v29 = vmax.f32 %v1829_v63, 0.0  ;;  %v1648_v14 = vsel %vm744_vm1, %v1611_v54, 0.0  ;;  %vm1765_vm3 = vweird.f32 %v1742_v21 }
 0x289   : > { %v1550_v16 = vrot.slane %v1549_v52, 1  ;;  %v1482_v25 = vpop.f32.mrf.mxu3  ;;  %v1985_v49 = vpack.c.bf16 %v1846_v45, %v1846_v45  ;;  %v1645_v12 = vadd.f32 %v1644_v13, %v1643_v40  ;;  %v1728_v40 = vsub.f32 %v4796_v34, %v4817_v46 }
 0x28a   : > { %v1483_v33 = vadd.f32 %v1482_v25, %v4763_v60  ;;  %v1984_v57 = vpack.c.bf16 %v1845_v29, %v1845_v29 }
 0x28b   : > { %v1551_v24 = vadd.f32 %v1550_v16, %v1549_v52  ;;  %v1646_v51 = vrot.slane %v1645_v12, 1  ;;  %v2003_v19 = vunpack.c.l.b16 %v1985_v49  ;;  %v1727_v52 = vsub.f32 %v4784_v2, %v4817_v46 }
 0x28c   : > { %v4840_v26 = vadd.f32 %v1483_v33, %v4705_v31  ;;  %v2002_v62 = vunpack.c.l.b16 %v1984_v57 }
 0x28d   : > { %v3921_v47 = vpop.eup %3920  ;;  %v4843_v15 = vmul.f32 %v1551_v24, %v4247_v42  ;;  %v1647_v43 = vadd.f32 %v1646_v51, %v1645_v12 }
 0x28e   : > { %v1760_v37 = vmul.f32 %v3921_v47, %v1742_v21  ;;  %v1553_v30 = vsel %vm744_vm1, %v4840_v26, 0.0  ;;  %v1612_v41 = vmul.f32 %v4840_v26, %v4840_v26  ;;  %v2004_v53 = vpack.c.b16 %v2003_v19, %v2002_v62 }
 0x28f   : > { %v1703_v31 = vmul.f32 %v4843_v15, %v4843_v15  ;;  %v1554_v39 = vadd.f32 %v1553_v30, %v1552_v32  ;;  %v1695_v0 = vmul.f32 %v1647_v43, %v4247_v42  ;;  %vm1766_vm2 = vweird.f32 %v3921_v47 }
 0x290   : > { %v1761_v48 = vmul.f32 %v3921_v47, %v1760_v37  ;;  %v1649_v35 = vsel %vm744_vm1, %v1612_v41, 0.0  ;;  %2013 = vmatpush.bf16.msra.mxu2 %v2004_v53  ;;  %vm1767_vm4 = vmor %vm1765_vm3, %vm1766_vm2 }
 0x291   : > { %v1555_v7 = vrot.slane %v1554_v39, 4  ;;  %v1485_v56 = vpop.f32.mrf.mxu3  ;;  %v1711_v22 = vsub.f32 %v1695_v0, %v1703_v31  ;;  %v1650_v3 = vadd.f32 %v1649_v35, %v1648_v14 }
 0x292   : > { %v1762_v8 = vmul.f32 0.5, %v1761_v48  ;;  %v1486_v6 = vadd.f32 %v1485_v56, %v4763_v60 }
 0x293   : > { %v1556_v4 = vadd.f32 %v1555_v7, %v1554_v39  ;;  %v1719_v1 = vmax.f32 %v1711_v22, 0.0  ;;  %v1651_v17 = vrot.slane %v1650_v3, 4  ;;  %3679 = vmatmul.msk.bf16.vlgmr.msra.gmra.mxu2 %vm286_vm0, %v3956_v11 }
 0x294   : > { %v1763_v27 = vsub.f32 1.5, %v1762_v8  ;;  %v4864_v45 = vadd.f32 %v1486_v6, %v4716_v59 }
 0x295   : > { %v1557_v36 = vrot.slane %v1556_v4, 2  ;;  %v1743_v20 = vadd.f32 1e-05, %v1719_v1  ;;  %v1652_v9 = vadd.f32 %v1651_v17, %v1650_v3 }
 0x296   : > { %v1764_v61 = vmul.f32 %v3921_v47, %v1763_v27  ;;  %v1613_v34 = vmul.f32 %v4864_v45, %v4864_v45 }
 0x297   : > { %v1558_v63 = vadd.f32 %v1557_v36, %v1556_v4  ;;  %3922 = vrsqrt.f32 %v1743_v20  ;;  %v1653_v29 = vrot.slane %v1652_v9, 2  ;;  %vm1775_vm6 = vweird.f32 %v1743_v20 }
 0x298   : > { %v1768_v13 = vsel %vm1767_vm4, %v3921_v47, %v1764_v61  ;;  %v1657_v31 = vsel %vm744_vm1, %v1613_v34, 0.0 }
 0x299   : > { %v1832_v16 = vmul.f32 %v1768_v13, %v1728_v40  ;;  %v1559_v25 = vrot.slane %v1558_v63, 1  ;;  %v1488_v49 = vpop.f32.mrf.mxu3  ;;  %v1831_v21 = vmul.f32 %v1768_v13, %v1727_v52  ;;  %v1654_v12 = vadd.f32 %v1653_v29, %v1652_v9  ;;  %v3957_v29 = vld [vmem:[%s4045_s25 + $0x8] sm:$0xff] }
 0x29a   : > { %v1489_v33 = vadd.f32 %v1488_v49, %v4763_v60  ;;  %v1730_v52 = vsub.f32 %v4814_v18, %v4843_v15 }
 0x29b   : > { %v1560_v57 = vadd.f32 %v1559_v25, %v1558_v63  ;;  %v1847_v24 = vmax.f32 %v1831_v21, 0.0  ;;  %v1848_v59 = vmax.f32 %v1832_v16, 0.0  ;;  %v1655_v51 = vrot.slane %v1654_v12, 1 }
 0x29c   : > { %v4872_v62 = vadd.f32 %v1489_v33, %v4727_v44  ;;  %v1561_v44 = vsel %vm744_vm1, %v4864_v45, 0.0  ;;  %v1729_v16 = vsub.f32 %v4808_v58, %v4843_v15 }
 0x29d   : > { %v4875_v2 = vmul.f32 %v1560_v57, %v4247_v42  ;;  %v1986_v46 = vpack.c.bf16 %v1847_v24, %v1847_v24  ;;  %v1987_v19 = vpack.c.bf16 %v1848_v59, %v1848_v59  ;;  %v3923_v47 = vpop.eup %3922  ;;  %v1656_v54 = vadd.f32 %v1655_v51, %v1654_v12 }
 0x29e   : > { %v1562_v37 = vsel %vm744_vm1, %v4872_v62, 0.0  ;;  %v1614_v43 = vmul.f32 %v4872_v62, %v4872_v62  ;;  %v1770_v32 = vmul.f32 %v3923_v47, %v1743_v20  ;;  %vm1776_vm5 = vweird.f32 %v3923_v47 }
 0x29f   : > { %v1704_v30 = vmul.f32 %v4875_v2, %v4875_v2  ;;  %v1696_v39 = vmul.f32 %v1656_v54, %v4247_v42  ;;  %v1563_v41 = vadd.f32 %v1562_v37, %v1561_v44  ;;  %v2022_v0 = vunpack.c.l.b16 %v1986_v46  ;;  %vm1777_vm7 = vmor %vm1775_vm6, %vm1776_vm5 }
 0x2a0   : > { %v1658_v48 = vsel %vm744_vm1, %v1614_v43, 0.0  ;;  %v1771_v53 = vmul.f32 %v3923_v47, %v1770_v32  ;;  %v2023_v35 = vunpack.c.l.b16 %v1987_v19 }
 0x2a1   : > { %v1659_v14 = vadd.f32 %v1658_v48, %v1657_v31  ;;  %v1491_v7 = vpop.f32.mrf.mxu3  ;;  %v1712_v56 = vsub.f32 %v1696_v39, %v1704_v30  ;;  %v1564_v8 = vrot.slane %v1563_v41, 4 }
 0x2a2   : > { %v1772_v22 = vmul.f32 0.5, %v1771_v53  ;;  %v1492_v4 = vadd.f32 %v1491_v7, %v4763_v60  ;;  %v2024_v6 = vpack.c.b16 %v2023_v35, %v2022_v0 }
 0x2a3   : > { %v1660_v3 = vrot.slane %v1659_v14, 4  ;;  %v1720_v27 = vmax.f32 %v1712_v56, 0.0  ;;  %v1565_v1 = vadd.f32 %v1564_v8, %v1563_v41 }
 0x2a4   : > { %v1773_v17 = vsub.f32 1.5, %v1772_v22  ;;  %2033 = vmatpush.bf16.msrb.mxu2 %v2024_v6  ;;  %v4892_v63 = vadd.f32 %v1492_v4, %v4697_v10 }
 0x2a5   : > { %v1661_v36 = vadd.f32 %v1660_v3, %v1659_v14  ;;  %v4889_v11 = vadd.f32 1e-05, %v1720_v27  ;;  %v1566_v61 = vrot.slane %v1565_v1, 2 }
 0x2a6   : > { %v1774_v9 = vmul.f32 %v3923_v47, %v1773_v17  ;;  %v1615_v18 = vmul.f32 %v4892_v63, %v4892_v63  ;;  %v1570_v58 = vsel %vm744_vm1, %v4892_v63, 0.0 }
 0x2a7   : > { %v1662_v40 = vrot.slane %v1661_v36, 2  ;;  %3924 = vrsqrt.f32 %v4889_v11  ;;  %v1567_v13 = vadd.f32 %v1566_v61, %v1565_v1  ;;  %3680 = vmatmul.msk.bf16.vlgmr.msrb.gmra.mxu2 %vm286_vm0, %v3957_v29  ;;  %vm1785_vm9 = vweird.f32 %v4889_v11 }
 0x2a8   : > { %v1778_v25 = vsel %vm1777_vm7, %v3923_v47, %v1774_v9  ;;  %v1666_v44 = vsel %vm744_vm1, %v1615_v18, 0.0  ;;  %v1731_v29 = vsub.f32 %v4836_v38, %v4875_v2 }
 0x2a9   : > { %v1663_v49 = vadd.f32 %v1662_v40, %v1661_v36  ;;  %v1494_v20 = vpop.f32.mrf.mxu3  ;;  %v1834_v21 = vmul.f32 %v1778_v25, %v1730_v52  ;;  %v1568_v12 = vrot.slane %v1567_v13, 1  ;;  %v1833_v33 = vmul.f32 %v1778_v25, %v1729_v16 }
 0x2aa   : > { %v1495_v10 = vadd.f32 %v1494_v20, %v4763_v60  ;;  %v1732_v52 = vsub.f32 %v4840_v26, %v4875_v2  ;;  %v3958_v20 = vld [vmem:[%s4045_s25 + $0x10] sm:$0xff] }
 0x2ab   : > { %v1664_v57 = vrot.slane %v1663_v49, 1  ;;  %v1569_v34 = vadd.f32 %v1568_v12, %v1567_v13  ;;  %v1849_v59 = vmax.f32 %v1833_v33, 0.0  ;;  %v1850_v51 = vmax.f32 %v1834_v21, 0.0 }
 0x2ac   : > { %v4905_v24 = vadd.f32 %v1495_v10, %v4708_v55 }
 0x2ad   : > { %v1665_v46 = vadd.f32 %v1664_v57, %v1663_v49  ;;  %v3925_v15 = vpop.eup %3924  ;;  %v4910_v19 = vmul.f32 %v1569_v34, %v4247_v42  ;;  %v1988_v37 = vpack.c.bf16 %v1849_v59, %v1849_v59  ;;  %v1989_v39 = vpack.c.bf16 %v1850_v51, %v1850_v51 }
 0x2ae   : > { %v1571_v47 = vsel %vm744_vm1, %v4905_v24, 0.0  ;;  %v1616_v54 = vmul.f32 %v4905_v24, %v4905_v24  ;;  %v1780_v55 = vmul.f32 %v3925_v15, %v4889_v11  ;;  %vm1786_vm8 = vweird.f32 %v3925_v15 }
 0x2af   : > { %v1697_v43 = vmul.f32 %v1665_v46, %v4247_v42  ;;  %v1572_v32 = vadd.f32 %v1571_v47, %v1570_v58  ;;  %v1705_v30 = vmul.f32 %v4910_v19, %v4910_v19  ;;  %v2042_v14 = vunpack.c.l.b16 %v1988_v37  ;;  %vm1787_vm10 = vmor %vm1785_vm9, %vm1786_vm8 }
 0x2b0   : > { %v1667_v31 = vsel %vm744_vm1, %v1616_v54, 0.0  ;;  %v1781_v41 = vmul.f32 %v3925_v15, %v1780_v55  ;;  %v2043_v35 = vunpack.c.l.b16 %v1989_v39 }
 0x2b1   : > { %v1573_v48 = vrot.slane %v1572_v32, 4  ;;  %v1668_v0 = vadd.f32 %v1667_v31, %v1666_v44  ;;  %v1497_v53 = vpop.f32.mrf.mxu3  ;;  %v1713_v7 = vsub.f32 %v1697_v43, %v1705_v30 }
 0x2b2   : > { %v1782_v56 = vmul.f32 0.5, %v1781_v41  ;;  %v1498_v4 = vadd.f32 %v1497_v53, %v4763_v60  ;;  %v2044_v6 = vpack.c.b16 %v2043_v35, %v2042_v14 }
 0x2b3   : > { %v1574_v8 = vadd.f32 %v1573_v48, %v1572_v32  ;;  %v1669_v22 = vrot.slane %v1668_v0, 4  ;;  %v1721_v3 = vmax.f32 %v1713_v7, 0.0 }
 0x2b4   : > { %v1783_v27 = vsub.f32 1.5, %v1782_v56  ;;  %2053 = vmatpush.bf16.msra.mxu2 %v2044_v6  ;;  %v4930_v13 = vadd.f32 %v1498_v4, %v4719_v23 }
 0x2b5   : > { %v1575_v1 = vrot.slane %v1574_v8, 2  ;;  %v1670_v17 = vadd.f32 %v1669_v22, %v1668_v0  ;;  %v4923_v36 = vadd.f32 1e-05, %v1721_v3 }
 0x2b6   : > { %v1784_v61 = vmul.f32 %v3925_v15, %v1783_v27  ;;  %v1617_v23 = vmul.f32 %v4930_v13, %v4930_v13  ;;  %v1579_v37 = vsel %vm744_vm1, %v4930_v13, 0.0 }
 0x2b7   : > { %v1576_v9 = vadd.f32 %v1575_v1, %v1574_v8  ;;  %v1671_v40 = vrot.slane %v1670_v17, 2  ;;  %3926 = vrsqrt.f32 %v4923_v36  ;;  %3681 = vmatmul.msk.bf16.vlgmr.msra.gmra.mxu2 %vm286_vm0, %v3958_v20  ;;  %vm1795_vm12 = vweird.f32 %v4923_v36 }
 0x2b8   : > { %v1788_v16 = vsel %vm1787_vm10, %v3925_v15, %v1784_v61  ;;  %v1675_v55 = vsel %vm744_vm1, %v1617_v23, 0.0 }
 0x2b9   : > { %v1577_v25 = vrot.slane %v1576_v9, 1  ;;  %v1672_v49 = vadd.f32 %v1671_v40, %v1670_v17  ;;  %v1500_v11 = vpop.f32.mrf.mxu3  ;;  %v1836_v21 = vmul.f32 %v1788_v16, %v1732_v52  ;;  %v1835_v26 = vmul.f32 %v1788_v16, %v1731_v29  ;;  %v3959_v16 = vld [vmem:[%s4045_s25 + $0x18] sm:$0xff] }
 0x2ba   : > { %v1501_v12 = vadd.f32 %v1500_v11, %v4763_v60  ;;  %v1734_v17 = vsub.f32 %v4872_v62, %v4910_v19 }
 0x2bb   : > { %v1578_v10 = vadd.f32 %v1577_v25, %v1576_v9  ;;  %v1673_v33 = vrot.slane %v1672_v49, 1  ;;  %v1851_v38 = vmax.f32 %v1835_v26, 0.0  ;;  %v1852_v2 = vmax.f32 %v1836_v21, 0.0 }
 0x2bc   : > { %v4940_v57 = vadd.f32 %v1501_v12, %v4730_v28  ;;  %v1733_v9 = vsub.f32 %v4864_v45, %v4910_v19 }
 0x2bd   : > { %v4943_v18 = vmul.f32 %v1578_v10, %v4247_v42  ;;  %v1674_v34 = vadd.f32 %v1673_v33, %v1672_v49  ;;  %v3927_v59 = vpop.eup %3926  ;;  %v1990_v58 = vpack.c.bf16 %v1851_v38, %v1851_v38  ;;  %v1991_v15 = vpack.c.bf16 %v1852_v2, %v1852_v2 }
 0x2be   : > { %v1580_v51 = vsel %vm744_vm1, %v4940_v57, 0.0  ;;  %v1618_v46 = vmul.f32 %v4940_v57, %v4940_v57  ;;  %v1790_v47 = vmul.f32 %v3927_v59, %v4923_v36  ;;  %vm1796_vm11 = vweird.f32 %v3927_v59 }
 0x2bf   : > { %v1698_v28 = vmul.f32 %v1674_v34, %v4247_v42  ;;  %v1706_v54 = vmul.f32 %v4943_v18, %v4943_v18  ;;  %v1581_v43 = vadd.f32 %v1580_v51, %v1579_v37  ;;  %v2062_v30 = vunpack.c.l.b16 %v1990_v58  ;;  %vm1797_vm13 = vmor %vm1795_vm12, %vm1796_vm11 }
 0x2c0   : > { %v1676_v32 = vsel %vm744_vm1, %v1618_v46, 0.0  ;;  %v1791_v44 = vmul.f32 %v3927_v59, %v1790_v47  ;;  %v2063_v48 = vunpack.c.l.b16 %v1991_v15 }
 0x2c1   : > { %v1714_v31 = vsub.f32 %v1698_v28, %v1706_v54  ;;  %v1677_v39 = vadd.f32 %v1676_v32, %v1675_v55  ;;  %v1503_v41 = vpop.f32.mrf.mxu3  ;;  %v1582_v0 = vrot.slane %v1581_v43, 4 }
 0x2c2   : > { %v1792_v53 = vmul.f32 0.5, %v1791_v44  ;;  %v2064_v35 = vpack.c.b16 %v2063_v48, %v2062_v30  ;;  %v1504_v4 = vadd.f32 %v1503_v41, %v4763_v60 }
 0x2c3   : > { %v1722_v14 = vmax.f32 %v1714_v31, 0.0  ;;  %v1678_v7 = vrot.slane %v1677_v39, 4  ;;  %v1583_v56 = vadd.f32 %v1582_v0, %v1581_v43 }
 0x2c4   : > { %v1793_v8 = vsub.f32 1.5, %v1792_v53  ;;  %2073 = vmatpush.bf16.msrb.mxu2 %v2064_v35  ;;  %v4967_v29 = vadd.f32 %v1504_v4, %v4741_v5 }
 0x2c5   : > { %v4957_v22 = vadd.f32 1e-05, %v1722_v14  ;;  %v1679_v3 = vadd.f32 %v1678_v7, %v1677_v39  ;;  %v1584_v6 = vrot.slane %v1583_v56, 2  ;;  %v1736_v7 = vsub.f32 %v4905_v24, %v4943_v18 }
 0x2c6   : > { %v1794_v27 = vmul.f32 %v3927_v59, %v1793_v8  ;;  %v1619_v5 = vmul.f32 %v4967_v29, %v4967_v29 }
 0x2c7   : > { %3928 = vrsqrt.f32 %v4957_v22  ;;  %v1680_v1 = vrot.slane %v1679_v3, 2  ;;  %v1585_v61 = vadd.f32 %v1584_v6, %v1583_v56  ;;  %3682 = vmatmul.msk.bf16.vlgmr.msrb.gmra.mxu2 %vm286_vm0, %v3959_v16  ;;  %vm1805_vm15 = vweird.f32 %v4957_v22 }
 0x2c8   : > { %v1798_v40 = vsel %vm1797_vm13, %v3927_v59, %v1794_v27  ;;  %v1684_v15 = vsel %vm744_vm1, %v1619_v5, 0.0  ;;  %v1735_v56 = vsub.f32 %v4892_v63, %v4943_v18  ;;  %v3960_v27 = vld [vmem:[%s4045_s25 + $0x20] sm:$0xff] }
 0x2c9   : > { %v1681_v52 = vadd.f32 %v1680_v1, %v1679_v3  ;;  %v1506_v36 = vpop.f32.mrf.mxu3  ;;  %v1838_v25 = vmul.f32 %v1798_v40, %v1734_v17  ;;  %v1586_v49 = vrot.slane %v1585_v61, 1  ;;  %v1837_v11 = vmul.f32 %v1798_v40, %v1733_v9 }
 0x2ca   : > { %v1507_v20 = vadd.f32 %v1506_v36, %v4763_v60  ;;  %v1588_v60 = vsel %vm744_vm1, %v4967_v29, 0.0 }
 0x2cb   : > { %v1682_v62 = vrot.slane %v1681_v52, 1  ;;  %v1587_v21 = vadd.f32 %v1586_v49, %v1585_v61  ;;  %v1853_v45 = vmax.f32 %v1837_v11, 0.0  ;;  %v1854_v19 = vmax.f32 %v1838_v25, 0.0 }
 0x2cc   : > { %v4973_v12 = vadd.f32 %v1507_v20, %v4747_v50 }
 0x2cd   : > { %v3929_v26 = vpop.eup %3928  ;;  %v1683_v10 = vadd.f32 %v1682_v62, %v1681_v52  ;;  %v4979_v23 = vmul.f32 %v1587_v21, %v4247_v42  ;;  %v1992_v59 = vpack.c.bf16 %v1853_v45, %v1853_v45  ;;  %v1993_v58 = vpack.c.bf16 %v1854_v19, %v1854_v19  ;;  %v5005_v21 = vpop.f32.mrf.mxu2 }
 0x2ce   : > { %v1800_v33 = vmul.f32 %v3929_v26, %v4957_v22  ;;  %v1589_v38 = vsel %vm744_vm1, %v4973_v12, 0.0  ;;  %v1620_v34 = vmul.f32 %v4973_v12, %v4973_v12  ;;  %vm1806_vm14 = vweird.f32 %v3929_v26 }
 0x2cf   : > { %v1699_v50 = vmul.f32 %v1683_v10, %v4247_v42  ;;  %v1590_v2 = vadd.f32 %v1589_v38, %v1588_v60  ;;  %v1707_v46 = vmul.f32 %v4979_v23, %v4979_v23  ;;  %v2082_v54 = vunpack.c.l.b16 %v1992_v59  ;;  %vm1807_vm2 = vmor %vm1805_vm15, %vm1806_vm14  ;;  %v3961_v38 = vld [vmem:[%s4045_s25 + $0x28] sm:$0xff] }
 0x2d0   : > { %v1801_v51 = vmul.f32 %v3929_v26, %v1800_v33  ;;  %v1685_v28 = vsel %vm744_vm1, %v1620_v34, 0.0  ;;  %v2083_v32 = vunpack.c.l.b16 %v1993_v58 }
 0x2d1   : > { %v1591_v47 = vrot.slane %v1590_v2, 4  ;;  %v1715_v55 = vsub.f32 %v1699_v50, %v1707_v46  ;;  %v1686_v43 = vadd.f32 %v1685_v28, %v1684_v15  ;;  %v1738_v50 = vsub.f32 %v4940_v57, %v4979_v23 }
 0x2d2   : > { %v1802_v37 = vmul.f32 0.5, %v1801_v51  ;;  %v2084_v41 = vpack.c.b16 %v2083_v32, %v2082_v54 }
 0x2d3   : > { %v1592_v30 = vadd.f32 %v1591_v47, %v1590_v2  ;;  %v1723_v31 = vmax.f32 %v1715_v55, 0.0  ;;  %v1687_v39 = vrot.slane %v1686_v43, 4  ;;  %v1737_v2 = vsub.f32 %v4930_v13, %v4979_v23  ;;  %v3694_v13 = vld [vmem:[%s5774_s2 + $0x138] sm:$0xff] }
 0x2d4   : > { %v1803_v44 = vsub.f32 1.5, %v1802_v37  ;;  %2093 = vmatpush.bf16.msra.mxu2 %v2084_v41  ;;  %v3962_v41 = vld [vmem:[%s4045_s25 + $0x30] sm:$0xff] }
 0x2d5   : > { %v1593_v48 = vrot.slane %v1592_v30, 2  ;;  %v1747_v53 = vadd.f32 1e-05, %v1723_v31  ;;  %v1688_v14 = vadd.f32 %v1687_v39, %v1686_v43  ;;  %v5013_v46 = vpop.f32.mrf.mxu2 }
 0x2d6   : > { %v1804_v0 = vmul.f32 %v3929_v26, %v1803_v44  ;;  %v3693_v44 = vld [vmem:[%s5774_s2 + $0x130] sm:$0xff] }
 0x2d7   : > { %v1594_v35 = vadd.f32 %v1593_v48, %v1592_v30  ;;  %3930 = vrsqrt.f32 %v1747_v53  ;;  %v1689_v3 = vrot.slane %v1688_v14, 2  ;;  %3683 = vmatmul.msk.bf16.vlgmr.msra.gmra.mxu2 %vm286_vm0, %v3960_v27  ;;  %vm1815_vm4 = vweird.f32 %v1747_v53  ;;  %v3692_v48 = vld [vmem:[%s5774_s2 + $0x128] sm:$0xff] }
 0x2d8   : > { %v1808_v8 = vsel %vm1807_vm2, %v3929_v26, %v1804_v0 }
 0x2d9   : > { %v1840_v4 = vmul.f32 %v1808_v8, %v1736_v7  ;;  %v1595_v6 = vrot.slane %v1594_v35, 1  ;;  %v1839_v22 = vmul.f32 %v1808_v8, %v1735_v56  ;;  %v1690_v1 = vadd.f32 %v1689_v3, %v1688_v14  ;;  %v3691_v7 = vld [vmem:[%s5774_s2 + $0x120] sm:$0xff]  ;;  %v3690_v8 = vld [vmem:[%s5774_s2 + $0x118] sm:$0xff] }
 0x2db   : > { %v1596_v17 = vadd.f32 %v1595_v6, %v1594_v35  ;;  %v1855_v61 = vmax.f32 %v1839_v22, 0.0  ;;  %v1856_v9 = vmax.f32 %v1840_v4, 0.0  ;;  %v1691_v40 = vrot.slane %v1690_v1, 1  ;;  %v3688_v22 = vld [vmem:[%s5774_s2 + $0x108] sm:$0xff] }
 0x2dd   : > { %v5000_v24 = vmul.f32 %v1596_v17, %v4247_v42  ;;  %v1994_v52 = vpack.c.bf16 %v1855_v61, %v1855_v61  ;;  %v1995_v16 = vpack.c.bf16 %v1856_v9, %v1856_v9  ;;  %v3931_v63 = vpop.eup %3930  ;;  %v1692_v18 = vadd.f32 %v1691_v40, %v1690_v1  ;;  %v5021_v31 = vpop.f32.mrf.mxu2  ;;  %v3687_v61 = vld [vmem:[%s5774_s2 + $0x100] sm:$0xff]  ;;  %v3718_v40 = vld [vmem:[%s5774_s2 + $0xb8] sm:$0xff] }
 0x2de   : > { %v1810_v36 = vmul.f32 %v3931_v63, %v1747_v53  ;;  %vm1816_vm3 = vweird.f32 %v3931_v63 }
 0x2df   : > { %v1708_v25 = vmul.f32 %v5000_v24, %v5000_v24  ;;  %v1700_v49 = vmul.f32 %v1692_v18, %v4247_v42  ;;  %v2102_v20 = vunpack.c.l.b16 %v1994_v52  ;;  %v2103_v11 = vunpack.c.l.b16 %v1995_v16  ;;  %vm1817_vm5 = vmor %vm1815_vm4, %vm1816_vm3  ;;  %v3963_v52 = vld [vmem:[%s4045_s25 + $0x38] sm:$0xff]  ;;  %v3716_v16 = vld [vmem:[%s5774_s2 + $0xa8] sm:$0xff] }
 0x2e0   : > { %v1811_v62 = vmul.f32 %v3931_v63, %v1810_v36  ;;  %v1740_v0 = vsub.f32 %v4973_v12, %v5000_v24  ;;  %v1739_v53 = vsub.f32 %v4967_v29, %v5000_v24  ;;  %v3689_v29 = vld [vmem:[%s5774_s2 + $0x110] sm:$0xff]  ;;  %v3715_v18 = vld [vmem:[%s5774_s2 + $0xa0] sm:$0xff]  ;;  %v1939_v36 = vpop.f32.mrf.mxu1 }
 0x2e1   : > { %v1716_v45 = vsub.f32 %v1700_v49, %v1708_v25  ;;  %v2104_v19 = vpack.c.b16 %v2103_v11, %v2102_v20  ;;  %v3717_v24 = vld [vmem:[%s5774_s2 + $0xb0] sm:$0xff]  ;;  %v3714_v25 = vld [vmem:[%s5774_s2 + $0x98] sm:$0xff]  ;;  %v3712_v20 = vld [vmem:[%s5774_s2 + $0x88] sm:$0xff] }
 0x2e2   : > { %v1812_v26 = vmul.f32 0.5, %v1811_v62  ;;  %v3713_v49 = vld [vmem:[%s5774_s2 + $0x90] sm:$0xff]  ;;  %v3711_v62 = vld [vmem:[%s5774_s2 + $0x80] sm:$0xff] }
 0x2e3   : > { %v1724_v10 = vmax.f32 %v1716_v45, 0.0  ;;  %2113 = vmatpush.bf16.msrb.mxu0 %v2104_v19  ;;  %v1936_v45 = vpop.f32.mrf.mxu0  ;;  %v3964_v19 = vld [vmem:[%s5775_s3] sm:$0xff] }
 0x2e4   : > { %v1813_v5 = vsub.f32 1.5, %v1812_v26  ;;  %v5082_v26 = vperm.slane %v3964_v19, 5 }
 0x2e5   : > { %v1748_v33 = vadd.f32 1e-05, %v1724_v10  ;;  %v5041_v12 = vpop.f32.mrf.mxu2 }
 0x2e6   : > { %v1814_v60 = vmul.f32 %v3931_v63, %v1813_v5  ;;  %3684 = vmatmul.msk.bf16.vlgmr.msrb.gmra.mxu0 %vm286_vm0, %v3961_v38  ;;  %v5085_v5 = vadd.f32 %v1936_v45, %v5082_v26 }
 0x2e7   : > { %3932 = vrsqrt.f32 %v1748_v33  ;;  %vm1825_vm7 = vweird.f32 %v1748_v33 }
 0x2e8   : > { %v1818_v34 = vsel %vm1817_vm5, %v3931_v63, %v1814_v60  ;;  %v1942_v10 = vpop.f32.mrf.mxu1  ;;  %v5091_v60 = vadd.f32 %v1939_v36, %v5082_v26 }
 0x2e9   : > { %v1842_v59 = vmul.f32 %v1818_v34, %v1738_v50  ;;  %v1841_v51 = vmul.f32 %v1818_v34, %v1737_v2  ;;  %v5097_v2 = vadd.f32 %v1942_v10, %v5082_v26 }
 0x2eb   : > { %v1857_v58 = vmax.f32 %v1841_v51, 0.0  ;;  %v1858_v15 = vmax.f32 %v1842_v59, 0.0 }
 0x2ed   : > { %v3933_v47 = vpop.eup %3932  ;;  %v1996_v28 = vpack.c.bf16 %v1857_v58, %v1857_v58  ;;  %v1997_v54 = vpack.c.bf16 %v1858_v15, %v1858_v15  ;;  %v5060_v63 = vpop.f32.mrf.mxu2 }
 0x2ee   : > { %v1820_v37 = vmul.f32 %v3933_v47, %v1748_v33  ;;  %vm1826_vm6 = vweird.f32 %v3933_v47 }
 0x2ef   : > { %v2122_v55 = vunpack.c.l.b16 %v1996_v28  ;;  %v2123_v43 = vunpack.c.l.b16 %v1997_v54  ;;  %vm1827_vm8 = vmor %vm1825_vm7, %vm1826_vm6 }
 0x2f0   : > { %v1821_v57 = vmul.f32 %v3933_v47, %v1820_v37  ;;  %v1945_v38 = vpop.f32.mrf.mxu1 }
 0x2f1   : > { %v2124_v32 = vpack.c.b16 %v2123_v43, %v2122_v55  ;;  %v5103_v51 = vadd.f32 %v1945_v38, %v5082_v26 }
 0x2f2   : > { %v1822_v23 = vmul.f32 0.5, %v1821_v57 }
 0x2f3   : > { %2133 = vmatpush.bf16.msrb.mxu2 %v2124_v32 }
 0x2f4   : > { %v1823_v30 = vsub.f32 1.5, %v1822_v23 }
 0x2f5   : > { %v5074_v11 = vpop.f32.mrf.mxu2 }
 0x2f6   : > { %v1824_v39 = vmul.f32 %v3933_v47, %v1823_v30  ;;  %3685 = vmatmul.msk.bf16.vlgmr.msrb.gmra.mxu2 %vm286_vm0, %v3962_v41 }
 0x2f7   : > { %2226 = vmatpush.msra.mxu2 %v3694_v13 }
 0x2f8   : > { %v1828_v14 = vsel %vm1827_vm8, %v3933_v47, %v1824_v39  ;;  %v1948_v34 = vpop.f32.mrf.mxu1 }
 0x2f9   : > { %2227 = vmatpush.msra.mxu2 %v3693_v44  ;;  %v1844_v35 = vmul.f32 %v1828_v14, %v1740_v0  ;;  %v1843_v56 = vmul.f32 %v1828_v14, %v1739_v53  ;;  %v5109_v47 = vadd.f32 %v1948_v34, %v5082_v26  ;;  %v5145_v53 = vadd.f32 %v5005_v21, %v5082_v26 }
 0x2fa   : > { %v5159_v21 = vadd.f32 %v5021_v31, %v5082_v26 }
 0x2fb   : > { %2228 = vmatpush.msra.mxu2 %v3692_v48  ;;  %v1859_v3 = vmax.f32 %v1843_v56, 0.0  ;;  %v1860_v4 = vmax.f32 %v1844_v35, 0.0  ;;  %v274_v56 = vld [vmem:[%s5775_s3 + $0x8] sm:$0xff] }
 0x2fc   : > { %3491 = vperm.xlu2 %3899, %v274_v56  }
 0x2fd   : > { %2229 = vmatpush.msra.mxu2 %v3691_v7  ;;  %v1998_v6 = vpack.c.bf16 %v1859_v3, %v1859_v3  ;;  %v1999_v27 = vpack.c.bf16 %v1860_v4, %v1860_v4  ;;  %v5152_v7 = vadd.f32 %v5013_v46, %v5082_v26  ;;  %v5176_v3 = vadd.f32 %v5060_v63, %v5082_v26 }
 0x2ff   : > { %2230 = vmatpush.msra.mxu2 %v3690_v8  ;;  %v2142_v1 = vunpack.c.l.b16 %v1998_v6  ;;  %v2143_v17 = vunpack.c.l.b16 %v1999_v27  ;;  %v5169_v8 = vadd.f32 %v5041_v12, %v5082_v26  ;;  %v5189_v6 = vperm.slane %v274_v56, 0 }
 0x300   : > { %v1951_v58 = vpop.f32.mrf.mxu1 }
 0x301   : > { %2231 = vmatpush.msra.mxu2 %v3689_v29  ;;  %v2144_v9 = vpack.c.b16 %v2143_v17, %v2142_v1  ;;  %v5114_v37 = vadd.f32 %v1951_v58, %v5082_v26  ;;  %v5183_v29 = vadd.f32 %v5074_v11, %v5082_v26 }
 0x303   : > { %2232 = vmatpush.msra.mxu2 %v3688_v22  ;;  %2153 = vmatpush.bf16.msra.mxu0 %v2144_v9 }
 0x305   : > { %2233 = vmatpush.msra.mxu2 %v3687_v61 }
 0x306   : > { %3686 = vmatmul.msk.bf16.vlgmr.msra.gmra.mxu0 %vm286_vm0, %v3963_v52 }
 0x307   : > { %2701 = vmatpush.msrb.mxu0 %v3718_v40 }
 0x308   : > { %v1954_v28 = vpop.f32.mrf.mxu1 }
 0x309   : > { %2702 = vmatpush.msrb.mxu0 %v3717_v24  ;;  %v5120_v43 = vadd.f32 %v1954_v28, %v5082_v26 }
 0x30b   : > { %2703 = vmatpush.msrb.mxu0 %v3716_v16 }
 0x30d   : > { %2704 = vmatpush.msrb.mxu0 %v3715_v18 }
 0x30f   : > { %2705 = vmatpush.msrb.mxu0 %v3714_v25 }
 0x310   : > { %v1957_v57 = vpop.f32.mrf.mxu1 }
 0x311   : > { %2706 = vmatpush.msrb.mxu0 %v3713_v49  ;;  %v5126_v13 = vadd.f32 %v1957_v57, %v5082_v26 }
 0x313   : > { %2707 = vmatpush.msrb.mxu0 %v3712_v20 }
 0x315   : > { %2708 = vmatpush.msrb.mxu0 %v3711_v62 }
 0x316   : > { %3719 = vmatmul.msk.f32.vlgmr.msrb.gmra.mxu0 %vm744_vm1, %v5085_v5  ;;  %v2015_v33 = vpop.f32.mrf.mxu2 }
 0x317   : > { %3695 = vmatmul.msk.f32.vlgmr.msra.gmra.mxu2 %vm744_vm1, %v2015_v33 }
 0x318   : > { %v1960_v23 = vpop.f32.mrf.mxu1 }
 0x319   : > { %v5132_v44 = vadd.f32 %v1960_v23, %v5082_v26 }
 0x31e   : > { %3720 = vmatmul.msk.f32.gmra.mxu0 %vm744_vm1, %v5091_v60  ;;  %v2017_v50 = vpop.f32.mrf.mxu2 }
 0x31f   : > { %3696 = vmatmul.msk.f32.gmra.mxu2 %vm744_vm1, %v2017_v50 }
 0x320   : > { %v1963_v39 = vpop.f32.mrf.mxu1 }
 0x321   : > { %v5138_v48 = vadd.f32 %v1963_v39, %v5082_v26 }
 0x326   : > { %3721 = vmatmul.msk.f32.gmra.mxu0 %vm744_vm1, %v5097_v2 }
 0x32a   : > { %v2035_v59 = vpop.f32.mrf.mxu2 }
 0x32b   : > { %3697 = vmatmul.msk.f32.gmra.mxu2 %vm744_vm1, %v2035_v59 }
 0x32e   : > { %3722 = vmatmul.msk.f32.gmra.mxu0 %vm744_vm1, %v5103_v51 }
 0x332   : > { %v2037_v15 = vpop.f32.mrf.mxu2 }
 0x333   : > { %3698 = vmatmul.msk.f32.gmra.mxu2 %vm744_vm1, %v2037_v15 }
 0x336   : > { %3723 = vmatmul.msk.f32.gmra.mxu0 %vm744_vm1, %v5109_v47 }
 0x33a   : > { %v2055_v54 = vpop.f32.mrf.mxu2 }
 0x33b   : > { %3699 = vmatmul.msk.f32.gmra.mxu2 %vm744_vm1, %v2055_v54 }
 0x33e   : > { %3724 = vmatmul.msk.f32.gmra.mxu0 %vm744_vm1, %v5114_v37 }
 0x342   : > { %v2057_v55 = vpop.f32.mrf.mxu2 }
 0x343   : > { %3700 = vmatmul.msk.f32.gmra.mxu2 %vm744_vm1, %v2057_v55 }
 0x346   : > { %3725 = vmatmul.msk.f32.gmra.mxu0 %vm744_vm1, %v5120_v43 }
 0x34a   : > { %v2075_v32 = vpop.f32.mrf.mxu2 }
 0x34b   : > { %3701 = vmatmul.msk.f32.gmra.mxu2 %vm744_vm1, %v2075_v32 }
 0x34e   : > { %3726 = vmatmul.msk.f32.gmra.mxu0 %vm744_vm1, %v5126_v13 }
 0x352   : > { %v2077_v30 = vpop.f32.mrf.mxu2 }
 0x353   : > { %3702 = vmatmul.msk.f32.gmra.mxu2 %vm744_vm1, %v2077_v30 }
 0x356   : > { %3727 = vmatmul.msk.f32.gmra.mxu0 %vm744_vm1, %v5132_v44 }
 0x35a   : > { %v2095_v41 = vpop.f32.mrf.mxu2 }
 0x35b   : > { %3703 = vmatmul.msk.f32.gmra.mxu2 %vm744_vm1, %v2095_v41 }
 0x35e   : > { %3728 = vmatmul.msk.f32.gmra.mxu0 %vm744_vm1, %v5138_v48 }
 0x362   : > { %v2097_v0 = vpop.f32.mrf.mxu2 }
 0x363   : > { %3704 = vmatmul.msk.f32.gmra.mxu2 %vm744_vm1, %v2097_v0  ;;  %v2115_v14 = vpop.f32.mrf.mxu0 }
 0x366   : > { %3729 = vmatmul.msk.f32.gmra.mxu0 %vm744_vm1, %v5145_v53 }
 0x36b   : > { %3705 = vmatmul.msk.f32.gmra.mxu2 %vm744_vm1, %v2115_v14  ;;  %v2117_v35 = vpop.f32.mrf.mxu0 }
 0x36e   : > { %3730 = vmatmul.msk.f32.gmra.mxu0 %vm744_vm1, %v5152_v7 }
 0x373   : > { %3706 = vmatmul.msk.f32.gmra.mxu2 %vm744_vm1, %v2117_v35 }
 0x376   : > { %3731 = vmatmul.msk.f32.gmra.mxu0 %vm744_vm1, %v5159_v21 }
 0x379   : > { %v2135_v46 = vpop.f32.mrf.mxu2 }
 0x37b   : > { %3707 = vmatmul.msk.f32.gmra.mxu2 %vm744_vm1, %v2135_v46 }
 0x37e   : > { %3732 = vmatmul.msk.f32.gmra.mxu0 %vm744_vm1, %v5169_v8 }
 0x381   : > { %v2137_v31 = vpop.f32.mrf.mxu2 }
 0x383   : > { %3708 = vmatmul.msk.f32.gmra.mxu2 %vm744_vm1, %v2137_v31  ;;  %v2155_v4 = vpop.f32.mrf.mxu0 }
 0x386   : > { %3733 = vmatmul.msk.f32.gmra.mxu0 %vm744_vm1, %v5176_v3 }
 0x38b   : > { %3709 = vmatmul.msk.f32.gmra.mxu2 %vm744_vm1, %v2155_v4  ;;  %v2157_v12 = vpop.f32.mrf.mxu0 }
 0x38e   : > { %3734 = vmatmul.msk.f32.gmra.mxu0 %vm744_vm1, %v5183_v29 }
 0x393   : > { %3710 = vmatmul.msk.f32.gmra.mxu2 %vm744_vm1, %v2157_v12 }
 0x39a   : > { %v2235_v27 = vpop.f32.mrf.mxu2 }
 0x39b   : > { %v2236_v22 = vadd.f32 %v2235_v27, %v5189_v6 }
 0x39d   : > { %v5193_v1 = vadd.f32 %v2236_v22, %v5085_v5 }
 0x39f   : > { %v2379_v9 = vmul.f32 %v5193_v1, %v5193_v1  ;;  %v2299_v24 = vsel %vm744_vm1, %v5193_v1, 0.0 }
 0x3a1   : > { %v2395_v18 = vsel %vm744_vm1, %v2379_v9, 0.0 }
 0x3a2   : > { %v2238_v17 = vpop.f32.mrf.mxu2 }
 0x3a3   : > { %v2239_v61 = vadd.f32 %v2238_v17, %v5189_v6 }
 0x3a5   : > { %v5199_v40 = vadd.f32 %v2239_v61, %v5091_v60 }
 0x3a7   : > { %v2300_v52 = vsel %vm744_vm1, %v5199_v40, 0.0  ;;  %v2380_v16 = vmul.f32 %v5199_v40, %v5199_v40 }
 0x3a8   : > { %v2301_v63 = vadd.f32 %v2300_v52, %v2299_v24 }
 0x3a9   : > { %v2396_v36 = vsel %vm744_vm1, %v2380_v16, 0.0 }
 0x3aa   : > { %v2302_v25 = vrot.slane %v2301_v63, 4  ;;  %v2397_v49 = vadd.f32 %v2396_v36, %v2395_v18 }
 0x3ac   : > { %v2303_v20 = vadd.f32 %v2302_v25, %v2301_v63  ;;  %v2398_v11 = vrot.slane %v2397_v49, 4 }
 0x3ae   : > { %v2241_v62 = vpop.f32.mrf.mxu2  ;;  %v2304_v45 = vrot.slane %v2303_v20, 2  ;;  %v2399_v19 = vadd.f32 %v2398_v11, %v2397_v49 }
 0x3af   : > { %v2242_v5 = vadd.f32 %v2241_v62, %v5189_v6 }
 0x3b0   : > { %v2305_v26 = vadd.f32 %v2304_v45, %v2303_v20  ;;  %v2400_v10 = vrot.slane %v2399_v19, 2 }
 0x3b1   : > { %v5211_v34 = vadd.f32 %v2242_v5, %v5097_v2 }
 0x3b2   : > { %v2306_v33 = vrot.slane %v2305_v26, 1  ;;  %v2401_v60 = vadd.f32 %v2400_v10, %v2399_v19 }
 0x3b3   : > { %v2381_v57 = vmul.f32 %v5211_v34, %v5211_v34  ;;  %v2308_v23 = vsel %vm744_vm1, %v5211_v34, 0.0 }
 0x3b4   : > { %v2307_v38 = vadd.f32 %v2306_v33, %v2305_v26  ;;  %v2402_v50 = vrot.slane %v2401_v60, 1 }
 0x3b5   : > { %v2404_v14 = vsel %vm744_vm1, %v2381_v57, 0.0 }
 0x3b6   : > { %v2244_v59 = vpop.f32.mrf.mxu2  ;;  %v5214_v58 = vmul.f32 %v2307_v38, %v4247_v42  ;;  %v2403_v15 = vadd.f32 %v2402_v50, %v2401_v60 }
 0x3b7   : > { %v2245_v28 = vadd.f32 %v2244_v59, %v5189_v6 }
 0x3b8   : > { %v2467_v54 = vmul.f32 %v2403_v15, %v4247_v42  ;;  %v2475_v55 = vmul.f32 %v5214_v58, %v5214_v58 }
 0x3b9   : > { %v5223_v32 = vadd.f32 %v2245_v28, %v5103_v51 }
 0x3ba   : > { %v2483_v2 = vsub.f32 %v2467_v54, %v2475_v55 }
 0x3bb   : > { %v2309_v30 = vsel %vm744_vm1, %v5223_v32, 0.0  ;;  %v2382_v39 = vmul.f32 %v5223_v32, %v5223_v32 }
 0x3bc   : > { %v2310_v41 = vadd.f32 %v2309_v30, %v2308_v23  ;;  %v2491_v0 = vmax.f32 %v2483_v2, 0.0  ;;  %v2500_v30 = vsub.f32 %v5199_v40, %v5214_v58 }
 0x3bd   : > { %v2405_v35 = vsel %vm744_vm1, %v2382_v39, 0.0 }
 0x3be   : > { %v2311_v56 = vrot.slane %v2310_v41, 4  ;;  %v2406_v46 = vadd.f32 %v2405_v35, %v2404_v14  ;;  %v2515_v51 = vadd.f32 1e-05, %v2491_v0  ;;  %v2247_v31 = vpop.f32.mrf.mxu2 }
 0x3bf   : > { %v2248_v17 = vadd.f32 %v2247_v31, %v5189_v6 }
 0x3c0   : > { %v2312_v4 = vadd.f32 %v2311_v56, %v2310_v41  ;;  %v2407_v12 = vrot.slane %v2406_v46, 4  ;;  %3934 = vrsqrt.f32 %v2515_v51  ;;  %vm2529_vm10 = vweird.f32 %v2515_v51 }
 0x3c1   : > { %v5235_v63 = vadd.f32 %v2248_v17, %v5109_v47  ;;  %v2499_v41 = vsub.f32 %v5193_v1, %v5214_v58 }
 0x3c2   : > { %v2313_v27 = vrot.slane %v2312_v4, 2  ;;  %v2408_v22 = vadd.f32 %v2407_v12, %v2406_v46 }
 0x3c3   : > { %v2383_v19 = vmul.f32 %v5235_v63, %v5235_v63  ;;  %v2317_v33 = vsel %vm744_vm1, %v5235_v63, 0.0 }
 0x3c4   : > { %v2314_v61 = vadd.f32 %v2313_v27, %v2312_v4  ;;  %v2409_v9 = vrot.slane %v2408_v22, 2 }
 0x3c5   : > { %v2413_v15 = vsel %vm744_vm1, %v2383_v19, 0.0 }
 0x3c6   : > { %v2315_v24 = vrot.slane %v2314_v61, 1  ;;  %v2410_v52 = vadd.f32 %v2409_v9, %v2408_v22  ;;  %v3935_v16 = vpop.eup %3934  ;;  %v2250_v18 = vpop.f32.mrf.mxu2 }
 0x3c7   : > { %v2524_v36 = vmul.f32 %v3935_v16, %v2515_v51  ;;  %v2251_v20 = vadd.f32 %v2250_v18, %v5189_v6  ;;  %vm2530_vm9 = vweird.f32 %v3935_v16 }
 0x3c8   : > { %v2316_v25 = vadd.f32 %v2315_v24, %v2314_v61  ;;  %v2411_v49 = vrot.slane %v2410_v52, 1  ;;  %vm2531_vm11 = vmor %vm2529_vm10, %vm2530_vm9 }
 0x3c9   : > { %v2525_v11 = vmul.f32 %v3935_v16, %v2524_v36  ;;  %v5244_v26 = vadd.f32 %v2251_v20, %v5114_v37 }
 0x3ca   : > { %v5239_v62 = vmul.f32 %v2316_v25, %v4247_v42  ;;  %v2412_v45 = vadd.f32 %v2411_v49, %v2410_v52 }
 0x3cb   : > { %v2526_v10 = vmul.f32 0.5, %v2525_v11  ;;  %v2318_v60 = vsel %vm744_vm1, %v5244_v26, 0.0  ;;  %v2384_v38 = vmul.f32 %v5244_v26, %v5244_v26 }
 0x3cc   : > { %v2468_v47 = vmul.f32 %v2412_v45, %v4247_v42  ;;  %v2476_v5 = vmul.f32 %v5239_v62, %v5239_v62  ;;  %v2319_v37 = vadd.f32 %v2318_v60, %v2317_v33 }
 0x3cd   : > { %v2527_v50 = vsub.f32 1.5, %v2526_v10  ;;  %v2414_v28 = vsel %vm744_vm1, %v2384_v38, 0.0 }
 0x3ce   : > { %v2484_v59 = vsub.f32 %v2468_v47, %v2476_v5  ;;  %v2253_v54 = vpop.f32.mrf.mxu2  ;;  %v2320_v2 = vrot.slane %v2319_v37, 4  ;;  %v2415_v23 = vadd.f32 %v2414_v28, %v2413_v15 }
 0x3cf   : > { %v2528_v55 = vmul.f32 %v3935_v16, %v2527_v50  ;;  %v2254_v39 = vadd.f32 %v2253_v54, %v5189_v6 }
 0x3d0   : > { %v2492_v57 = vmax.f32 %v2484_v59, 0.0  ;;  %v2321_v35 = vadd.f32 %v2320_v2, %v2319_v37  ;;  %v2416_v56 = vrot.slane %v2415_v23, 4 }
 0x3d1   : > { %v2532_v0 = vsel %vm2531_vm11, %v3935_v16, %v2528_v55  ;;  %v5263_v27 = vadd.f32 %v2254_v39, %v5120_v43 }
 0x3d2   : > { %v2516_v14 = vadd.f32 1e-05, %v2492_v57  ;;  %v2604_v46 = vmul.f32 %v2532_v0, %v2500_v30  ;;  %v2603_v51 = vmul.f32 %v2532_v0, %v2499_v41  ;;  %v2322_v31 = vrot.slane %v2321_v35, 2  ;;  %v3965_v0 = vld [vmem:[%s4045_s25] sm:$0xff] }
 0x3d3   : > { %v2417_v4 = vadd.f32 %v2416_v56, %v2415_v23  ;;  %v2385_v16 = vmul.f32 %v5263_v27, %v5263_v27  ;;  %v2326_v45 = vsel %vm744_vm1, %v5263_v27, 0.0 }
 0x3d4   : > { %3936 = vrsqrt.f32 %v2516_v14  ;;  %v2620_v12 = vmax.f32 %v2604_v46, 0.0  ;;  %v2323_v40 = vadd.f32 %v2322_v31, %v2321_v35  ;;  %v2619_v17 = vmax.f32 %v2603_v51, 0.0 }
 0x3d5   : > { %v2418_v22 = vrot.slane %v2417_v4, 2  ;;  %v2422_v59 = vsel %vm744_vm1, %v2385_v16, 0.0  ;;  %vm2539_vm13 = vweird.f32 %v2516_v14  ;;  %v2502_v51 = vsub.f32 %v5223_v32, %v5239_v62 }
 0x3d6   : > { %v2256_v61 = vpop.f32.mrf.mxu2  ;;  %v2759_v9 = vpack.c.bf16 %v2620_v12, %v2620_v12  ;;  %v2324_v24 = vrot.slane %v2323_v40, 1  ;;  %v2758_v52 = vpack.c.bf16 %v2619_v17, %v2619_v17 }
 0x3d7   : > { %v2419_v1 = vadd.f32 %v2418_v22, %v2417_v4  ;;  %v2257_v58 = vadd.f32 %v2256_v61, %v5189_v6  ;;  %v2501_v22 = vsub.f32 %v5211_v34, %v5239_v62 }
 0x3d8   : > { %v2777_v18 = vunpack.c.l.b16 %v2759_v9  ;;  %v2325_v25 = vadd.f32 %v2324_v24, %v2323_v40  ;;  %v2776_v20 = vunpack.c.l.b16 %v2758_v52 }
 0x3d9   : > { %v2420_v49 = vrot.slane %v2419_v1, 1  ;;  %v5269_v43 = vadd.f32 %v2257_v58, %v5126_v13 }
 0x3da   : > { %v3937_v36 = vpop.eup %3936  ;;  %v5274_v19 = vmul.f32 %v2325_v25, %v4247_v42  ;;  %v2778_v38 = vpack.c.b16 %v2777_v18, %v2776_v20 }
 0x3db   : > { %v2534_v11 = vmul.f32 %v3937_v36, %v2516_v14  ;;  %v2421_v10 = vadd.f32 %v2420_v49, %v2419_v1  ;;  %v2327_v47 = vsel %vm744_vm1, %v5269_v43, 0.0  ;;  %v2386_v5 = vmul.f32 %v5269_v43, %v5269_v43 }
 0x3dc   : > { %v2328_v60 = vadd.f32 %v2327_v47, %v2326_v45  ;;  %v2477_v50 = vmul.f32 %v5274_v19, %v5274_v19  ;;  %2787 = vmatpush.bf16.msrb.mxu3 %v2778_v38  ;;  %vm2540_vm12 = vweird.f32 %v3937_v36 }
 0x3dd   : > { %v2535_v33 = vmul.f32 %v3937_v36, %v2534_v11  ;;  %v2469_v13 = vmul.f32 %v2421_v10, %v4247_v42  ;;  %v2423_v37 = vsel %vm744_vm1, %v2386_v5, 0.0  ;;  %vm2541_vm14 = vmor %vm2539_vm13, %vm2540_vm12 }
 0x3de   : > { %v2329_v28 = vrot.slane %v2328_v60, 4  ;;  %v2424_v54 = vadd.f32 %v2423_v37, %v2422_v59  ;;  %v2259_v55 = vpop.f32.mrf.mxu2 }
 0x3df   : > { %v2536_v15 = vmul.f32 0.5, %v2535_v33  ;;  %v2485_v57 = vsub.f32 %v2469_v13, %v2477_v50  ;;  %v2260_v41 = vadd.f32 %v2259_v55, %v5189_v6  ;;  %3735 = vmatmul.msk.bf16.vlgmr.msrb.gmra.mxu3 %vm286_vm0, %v3965_v0 }
 0x3e0   : > { %v2330_v23 = vadd.f32 %v2329_v28, %v2328_v60  ;;  %v2425_v30 = vrot.slane %v2424_v54, 4 }
 0x3e1   : > { %v2537_v2 = vsub.f32 1.5, %v2536_v15  ;;  %v2493_v39 = vmax.f32 %v2485_v57, 0.0  ;;  %v5293_v61 = vadd.f32 %v2260_v41, %v5132_v44 }
 0x3e2   : > { %v2331_v56 = vrot.slane %v2330_v23, 2  ;;  %v2426_v46 = vadd.f32 %v2425_v30, %v2424_v54 }
 0x3e3   : > { %v2538_v35 = vmul.f32 %v3937_v36, %v2537_v2  ;;  %v2517_v31 = vadd.f32 1e-05, %v2493_v39  ;;  %v2335_v33 = vsel %vm744_vm1, %v5293_v61, 0.0 }
 0x3e4   : > { %v2332_v12 = vadd.f32 %v2331_v56, %v2330_v23  ;;  %v2427_v40 = vrot.slane %v2426_v46, 2 }
 0x3e5   : > { %v2542_v4 = vsel %vm2541_vm14, %v3937_v36, %v2538_v35  ;;  %3938 = vrsqrt.f32 %v2517_v31  ;;  %v2387_v36 = vmul.f32 %v5293_v61, %v5293_v61  ;;  %vm2549_vm2 = vweird.f32 %v2517_v31 }
 0x3e6   : > { %v2606_v17 = vmul.f32 %v2542_v4, %v2502_v51  ;;  %v2333_v9 = vrot.slane %v2332_v12, 1  ;;  %v2428_v14 = vadd.f32 %v2427_v40, %v2426_v46  ;;  %v2262_v24 = vpop.f32.mrf.mxu2  ;;  %v2605_v1 = vmul.f32 %v2542_v4, %v2501_v22  ;;  %v3966_v4 = vld [vmem:[%s4045_s25 + $0x8] sm:$0xff] }
 0x3e7   : > { %v2263_v32 = vadd.f32 %v2262_v24, %v5189_v6  ;;  %v2431_v60 = vsel %vm744_vm1, %v2387_v36, 0.0  ;;  %v2503_v22 = vsub.f32 %v5235_v63, %v5274_v19 }
 0x3e8   : > { %v2622_v58 = vmax.f32 %v2606_v17, 0.0  ;;  %v2334_v52 = vadd.f32 %v2333_v9, %v2332_v12  ;;  %v2429_v16 = vrot.slane %v2428_v14, 1  ;;  %v2621_v18 = vmax.f32 %v2605_v1, 0.0 }
 0x3e9   : > { %v5299_v34 = vadd.f32 %v2263_v32, %v5138_v48  ;;  %v2504_v12 = vsub.f32 %v5244_v26, %v5274_v19 }
 0x3ea   : > { %v2761_v62 = vpack.c.bf16 %v2622_v58, %v2622_v58  ;;  %v5302_v44 = vmul.f32 %v2334_v52, %v4247_v42  ;;  %v2430_v25 = vadd.f32 %v2429_v16, %v2428_v14  ;;  %v2760_v49 = vpack.c.bf16 %v2621_v18, %v2621_v18 }
 0x3eb   : > { %v3939_v20 = vpop.eup %3938  ;;  %v2336_v11 = vsel %vm744_vm1, %v5299_v34, 0.0  ;;  %v2388_v45 = vmul.f32 %v5299_v34, %v5299_v34 }
 0x3ec   : > { %v2797_v10 = vunpack.c.l.b16 %v2761_v62  ;;  %v2544_v47 = vmul.f32 %v3939_v20, %v2517_v31  ;;  %v2470_v5 = vmul.f32 %v2430_v25, %v4247_v42  ;;  %v2478_v48 = vmul.f32 %v5302_v44, %v5302_v44 }
 0x3ed   : > { %v2337_v38 = vadd.f32 %v2336_v11, %v2335_v33  ;;  %v2432_v13 = vsel %vm744_vm1, %v2388_v45, 0.0  ;;  %v2796_v50 = vunpack.c.l.b16 %v2760_v49  ;;  %vm2550_vm15 = vweird.f32 %v3939_v20 }
 0x3ee   : > { %v2545_v59 = vmul.f32 %v3939_v20, %v2544_v47  ;;  %v2486_v37 = vsub.f32 %v2470_v5, %v2478_v48  ;;  %v2433_v15 = vadd.f32 %v2432_v13, %v2431_v60  ;;  %v2265_v28 = vpop.f32.mrf.mxu2  ;;  %vm2551_vm3 = vmor %vm2549_vm2, %vm2550_vm15 }
 0x3ef   : > { %v2338_v54 = vrot.slane %v2337_v38, 4  ;;  %v2798_v55 = vpack.c.b16 %v2797_v10, %v2796_v50  ;;  %v2266_v35 = vadd.f32 %v2265_v28, %v5189_v6 }
 0x3f0   : > { %v2546_v57 = vmul.f32 0.5, %v2545_v59  ;;  %v2494_v2 = vmax.f32 %v2486_v37, 0.0  ;;  %v2434_v23 = vrot.slane %v2433_v15, 4 }
 0x3f1   : > { %v2339_v30 = vadd.f32 %v2338_v54, %v2337_v38  ;;  %2807 = vmatpush.bf16.msra.mxu1 %v2798_v55  ;;  %v5327_v14 = vadd.f32 %v2266_v35, %v5145_v53 }
 0x3f2   : > { %v2547_v39 = vsub.f32 1.5, %v2546_v57  ;;  %v5315_v41 = vadd.f32 1e-05, %v2494_v2  ;;  %v2435_v0 = vadd.f32 %v2434_v23, %v2433_v15 }
 0x3f3   : > { %v2340_v56 = vrot.slane %v2339_v30, 2  ;;  %v2389_v19 = vmul.f32 %v5327_v14, %v5327_v14  ;;  %v2344_v49 = vsel %vm744_vm1, %v5327_v14, 0.0 }
 0x3f4   : > { %v2548_v46 = vmul.f32 %v3939_v20, %v2547_v39  ;;  %3940 = vrsqrt.f32 %v5315_v41  ;;  %v2436_v51 = vrot.slane %v2435_v0, 2  ;;  %3736 = vmatmul.msk.bf16.vlgmr.msra.gmra.mxu1 %vm286_vm0, %v3966_v4  ;;  %vm2559_vm5 = vweird.f32 %v5315_v41 }
 0x3f5   : > { %v2341_v40 = vadd.f32 %v2340_v56, %v2339_v30  ;;  %v2440_v48 = vsel %vm744_vm1, %v2389_v19, 0.0 }
 0x3f6   : > { %v2552_v17 = vsel %vm2551_vm3, %v3939_v20, %v2548_v46  ;;  %v2437_v9 = vadd.f32 %v2436_v51, %v2435_v0  ;;  %v2268_v31 = vpop.f32.mrf.mxu2  ;;  %v2506_v46 = vsub.f32 %v5269_v43, %v5302_v44 }
 0x3f7   : > { %v2608_v24 = vmul.f32 %v2552_v17, %v2504_v12  ;;  %v2342_v1 = vrot.slane %v2341_v40, 1  ;;  %v2269_v58 = vadd.f32 %v2268_v31, %v5189_v6  ;;  %v2607_v32 = vmul.f32 %v2552_v17, %v2503_v22 }
 0x3f8   : > { %v2438_v52 = vrot.slane %v2437_v9, 1  ;;  %v2505_v12 = vsub.f32 %v5263_v27, %v5302_v44 }
 0x3f9   : > { %v2343_v16 = vadd.f32 %v2342_v1, %v2341_v40  ;;  %v5331_v26 = vadd.f32 %v2269_v58, %v5152_v7  ;;  %v2623_v18 = vmax.f32 %v2607_v32, 0.0  ;;  %v2624_v62 = vmax.f32 %v2608_v24, 0.0  ;;  %v3967_v1 = vld [vmem:[%s4045_s25 + $0x10] sm:$0xff] }
 0x3fa   : > { %v3941_v36 = vpop.eup %3940  ;;  %v2439_v63 = vadd.f32 %v2438_v52, %v2437_v9 }
 0x3fb   : > { %v2554_v53 = vmul.f32 %v3941_v36, %v5315_v41  ;;  %v5337_v25 = vmul.f32 %v2343_v16, %v4247_v42  ;;  %v2345_v20 = vsel %vm744_vm1, %v5331_v26, 0.0  ;;  %v2390_v45 = vmul.f32 %v5331_v26, %v5331_v26 }
 0x3fc   : > { %v2471_v7 = vmul.f32 %v2439_v63, %v4247_v42  ;;  %v2346_v11 = vadd.f32 %v2345_v20, %v2344_v49  ;;  %v2762_v5 = vpack.c.bf16 %v2623_v18, %v2623_v18  ;;  %v2763_v13 = vpack.c.bf16 %v2624_v62, %v2624_v62 }
 0x3fd   : > { %v2555_v10 = vmul.f32 %v3941_v36, %v2554_v53  ;;  %v2479_v47 = vmul.f32 %v5337_v25, %v5337_v25  ;;  %v2441_v60 = vsel %vm744_vm1, %v2390_v45, 0.0  ;;  %vm2560_vm4 = vweird.f32 %v3941_v36 }
 0x3fe   : > { %v2347_v33 = vrot.slane %v2346_v11, 4  ;;  %v2271_v38 = vpop.f32.mrf.mxu2  ;;  %v2442_v37 = vadd.f32 %v2441_v60, %v2440_v48  ;;  %v2816_v54 = vunpack.c.l.b16 %v2762_v5  ;;  %v2817_v55 = vunpack.c.l.b16 %v2763_v13  ;;  %vm2561_vm6 = vmor %vm2559_vm5, %vm2560_vm4 }
 0x3ff   : > { %v2556_v50 = vmul.f32 0.5, %v2555_v10  ;;  %v2487_v59 = vsub.f32 %v2471_v7, %v2479_v47  ;;  %v2272_v28 = vadd.f32 %v2271_v38, %v5189_v6  ;;  %vm3189_vm5 = vcmask 1042434  }
 0x400   : > { %v2348_v15 = vadd.f32 %v2347_v33, %v2346_v11  ;;  %v2443_v23 = vrot.slane %v2442_v37, 4  ;;  %v2818_v39 = vpack.c.b16 %v2817_v55, %v2816_v54 }
 0x401   : > { %v2557_v57 = vsub.f32 1.5, %v2556_v50  ;;  %v2495_v2 = vmax.f32 %v2487_v59, 0.0  ;;  %v5357_v4 = vadd.f32 %v2272_v28, %v5159_v21 }
 0x402   : > { %v2349_v30 = vrot.slane %v2348_v15, 2  ;;  %v2444_v56 = vadd.f32 %v2443_v23, %v2442_v37  ;;  %2827 = vmatpush.bf16.msra.mxu3 %v2818_v39 }
 0x403   : > { %v2558_v0 = vmul.f32 %v3941_v36, %v2557_v57  ;;  %v5352_v35 = vadd.f32 1e-05, %v2495_v2  ;;  %v2391_v32 = vmul.f32 %v5357_v4, %v5357_v4 }
 0x404   : > { %v2350_v51 = vadd.f32 %v2349_v30, %v2348_v15  ;;  %v2445_v41 = vrot.slane %v2444_v56, 2 }
 0x405   : > { %v2562_v40 = vsel %vm2561_vm6, %v3941_v36, %v2558_v0  ;;  %3942 = vrsqrt.f32 %v5352_v35  ;;  %3737 = vmatmul.msk.bf16.vlgmr.msra.gmra.mxu3 %vm286_vm0, %v3967_v1  ;;  %v2449_v7 = vsel %vm744_vm1, %v2391_v32, 0.0  ;;  %vm2569_vm8 = vweird.f32 %v5352_v35 }
 0x406   : > { %v2610_v22 = vmul.f32 %v2562_v40, %v2506_v46  ;;  %v2351_v17 = vrot.slane %v2350_v51, 1  ;;  %v2274_v9 = vpop.f32.mrf.mxu2  ;;  %v2609_v31 = vmul.f32 %v2562_v40, %v2505_v12  ;;  %v2446_v24 = vadd.f32 %v2445_v41, %v2444_v56 }
 0x407   : > { %v2275_v43 = vadd.f32 %v2274_v9, %v5189_v6  ;;  %v2508_v56 = vsub.f32 %v5299_v34, %v5337_v25  ;;  %v2507_v12 = vsub.f32 %v5293_v61, %v5337_v25  ;;  %vm3191_vm6 = vcmask 1043459  }
 0x408   : > { %v2626_v21 = vmax.f32 %v2610_v22, 0.0  ;;  %v2352_v58 = vadd.f32 %v2351_v17, %v2350_v51  ;;  %v2625_v27 = vmax.f32 %v2609_v31, 0.0  ;;  %v2447_v44 = vrot.slane %v2446_v24, 1  ;;  %v3968_v51 = vld [vmem:[%s4045_s25 + $0x18] sm:$0xff] }
 0x409   : > { %v5368_v52 = vadd.f32 %v2275_v43, %v5169_v8  ;;  %v2353_v8 = vsel %vm744_vm1, %v5357_v4, 0.0 }
 0x40a   : > { %v5371_v16 = vmul.f32 %v2352_v58, %v4247_v42  ;;  %v2764_v18 = vpack.c.bf16 %v2625_v27, %v2625_v27  ;;  %v2765_v36 = vpack.c.bf16 %v2626_v21, %v2626_v21  ;;  %v2448_v63 = vadd.f32 %v2447_v44, %v2446_v24 }
 0x40b   : > { %v3943_v62 = vpop.eup %3942  ;;  %v2354_v19 = vsel %vm744_vm1, %v5368_v52, 0.0  ;;  %v2392_v53 = vmul.f32 %v5368_v52, %v5368_v52 }
 0x40c   : > { %v2564_v49 = vmul.f32 %v3943_v62, %v5352_v35  ;;  %v2480_v20 = vmul.f32 %v5371_v16, %v5371_v16  ;;  %v2472_v11 = vmul.f32 %v2448_v63, %v4247_v42  ;;  %v2355_v45 = vadd.f32 %v2354_v19, %v2353_v8 }
 0x40d   : > { %v2450_v10 = vsel %vm744_vm1, %v2392_v53, 0.0  ;;  %v2836_v47 = vunpack.c.l.b16 %v2764_v18  ;;  %v2837_v60 = vunpack.c.l.b16 %v2765_v36  ;;  %vm2570_vm7 = vweird.f32 %v3943_v62 }
 0x40e   : > { %v2565_v5 = vmul.f32 %v3943_v62, %v2564_v49  ;;  %v2451_v48 = vadd.f32 %v2450_v10, %v2449_v7  ;;  %v2277_v33 = vpop.f32.mrf.mxu2  ;;  %v2488_v38 = vsub.f32 %v2472_v11, %v2480_v20  ;;  %v2356_v13 = vrot.slane %v2355_v45, 4  ;;  %vm2571_vm9 = vmor %vm2569_vm8, %vm2570_vm7 }
 0x40f   : > { %v2278_v37 = vadd.f32 %v2277_v33, %v5189_v6  ;;  %v2838_v15 = vpack.c.b16 %v2837_v60, %v2836_v47  ;;  %vm3193_vm7 = vcmask 1044484   ;;  %vm3195_vm8 = vcmask 1045509  }
 0x410   : > { %v2566_v50 = vmul.f32 0.5, %v2565_v5  ;;  %v2452_v59 = vrot.slane %v2451_v48, 4  ;;  %v2496_v28 = vmax.f32 %v2488_v38, 0.0  ;;  %v2357_v54 = vadd.f32 %v2356_v13, %v2355_v45 }
 0x411   : > { %2847 = vmatpush.bf16.msrb.mxu1 %v2838_v15  ;;  %v5388_v0 = vadd.f32 %v2278_v37, %v5176_v3 }
 0x412   : > { %v2567_v55 = vsub.f32 1.5, %v2566_v50  ;;  %v2453_v57 = vadd.f32 %v2452_v59, %v2451_v48  ;;  %v2520_v2 = vadd.f32 1e-05, %v2496_v28  ;;  %v2358_v23 = vrot.slane %v2357_v54, 2 }
 0x413   : > { %v2393_v34 = vmul.f32 %v5388_v0, %v5388_v0  ;;  %v2362_v61 = vsel %vm744_vm1, %v5388_v0, 0.0  ;;  %v2510_v28 = vsub.f32 %v5331_v26, %v5371_v16 }
 0x414   : > { %v2568_v30 = vmul.f32 %v3943_v62, %v2567_v55  ;;  %v2454_v39 = vrot.slane %v2453_v57, 2  ;;  %3944 = vrsqrt.f32 %v2520_v2  ;;  %v2359_v46 = vadd.f32 %v2358_v23, %v2357_v54  ;;  %3738 = vmatmul.msk.bf16.vlgmr.msrb.gmra.mxu1 %vm286_vm0, %v3968_v51 }
 0x415   : > { %v2458_v63 = vsel %vm744_vm1, %v2393_v34, 0.0  ;;  %vm2579_vm11 = vweird.f32 %v2520_v2  ;;  %v2509_v54 = vsub.f32 %v5327_v14, %v5371_v16 }
 0x416   : > { %v2572_v40 = vsel %vm2571_vm9, %v3943_v62, %v2568_v30  ;;  %v2455_v41 = vadd.f32 %v2454_v39, %v2453_v57  ;;  %v2280_v22 = vpop.f32.mrf.mxu2  ;;  %v2360_v17 = vrot.slane %v2359_v46, 1  ;;  %v3969_v30 = vld [vmem:[%s4045_s25 + $0x20] sm:$0xff]  ;;  %vm3197_vm9 = vcmask 1046534  }
 0x417   : > { %v2612_v35 = vmul.f32 %v2572_v40, %v2508_v56  ;;  %v2281_v3 = vadd.f32 %v2280_v22, %v5189_v6  ;;  %v2611_v9 = vmul.f32 %v2572_v40, %v2507_v12 }
 0x418   : > { %v2456_v31 = vrot.slane %v2455_v41, 1  ;;  %v2361_v1 = vadd.f32 %v2360_v17, %v2359_v46 }
 0x419   : > { %v2628_v24 = vmax.f32 %v2612_v35, 0.0  ;;  %v5400_v43 = vadd.f32 %v2281_v3, %v5183_v29  ;;  %v2627_v21 = vmax.f32 %v2611_v9, 0.0 }
 0x41a   : > { %v2457_v58 = vadd.f32 %v2456_v31, %v2455_v41  ;;  %v3945_v25 = vpop.eup %3944  ;;  %v5405_v32 = vmul.f32 %v2361_v1, %v4247_v42 }
 0x41b   : > { %v2363_v6 = vsel %vm744_vm1, %v5400_v43, 0.0  ;;  %v2394_v27 = vmul.f32 %v5400_v43, %v5400_v43  ;;  %v2766_v44 = vpack.c.bf16 %v2627_v21, %v2627_v21  ;;  %v2574_v18 = vmul.f32 %v3945_v25, %v2520_v2 }
 0x41c   : > { %v2473_v29 = vmul.f32 %v2457_v58, %v4247_v42  ;;  %v2364_v36 = vadd.f32 %v2363_v6, %v2362_v61  ;;  %v2481_v62 = vmul.f32 %v5405_v32, %v5405_v32  ;;  %v2767_v53 = vpack.c.bf16 %v2628_v24, %v2628_v24  ;;  %v3970_v6 = vld [vmem:[%s4045_s25 + $0x28] sm:$0xff] }
 0x41d   : > { %v2459_v19 = vsel %vm744_vm1, %v2394_v27, 0.0  ;;  %v2575_v49 = vmul.f32 %v3945_v25, %v2574_v18  ;;  %v2856_v7 = vunpack.c.l.b16 %v2766_v44  ;;  %vm2580_vm10 = vweird.f32 %v3945_v25 }
 0x41e   : > { %v2365_v20 = vrot.slane %v2364_v36, 4  ;;  %v2460_v8 = vadd.f32 %v2459_v19, %v2458_v63  ;;  %v2489_v11 = vsub.f32 %v2473_v29, %v2481_v62  ;;  %v2857_v45 = vunpack.c.l.b16 %v2767_v53  ;;  %vm2581_vm12 = vmor %vm2579_vm11, %vm2580_vm10 }
 0x41f   : > { %v2576_v10 = vmul.f32 0.5, %v2575_v49  ;;  %v2512_v27 = vsub.f32 %v5368_v52, %v5405_v32  ;;  %v2511_v44 = vsub.f32 %v5357_v4, %v5405_v32  ;;  %v3750_v52 = vld [vmem:[%s5774_s2 + $0x178] sm:$0xff]  ;;  %v3749_v32 = vld [vmem:[%s5774_s2 + $0x170] sm:$0xff]  ;;  %vm3199_vm10 = vcmask 1047559  }
 0x420   : > { %v2366_v47 = vadd.f32 %v2365_v20, %v2364_v36  ;;  %v2461_v5 = vrot.slane %v2460_v8, 4  ;;  %v2497_v48 = vmax.f32 %v2489_v11, 0.0  ;;  %v2858_v33 = vpack.c.b16 %v2857_v45, %v2856_v7 }
 0x421   : > { %v2577_v60 = vsub.f32 1.5, %v2576_v10 }
 0x422   : > { %v2367_v38 = vrot.slane %v2366_v47, 2  ;;  %v2462_v13 = vadd.f32 %v2461_v5, %v2460_v8  ;;  %v2521_v50 = vadd.f32 1e-05, %v2497_v48  ;;  %2867 = vmatpush.bf16.msrb.mxu3 %v2858_v33  ;;  %v3971_v48 = vld [vmem:[%s4045_s25 + $0x30] sm:$0xff] }
 0x423   : > { %v2578_v59 = vmul.f32 %v3945_v25, %v2577_v60  ;;  %v3748_v60 = vld [vmem:[%s5774_s2 + $0x168] sm:$0xff] }
 0x424   : > { %v2368_v37 = vadd.f32 %v2367_v38, %v2366_v47  ;;  %v2463_v15 = vrot.slane %v2462_v13, 2  ;;  %3946 = vrsqrt.f32 %v2521_v50  ;;  %vm2589_vm14 = vweird.f32 %v2521_v50 }
 0x425   : > { %v2582_v55 = vsel %vm2581_vm12, %v3945_v25, %v2578_v59  ;;  %3739 = vmatmul.msk.bf16.vlgmr.msrb.gmra.mxu3 %vm286_vm0, %v3969_v30  ;;  %v3747_v59 = vld [vmem:[%s5774_s2 + $0x160] sm:$0xff] }
 0x426   : > { %v2369_v57 = vrot.slane %v2368_v37, 1  ;;  %v2464_v23 = vadd.f32 %v2463_v15, %v2462_v13  ;;  %v2614_v39 = vmul.f32 %v2582_v55, %v2510_v28  ;;  %v2613_v56 = vmul.f32 %v2582_v55, %v2509_v54  ;;  %v3745_v54 = vld [vmem:[%s5774_s2 + $0x150] sm:$0xff] }
 0x428   : > { %v2370_v46 = vadd.f32 %v2369_v57, %v2368_v37  ;;  %v2465_v2 = vrot.slane %v2464_v23, 1  ;;  %v2630_v51 = vmax.f32 %v2614_v39, 0.0  ;;  %v2629_v12 = vmax.f32 %v2613_v56, 0.0  ;;  %v3743_v39 = vld [vmem:[%s5774_s2 + $0x140] sm:$0xff]  ;;  %v3972_v56 = vld [vmem:[%s4045_s25 + $0x38] sm:$0xff] }
 0x42a   : > { %v2378_v40 = vmul.f32 %v2370_v46, %v4247_v42  ;;  %v2466_v26 = vadd.f32 %v2465_v2, %v2464_v23  ;;  %v3947_v41 = vpop.eup %3946  ;;  %v2768_v22 = vpack.c.bf16 %v2629_v12, %v2629_v12  ;;  %v2769_v35 = vpack.c.bf16 %v2630_v51, %v2630_v51  ;;  %v3744_v23 = vld [vmem:[%s5774_s2 + $0x148] sm:$0xff] }
 0x42b   : > { %v2584_v17 = vmul.f32 %v3947_v41, %v2521_v50  ;;  %vm2590_vm13 = vweird.f32 %v3947_v41 }
 0x42c   : > { %v2474_v14 = vmul.f32 %v2466_v26, %v4247_v42  ;;  %v2482_v16 = vmul.f32 %v2378_v40, %v2378_v40  ;;  %v2876_v3 = vunpack.c.l.b16 %v2768_v22  ;;  %v2877_v9 = vunpack.c.l.b16 %v2769_v35  ;;  %vm2591_vm15 = vmor %vm2589_vm14, %vm2590_vm13 }
 0x42d   : > { %v2585_v31 = vmul.f32 %v3947_v41, %v2584_v17  ;;  %v2514_v5 = vsub.f32 %v5400_v43, %v2378_v40  ;;  %v2513_v33 = vsub.f32 %v5388_v0, %v2378_v40  ;;  %v3746_v0 = vld [vmem:[%s5774_s2 + $0x158] sm:$0xff] }
 0x42e   : > { %v2490_v34 = vsub.f32 %v2474_v14, %v2482_v16  ;;  %v2878_v24 = vpack.c.b16 %v2877_v9, %v2876_v3  ;;  %v2710_v9 = vpop.f32.mrf.mxu0 }
 0x42f   : > { %v2586_v1 = vmul.f32 0.5, %v2585_v31 }
 0x430   : > { %v2498_v21 = vmax.f32 %v2490_v34, 0.0  ;;  %2887 = vmatpush.bf16.msra.mxu1 %v2878_v24 }
 0x431   : > { %v2587_v58 = vsub.f32 1.5, %v2586_v1 }
 0x432   : > { %v2522_v61 = vadd.f32 1e-05, %v2498_v21 }
 0x433   : > { %v2588_v25 = vmul.f32 %v3947_v41, %v2587_v58  ;;  %3740 = vmatmul.msk.bf16.vlgmr.msra.gmra.mxu1 %vm286_vm0, %v3970_v6  ;;  %v3973_v58 = vld [vmem:[%s5775_s3] sm:$0xff] }
 0x434   : > { %3948 = vrsqrt.f32 %v2522_v61  ;;  %vm2599_vm3 = vweird.f32 %v2522_v61 }
 0x435   : > { %v2592_v18 = vsel %vm2591_vm15, %v3947_v41, %v2588_v25  ;;  %v5484_v25 = vld [vmem:[%s5775_s3 + $0x8] sm:$0xff] }
 0x436   : > { %v2616_v29 = vmul.f32 %v2592_v18, %v2512_v27  ;;  %v2615_v36 = vmul.f32 %v2592_v18, %v2511_v44  ;;  %v2713_v34 = vpop.f32.mrf.mxu0  ;;  %v5487_v6 = vperm.slane %v5484_v25, 1 }
 0x438   : > { %v2632_v62 = vmax.f32 %v2616_v29, 0.0  ;;  %v2631_v63 = vmax.f32 %v2615_v36, 0.0 }
 0x43a   : > { %v3949_v19 = vpop.eup %3948  ;;  %v2770_v49 = vpack.c.bf16 %v2631_v63, %v2631_v63  ;;  %v2771_v20 = vpack.c.bf16 %v2632_v62, %v2632_v62 }
 0x43b   : > { %v2594_v53 = vmul.f32 %v3949_v19, %v2522_v61  ;;  %vm2600_vm2 = vweird.f32 %v3949_v19  ;;  %v5479_v61 = vperm.slane %v3973_v58, 6 }
 0x43c   : > { %v2896_v7 = vunpack.c.l.b16 %v2770_v49  ;;  %v2897_v11 = vunpack.c.l.b16 %v2771_v20  ;;  %vm2601_vm4 = vmor %vm2599_vm3, %vm2600_vm2 }
 0x43d   : > { %v2595_v8 = vmul.f32 %v3949_v19, %v2594_v53  ;;  %v2711_v44 = vadd.f32 %v2710_v9, %v5479_v61  ;;  %v2714_v63 = vadd.f32 %v2713_v34, %v5479_v61 }
 0x43e   : > { %v2898_v10 = vpack.c.b16 %v2897_v11, %v2896_v7  ;;  %v2716_v1 = vpop.f32.mrf.mxu0 }
 0x43f   : > { %v2596_v45 = vmul.f32 0.5, %v2595_v8 }
 0x440   : > { %2907 = vmatpush.bf16.msra.mxu3 %v2898_v10 }
 0x441   : > { %v2597_v4 = vsub.f32 1.5, %v2596_v45 }
 0x443   : > { %v2598_v47 = vmul.f32 %v3949_v19, %v2597_v4  ;;  %3741 = vmatmul.msk.bf16.vlgmr.msra.gmra.mxu3 %vm286_vm0, %v3971_v48 }
 0x444   : > { %3000 = vmatpush.msrb.mxu3 %v3750_v52  ;;  %v2717_v52 = vadd.f32 %v2716_v1, %v5479_v61 }
 0x445   : > { %v2602_v38 = vsel %vm2601_vm4, %v3949_v19, %v2598_v47 }
 0x446   : > { %3001 = vmatpush.msrb.mxu3 %v3749_v32  ;;  %v2618_v13 = vmul.f32 %v2602_v38, %v2514_v5  ;;  %v2617_v50 = vmul.f32 %v2602_v38, %v2513_v33  ;;  %v2719_v36 = vpop.f32.mrf.mxu0 }
 0x447   : > { %v2720_v33 = vadd.f32 %v2719_v36, %v5479_v61 }
 0x448   : > { %3002 = vmatpush.msrb.mxu3 %v3748_v60  ;;  %v2634_v43 = vmax.f32 %v2618_v13, 0.0  ;;  %v2633_v37 = vmax.f32 %v2617_v50, 0.0 }
 0x44a   : > { %3003 = vmatpush.msrb.mxu3 %v3747_v59  ;;  %v2772_v15 = vpack.c.bf16 %v2633_v37, %v2633_v37  ;;  %v2773_v28 = vpack.c.bf16 %v2634_v43, %v2634_v43 }
 0x44c   : > { %3004 = vmatpush.msrb.mxu3 %v3746_v0  ;;  %v2916_v55 = vunpack.c.l.b16 %v2772_v15  ;;  %v2917_v57 = vunpack.c.l.b16 %v2773_v28 }
 0x44e   : > { %3005 = vmatpush.msrb.mxu3 %v3745_v54  ;;  %v2918_v30 = vpack.c.b16 %v2917_v57, %v2916_v55  ;;  %v2722_v8 = vpop.f32.mrf.mxu0 }
 0x450   : > { %3006 = vmatpush.msrb.mxu3 %v3744_v23  ;;  %2927 = vmatpush.bf16.msrb.mxu1 %v2918_v30 }
 0x452   : > { %3007 = vmatpush.msrb.mxu3 %v3743_v39 }
 0x453   : > { %3742 = vmatmul.msk.bf16.vlgmr.msrb.gmra.mxu1 %vm286_vm0, %v3972_v56  ;;  %v2723_v56 = vadd.f32 %v2722_v8, %v5479_v61  ;;  %vm3187_vm0 = vcmask 1041409  }
 0x456   : > { %v2725_v5 = vpop.f32.mrf.mxu0 }
 0x45e   : > { %v2728_v28 = vpop.f32.mrf.mxu0 }
 0x462   : > { %v2789_v46 = vpop.f32.mrf.mxu3 }
 0x463   : > { %3751 = vmatmul.msk.f32.vlgmr.msrb.gmra.mxu3 %vm744_vm1, %v2789_v46 }
 0x46a   : > { %v2791_v2 = vpop.f32.mrf.mxu3 }
 0x46b   : > { %3752 = vmatmul.msk.f32.gmra.mxu3 %vm744_vm1, %v2791_v2 }
 0x471   : > { %v2809_v51 = vpop.f32.mrf.mxu1 }
 0x473   : > { %3753 = vmatmul.msk.f32.gmra.mxu3 %vm744_vm1, %v2809_v51 }
 0x479   : > { %v2811_v12 = vpop.f32.mrf.mxu1 }
 0x47b   : > { %3754 = vmatmul.msk.f32.gmra.mxu3 %vm744_vm1, %v2811_v12 }
 0x488   : > { %v2829_v40 = vpop.f32.mrf.mxu3 }
 0x489   : > { %3755 = vmatmul.msk.f32.gmra.mxu3 %vm744_vm1, %v2829_v40 }
 0x490   : > { %v2831_v26 = vpop.f32.mrf.mxu3 }
 0x491   : > { %3756 = vmatmul.msk.f32.gmra.mxu3 %vm744_vm1, %v2831_v26  ;;  %v2849_v41 = vpop.f32.mrf.mxu1  ;;  %v2731_v26 = vpop.f32.mrf.mxu0 }
 0x499   : > { %3757 = vmatmul.msk.f32.gmra.mxu3 %vm744_vm1, %v2849_v41  ;;  %v2851_v22 = vpop.f32.mrf.mxu1 }
 0x4a1   : > { %3758 = vmatmul.msk.f32.gmra.mxu3 %vm744_vm1, %v2851_v22 }
 0x4a8   : > { %v2869_v35 = vpop.f32.mrf.mxu3 }
 0x4a9   : > { %3759 = vmatmul.msk.f32.gmra.mxu3 %vm744_vm1, %v2869_v35 }
 0x4b0   : > { %v2871_v17 = vpop.f32.mrf.mxu3  ;;  %v2889_v14 = vpop.f32.mrf.mxu1 }
 0x4b1   : > { %3760 = vmatmul.msk.f32.gmra.mxu3 %vm744_vm1, %v2871_v17 }
 0x4b8   : > { %v2891_v16 = vpop.f32.mrf.mxu1 }
 0x4b9   : > { %3761 = vmatmul.msk.f32.gmra.mxu3 %vm744_vm1, %v2889_v14  ;;  %v2726_v14 = vadd.f32 %v2725_v5, %v5479_v61 }
 0x4c1   : > { %3762 = vmatmul.msk.f32.gmra.mxu3 %vm744_vm1, %v2891_v16 }
 0x4c6   : > { %v2909_v3 = vpop.f32.mrf.mxu3 }
 0x4c9   : > { %3763 = vmatmul.msk.f32.gmra.mxu3 %vm744_vm1, %v2909_v3 }
 0x4ce   : > { %v2911_v31 = vpop.f32.mrf.mxu3 }
 0x4d0   : > { %v2929_v24 = vpop.f32.mrf.mxu1 }
 0x4d1   : > { %3764 = vmatmul.msk.f32.gmra.mxu3 %vm744_vm1, %v2911_v31 }
 0x4d8   : > { %v2931_v21 = vpop.f32.mrf.mxu1 }
 0x4d9   : > { %3765 = vmatmul.msk.f32.gmra.mxu3 %vm744_vm1, %v2929_v24 }
 0x4e1   : > { %3766 = vmatmul.msk.f32.gmra.mxu3 %vm744_vm1, %v2931_v21  ;;  %v2734_v21 = vpop.f32.mrf.mxu0 }
 0x4e6   : > { %v3009_v27 = vpop.f32.mrf.mxu3 }
 0x4e7   : > { %v3010_v18 = vadd.f32 %v3009_v27, %v5487_v6 }
 0x4e9   : > { %v5491_v29 = vadd.f32 %v3010_v18, %v2711_v44  ;;  %v2729_v44 = vadd.f32 %v2728_v28, %v5479_v61  ;;  %v3773_v28 = vld [vmem:[%s5774_s2 + $0x1b0] sm:$0xff] }
 0x4eb   : > { %v3073_v53 = vmax.f32 %v5491_v29, 0.0 }
 0x4ed   : > { %v3089_v7 = vsel %vm744_vm1, %v3073_v53, 0.0 }
 0x4ee   : > { %v3012_v62 = vpop.f32.mrf.mxu3 }
 0x4ef   : > { %v3013_v19 = vadd.f32 %v3012_v62, %v5487_v6 }
 0x4f1   : > { %v5496_v49 = vadd.f32 %v3013_v19, %v2714_v63 }
 0x4f3   : > { %v3074_v20 = vmax.f32 %v5496_v49, 0.0 }
 0x4f5   : > { %v3090_v11 = vsel %vm744_vm1, %v3074_v20, 0.0 }
 0x4f6   : > { %v3091_v45 = vadd.f32 %v3090_v11, %v3089_v7  ;;  %v3015_v10 = vpop.f32.mrf.mxu3  ;;  %v2737_v11 = vpop.f32.mrf.mxu0 }
 0x4f7   : > { %v3016_v4 = vadd.f32 %v3015_v10, %v5487_v6 }
 0x4f8   : > { %v3092_v47 = vrot.slane %v3091_v45, 4 }
 0x4f9   : > { %v5507_v32 = vadd.f32 %v3016_v4, %v2717_v52 }
 0x4fa   : > { %v3093_v38 = vadd.f32 %v3092_v47, %v3091_v45 }
 0x4fb   : > { %v3075_v13 = vmax.f32 %v5507_v32, 0.0 }
 0x4fc   : > { %v3094_v43 = vrot.slane %v3093_v38, 2 }
 0x4fd   : > { %v3098_v37 = vsel %vm744_vm1, %v3075_v13, 0.0 }
 0x4fe   : > { %v3018_v48 = vpop.f32.mrf.mxu3  ;;  %v3095_v54 = vadd.f32 %v3094_v43, %v3093_v38  ;;  %v2740_v5 = vpop.f32.mrf.mxu0 }
 0x4ff   : > { %v3019_v60 = vadd.f32 %v3018_v48, %v5487_v6 }
 0x500   : > { %v3096_v23 = vrot.slane %v3095_v54, 1 }
 0x501   : > { %v5512_v50 = vadd.f32 %v3019_v60, %v2720_v33 }
 0x502   : > { %v3097_v12 = vadd.f32 %v3096_v23, %v3095_v54  ;;  %v2732_v54 = vadd.f32 %v2731_v26, %v5479_v61 }
 0x503   : > { %v3076_v59 = vmax.f32 %v5512_v50, 0.0 }
 0x504   : > { %v3161_v22 = vmul.f32 %v3097_v12, %v4247_v42  ;;  %v2735_v12 = vadd.f32 %v2734_v21, %v5479_v61 }
 0x505   : > { %v3099_v0 = vsel %vm744_vm1, %v3076_v59, 0.0 }
 0x506   : > { %v3100_v15 = vadd.f32 %v3099_v0, %v3098_v37  ;;  %v2743_v33 = vpop.f32.mrf.mxu0  ;;  %v3774_v37 = vld [vmem:[%s5774_s2 + $0x1b8] sm:$0xff] }
 0x507   : > { %3211 = vmatpush.msra.mxu1 %v3774_v37 }
 0x508   : > { %v3101_v55 = vrot.slane %v3100_v15, 4 }
 0x509   : > { %3212 = vmatpush.msra.mxu1 %v3773_v28 }
 0x50a   : > { %v3102_v57 = vadd.f32 %v3101_v55, %v3100_v15 }
 0x50c   : > { %v3103_v30 = vrot.slane %v3102_v57, 2  ;;  %v3021_v39 = vpop.f32.mrf.mxu3 }
 0x50d   : > { %v3022_v46 = vadd.f32 %v3021_v39, %v5487_v6  ;;  %v3772_v39 = vld [vmem:[%s5774_s2 + $0x1a8] sm:$0xff] }
 0x50e   : > { %v3104_v2 = vadd.f32 %v3103_v30, %v3102_v57  ;;  %v2746_v38 = vpop.f32.mrf.mxu0  ;;  %v2738_v57 = vadd.f32 %v2737_v11, %v5479_v61  ;;  %3213 = vmatpush.msra.mxu1 %v3772_v39  ;;  %v3780_v39 = vld [vmem:[%s5774_s2 + $0x1e0] sm:$0xff] }
 0x50f   : > { %v5523_v51 = vadd.f32 %v3022_v46, %v2723_v56  ;;  %v2744_v56 = vadd.f32 %v2743_v33, %v5479_v61 }
 0x510   : > { %v3105_v40 = vrot.slane %v3104_v2, 1 }
 0x511   : > { %v3077_v9 = vmax.f32 %v5523_v51, 0.0 }
 0x512   : > { %v3106_v41 = vadd.f32 %v3105_v40, %v3104_v2 }
 0x513   : > { %v3107_v24 = vsel %vm744_vm1, %v3077_v9, 0.0 }
 0x514   : > { %v3162_v35 = vmul.f32 %v3106_v41, %v4247_v42  ;;  %v3024_v17 = vpop.f32.mrf.mxu3  ;;  %v3771_v41 = vld [vmem:[%s5774_s2 + $0x1a0] sm:$0xff] }
 0x515   : > { %v3025_v16 = vadd.f32 %v3024_v17, %v5487_v6  ;;  %3214 = vmatpush.msra.mxu1 %v3771_v41  ;;  %v3779_v41 = vld [vmem:[%s5774_s2 + $0x1d8] sm:$0xff] }
 0x516   : > { %v3188_v3 = vsel %vm3187_vm0, %v3162_v35, %v3161_v22  ;;  %v2749_v40 = vpop.f32.mrf.mxu0  ;;  %v2741_v22 = vadd.f32 %v2740_v5, %v5479_v61 }
 0x517   : > { %v5530_v31 = vadd.f32 %v3025_v16, %v2726_v14  ;;  %v3770_v16 = vld [vmem:[%s5774_s2 + $0x198] sm:$0xff] }
 0x518   : > { %3215 = vmatpush.msra.mxu1 %v3770_v16 }
 0x519   : > { %v3078_v34 = vmax.f32 %v5530_v31, 0.0 }
 0x51b   : > { %v3108_v1 = vsel %vm744_vm1, %v3078_v34, 0.0 }
 0x51c   : > { %v3109_v58 = vadd.f32 %v3108_v1, %v3107_v24  ;;  %v3027_v27 = vpop.f32.mrf.mxu3 }
 0x51d   : > { %v3028_v18 = vadd.f32 %v3027_v27, %v5487_v6 }
 0x51e   : > { %v3110_v36 = vrot.slane %v3109_v58, 4 }
 0x51f   : > { %v5541_v62 = vadd.f32 %v3028_v18, %v2729_v44 }
 0x520   : > { %v3111_v63 = vadd.f32 %v3110_v36, %v3109_v58  ;;  %v3769_v58 = vld [vmem:[%s5774_s2 + $0x190] sm:$0xff] }
 0x521   : > { %v3079_v27 = vmax.f32 %v5541_v62, 0.0  ;;  %3216 = vmatpush.msra.mxu1 %v3769_v58 }
 0x522   : > { %v3112_v19 = vrot.slane %v3111_v63, 2 }
 0x524   : > { %v3113_v8 = vadd.f32 %v3112_v19, %v3111_v63  ;;  %v3030_v7 = vpop.f32.mrf.mxu3  ;;  %v3768_v19 = vld [vmem:[%s5774_s2 + $0x188] sm:$0xff] }
 0x525   : > { %v3031_v0 = vadd.f32 %v3030_v7, %v5487_v6  ;;  %3217 = vmatpush.msra.mxu1 %v3768_v19 }
 0x526   : > { %v3114_v45 = vrot.slane %v3113_v8, 1 }
 0x527   : > { %v5562_v46 = vadd.f32 %v3031_v0, %v2732_v54  ;;  %v3782_v0 = vld [vmem:[%s5774_s2 + $0x1f0] sm:$0xff] }
 0x528   : > { %v3115_v10 = vadd.f32 %v3114_v45, %v3113_v8  ;;  %v2750_v8 = vadd.f32 %v2749_v40, %v5479_v61 }
 0x529   : > { %v3080_v24 = vmax.f32 %v5562_v46, 0.0 }
 0x52a   : > { %v3163_v52 = vmul.f32 %v3115_v10, %v4247_v42 }
 0x52b   : > { %v3117_v7 = vsel %vm744_vm1, %v3080_v24, 0.0 }
 0x52c   : > { %v5544_v4 = vsel %vm3189_vm5, %v3163_v52, %v3188_v3  ;;  %v3033_v47 = vpop.f32.mrf.mxu3  ;;  %v2747_v3 = vadd.f32 %v2746_v38, %v5479_v61  ;;  %v3767_v52 = vld [vmem:[%s5774_s2 + $0x180] sm:$0xff]  ;;  %v2752_v38 = vpop.f32.mrf.mxu0 }
 0x52d   : > { %v3034_v23 = vadd.f32 %v3033_v47, %v5487_v6  ;;  %v3116_v47 = vsel %vm744_vm1, %v3079_v27, 0.0  ;;  %3218 = vmatpush.msra.mxu1 %v3767_v52 }
 0x52f   : > { %v5575_v14 = vadd.f32 %v3034_v23, %v2735_v12 }
 0x531   : > { %v3081_v36 = vmax.f32 %v5575_v14, 0.0 }
 0x533   : > { %v3125_v37 = vsel %vm744_vm1, %v3081_v36, 0.0 }
 0x534   : > { %v3036_v48 = vpop.f32.mrf.mxu3 }
 0x535   : > { %v3037_v15 = vadd.f32 %v3036_v48, %v5487_v6 }
 0x537   : > { %v5566_v26 = vadd.f32 %v3037_v15, %v2738_v57 }
 0x539   : > { %v3082_v21 = vmax.f32 %v5566_v26, 0.0 }
 0x53b   : > { %v3126_v10 = vsel %vm744_vm1, %v3082_v21, 0.0 }
 0x53c   : > { %v3039_v60 = vpop.f32.mrf.mxu3  ;;  %v3127_v15 = vadd.f32 %v3126_v10, %v3125_v37 }
 0x53d   : > { %v3040_v2 = vadd.f32 %v3039_v60, %v5487_v6  ;;  %v3783_v60 = vld [vmem:[%s5774_s2 + $0x1f8] sm:$0xff] }
 0x53e   : > { %3290 = vmatpush.msrb.mxu1 %v3783_v60  ;;  %v3128_v40 = vrot.slane %v3127_v15, 4 }
 0x53f   : > { %v5582_v1 = vadd.f32 %v3040_v2, %v2741_v22 }
 0x540   : > { %3291 = vmatpush.msrb.mxu1 %v3782_v0  ;;  %v3129_v19 = vadd.f32 %v3128_v40, %v3127_v15 }
 0x541   : > { %v3083_v11 = vmax.f32 %v5582_v1, 0.0 }
 0x543   : > { %v3134_v28 = vsel %vm744_vm1, %v3083_v11, 0.0 }
 0x544   : > { %v3042_v43 = vpop.f32.mrf.mxu3 }
 0x545   : > { %v3043_v55 = vadd.f32 %v3042_v43, %v5487_v6  ;;  %v3118_v43 = vadd.f32 %v3117_v7, %v3116_v47  ;;  %v2755_v7 = vpop.f32.mrf.mxu0  ;;  %v3776_v47 = vld [vmem:[%s5774_s2 + $0x1c0] sm:$0xff] }
 0x547   : > { %v5572_v35 = vadd.f32 %v3043_v55, %v2744_v56  ;;  %v3781_v55 = vld [vmem:[%s5774_s2 + $0x1e8] sm:$0xff]  ;;  %v3119_v56 = vrot.slane %v3118_v43, 4 }
 0x548   : > { %3292 = vmatpush.msrb.mxu1 %v3781_v55 }
 0x549   : > { %v3084_v44 = vmax.f32 %v5572_v35, 0.0  ;;  %v3120_v58 = vadd.f32 %v3119_v56, %v3118_v43  ;;  %v3130_v43 = vrot.slane %v3129_v19, 2 }
 0x54a   : > { %3293 = vmatpush.msrb.mxu1 %v3780_v39 }
 0x54b   : > { %v3135_v5 = vsel %vm744_vm1, %v3084_v44, 0.0 }
 0x54c   : > { %v3045_v30 = vpop.f32.mrf.mxu3  ;;  %v3136_v57 = vadd.f32 %v3135_v5, %v3134_v28  ;;  %3294 = vmatpush.msrb.mxu1 %v3779_v41  ;;  %v3121_v5 = vrot.slane %v3120_v58, 2 }
 0x54d   : > { %v3046_v17 = vadd.f32 %v3045_v30, %v5487_v6 }
 0x54e   : > { %v3137_v22 = vrot.slane %v3136_v57, 4 }
 0x54f   : > { %v5590_v18 = vadd.f32 %v3046_v17, %v2747_v3  ;;  %v3778_v3 = vld [vmem:[%s5774_s2 + $0x1d0] sm:$0xff] }
 0x550   : > { %3295 = vmatpush.msrb.mxu1 %v3778_v3 }
 0x551   : > { %v3085_v48 = vmax.f32 %v5590_v18, 0.0 }
 0x553   : > { %v3143_v23 = vsel %vm744_vm1, %v3085_v48, 0.0 }
 0x554   : > { %v3048_v63 = vpop.f32.mrf.mxu3 }
 0x555   : > { %v3049_v45 = vadd.f32 %v3048_v63, %v5487_v6  ;;  %v2753_v63 = vadd.f32 %v2752_v38, %v5479_v61  ;;  %v2756_v38 = vadd.f32 %v2755_v7, %v5479_v61 }
 0x557   : > { %v5615_v33 = vadd.f32 %v3049_v45, %v2750_v8  ;;  %v3777_v8 = vld [vmem:[%s5774_s2 + $0x1c8] sm:$0xff]  ;;  %v3138_v45 = vadd.f32 %v3137_v22, %v3136_v57  ;;  %v3122_v57 = vadd.f32 %v3121_v5, %v3120_v58 }
 0x558   : > { %3296 = vmatpush.msrb.mxu1 %v3777_v8 }
 0x559   : > { %v3086_v54 = vmax.f32 %v5615_v33, 0.0  ;;  %v3139_v0 = vrot.slane %v3138_v45, 2  ;;  %v3123_v40 = vrot.slane %v3122_v57, 1 }
 0x55a   : > { %3297 = vmatpush.msrb.mxu1 %v3776_v47 }
 0x55b   : > { %v3144_v30 = vsel %vm744_vm1, %v3086_v54, 0.0  ;;  %v3140_v39 = vadd.f32 %v3139_v0, %v3138_v45 }
 0x55c   : > { %v3145_v2 = vadd.f32 %v3144_v30, %v3143_v23  ;;  %v3051_v12 = vpop.f32.mrf.mxu3  ;;  %v3131_v23 = vadd.f32 %v3130_v43, %v3129_v19 }
 0x55d   : > { %v3052_v16 = vadd.f32 %v3051_v12, %v5487_v6  ;;  %v3141_v22 = vrot.slane %v3140_v39, 1 }
 0x55e   : > { %v3146_v17 = vrot.slane %v3145_v2, 4  ;;  %v3132_v41 = vrot.slane %v3131_v23, 1 }
 0x55f   : > { %v5653_v52 = vadd.f32 %v3052_v16, %v2753_v63  ;;  %v3124_v16 = vadd.f32 %v3123_v40, %v3122_v57  ;;  %v3142_v8 = vadd.f32 %v3141_v22, %v3140_v39  ;;  %v3233_v39 = vperm.slane %v5484_v25, 3 }
 0x560   : > { %v3147_v10 = vadd.f32 %v3146_v17, %v3145_v2  ;;  %v3133_v63 = vadd.f32 %v3132_v41, %v3131_v23 }
 0x561   : > { %v3087_v28 = vmax.f32 %v5653_v52, 0.0  ;;  %v3164_v19 = vmul.f32 %v3124_v16, %v4247_v42  ;;  %v3166_v52 = vmul.f32 %v3142_v8, %v4247_v42 }
 0x562   : > { %v3148_v15 = vrot.slane %v3147_v10, 2 }
 0x563   : > { %v3152_v2 = vsel %vm744_vm1, %v3087_v28, 0.0 }
 0x564   : > { %v3054_v60 = vpop.f32.mrf.mxu3  ;;  %v3149_v56 = vadd.f32 %v3148_v15, %v3147_v10  ;;  %v3165_v10 = vmul.f32 %v3133_v63, %v4247_v42 }
 0x565   : > { %v3055_v37 = vadd.f32 %v3054_v60, %v5487_v6 }
 0x566   : > { %v3150_v17 = vrot.slane %v3149_v56, 1 }
 0x567   : > { %v3072_v55 = vadd.f32 %v3055_v37, %v2756_v38  ;;  %v3192_v38 = vsel %vm3191_vm6, %v3164_v19, %v5544_v4 }
 0x568   : > { %v3151_v58 = vadd.f32 %v3150_v17, %v3149_v56  ;;  %v3194_v43 = vsel %vm3193_vm7, %v3165_v10, %v3192_v38 }
 0x569   : > { %v3088_v30 = vmax.f32 %v3072_v55, 0.0  ;;  %v3196_v0 = vsel %vm3195_vm8, %v3166_v52, %v3194_v43 }
 0x56a   : > { %v3167_v5 = vmul.f32 %v3151_v58, %v4247_v42 }
 0x56b   : > { %v3153_v12 = vsel %vm744_vm1, %v3088_v30, 0.0 }
 0x56c   : > { %v3154_v61 = vadd.f32 %v3153_v12, %v3152_v2  ;;  %v3198_v15 = vsel %vm3197_vm9, %v3167_v5, %v3196_v0 }
 0x56e   : > { %v3155_v6 = vrot.slane %v3154_v61, 4 }
 0x570   : > { %v3156_v3 = vadd.f32 %v3155_v6, %v3154_v61 }
 0x572   : > { %v3157_v7 = vrot.slane %v3156_v3, 2 }
 0x574   : > { %v3158_v45 = vadd.f32 %v3157_v7, %v3156_v3 }
 0x576   : > { %v3159_v47 = vrot.slane %v3158_v45, 1 }
 0x578   : > { %v3160_v60 = vadd.f32 %v3159_v47, %v3158_v45  ;;  %v3380_v45 = vrot.slane %v5484_v25, 4 }
 0x57a   : > { %v3168_v37 = vmul.f32 %v3160_v60, %v4247_v42  ;;  %v3178_v42 = vperm.slane %v5484_v25, 2 }
 0x57c   : > { %v3200_v55 = vsel %vm3199_vm10, %v3168_v37, %v3198_v15 }
 0x57d   : > { %3775 = vmatmul.msk.f32.vlgmr.msra.gmra.mxu1 %vm744_vm1, %v3200_v55 }
 0x585   : > { %3784 = vmatmul.msk.f32.vlgmr.msrb.gmra.mxu1 %vm744_vm1, %v3073_v53 }
 0x58d   : > { %3785 = vmatmul.msk.f32.gmra.mxu1 %vm744_vm1, %v3074_v20 }
 0x595   : > { %3786 = vmatmul.msk.f32.gmra.mxu1 %vm744_vm1, %v3075_v13 }
 0x59d   : > { %3787 = vmatmul.msk.f32.gmra.mxu1 %vm744_vm1, %v3076_v59 }
 0x5a5   : > { %3788 = vmatmul.msk.f32.gmra.mxu1 %vm744_vm1, %v3077_v9 }
 0x5ad   : > { %3789 = vmatmul.msk.f32.gmra.mxu1 %vm744_vm1, %v3078_v34 }
 0x5b5   : > { %3790 = vmatmul.msk.f32.gmra.mxu1 %vm744_vm1, %v3079_v27 }
 0x5bd   : > { %3791 = vmatmul.msk.f32.gmra.mxu1 %vm744_vm1, %v3080_v24 }
 0x5c5   : > { %3792 = vmatmul.msk.f32.gmra.mxu1 %vm744_vm1, %v3081_v36 }
 0x5cd   : > { %3793 = vmatmul.msk.f32.gmra.mxu1 %vm744_vm1, %v3082_v21 }
 0x5d5   : > { %3794 = vmatmul.msk.f32.gmra.mxu1 %vm744_vm1, %v3083_v11 }
 0x5dd   : > { %3795 = vmatmul.msk.f32.gmra.mxu1 %vm744_vm1, %v3084_v44 }
 0x5e5   : > { %3796 = vmatmul.msk.f32.gmra.mxu1 %vm744_vm1, %v3085_v48 }
 0x5ed   : > { %3797 = vmatmul.msk.f32.gmra.mxu1 %vm744_vm1, %v3086_v54 }
 0x5f5   : > { %3798 = vmatmul.msk.f32.gmra.mxu1 %vm744_vm1, %v3087_v28 }
 0x5fa   : > { %v3220_v29 = vpop.f32.mrf.mxu1 }
 0x5fb   : > { %v3221_v53 = vadd.f32 %v3220_v29, %v3178_v42 }
 0x5fd   : > { %v3223_v49 = vmax.f32 %v3221_v53, 0.0  ;;  %3799 = vmatmul.msk.f32.gmra.mxu1 %vm744_vm1, %v3088_v30 }
 0x5ff   : > { %v3370_v20 = vrot.slane %v3223_v49, 7  ;;  %v3369_v50 = vrot.slane %v3223_v49, 6  ;;  %v3368_v9 = vrot.slane %v3223_v49, 5  ;;  %v3367_v62 = vrot.slane %v3223_v49, 4 }
 0x600   : > { %v3366_v26 = vrot.slane %v3223_v49, 3  ;;  %v3365_v24 = vrot.slane %v3223_v49, 2  ;;  %v3364_v27 = vrot.slane %v3223_v49, 1  ;;  %v3371_v36 = vperm.slane %v3223_v49, 0 }
 0x601   : > { %v3378_v32 = vperm.slane %v3370_v20, 0  ;;  %v3377_v59 = vperm.slane %v3369_v50, 0  ;;  %v3376_v31 = vperm.slane %v3368_v9, 0  ;;  %v3375_v4 = vperm.slane %v3367_v62, 0 }
 0x602   : > { %v5715_v13 = vpop.f32.mrf.mxu1  ;;  %v3374_v35 = vperm.slane %v3366_v26, 0  ;;  %v3373_v1 = vperm.slane %v3365_v24, 0  ;;  %v3372_v44 = vperm.slane %v3364_v27, 0  ;;  %v3419_v50 = vrot.slane %v5484_v25, 5 }
 0x603   : > { %3800 = vmatpush.xpose.msk.msrb.mxu2 %vm744_vm1, %v3378_v32  ;;  %v3300_v49 = vadd.f32 %v5715_v13, %v3233_v39 }
 0x607   : > { %3801 = vmatpush.xpose.msk.msrb.mxu2 %vm744_vm1, %v3378_v32  ;;  %v3347_v32 = vmax.f32 %v3300_v49, 0.0 }
 0x60a   : > { %v5719_v51 = vpop.f32.mrf.mxu1 }
 0x60b   : > { %3802 = vmatpush.xpose.msk.msrb.mxu2 %vm744_vm1, %v3377_v59  ;;  %v3303_v29 = vadd.f32 %v5719_v51, %v3233_v39 }
 0x60d   : > { %v3348_v20 = vmax.f32 %v3303_v29, 0.0 }
 0x60f   : > { %3803 = vmatpush.xpose.msk.msrb.mxu2 %vm744_vm1, %v3377_v59  ;;  %v3492_v59 = vpop.permute.xlu2 %3491 }
 0x610   : > { %v3493_v51 = vrot.slane %v3492_v59, 6 }
 0x612   : > { %v5723_v34 = vpop.f32.mrf.mxu1 }
 0x613   : > { %3804 = vmatpush.xpose.msk.msrb.mxu2 %vm744_vm1, %v3376_v31  ;;  %v3306_v55 = vadd.f32 %v5723_v34, %v3233_v39 }
 0x615   : > { %v3349_v53 = vmax.f32 %v3306_v55, 0.0 }
 0x617   : > { %3805 = vmatpush.xpose.msk.msrb.mxu2 %vm744_vm1, %v3376_v31 }
 0x61a   : > { %v5727_v46 = vpop.f32.mrf.mxu1 }
 0x61b   : > { %3806 = vmatpush.xpose.msk.msrb.mxu2 %vm744_vm1, %v3375_v4  ;;  %v3309_v0 = vadd.f32 %v5727_v46, %v3233_v39 }
 0x61d   : > { %v3350_v42 = vmax.f32 %v3309_v0, 0.0 }
 0x61f   : > { %3807 = vmatpush.xpose.msk.msrb.mxu2 %vm744_vm1, %v3375_v4 }
 0x622   : > { %v3311_v14 = vpop.f32.mrf.mxu1 }
 0x623   : > { %3808 = vmatpush.xpose.msk.msrb.mxu2 %vm744_vm1, %v3374_v35  ;;  %v3312_v43 = vadd.f32 %v3311_v14, %v3233_v39 }
 0x625   : > { %v3351_v15 = vmax.f32 %v3312_v43, 0.0 }
 0x627   : > { %3809 = vmatpush.xpose.msk.msrb.mxu2 %vm744_vm1, %v3374_v35 }
 0x62a   : > { %v3314_v21 = vpop.f32.mrf.mxu1 }
 0x62b   : > { %3810 = vmatpush.xpose.msk.msrb.mxu2 %vm744_vm1, %v3373_v1  ;;  %v3315_v60 = vadd.f32 %v3314_v21, %v3233_v39 }
 0x62d   : > { %v3352_v37 = vmax.f32 %v3315_v60, 0.0 }
 0x62f   : > { %3811 = vmatpush.xpose.msk.msrb.mxu2 %vm744_vm1, %v3373_v1 }
 0x632   : > { %v3317_v18 = vpop.f32.mrf.mxu1 }
 0x633   : > { %3812 = vmatpush.xpose.msk.msrb.mxu2 %vm744_vm1, %v3372_v44  ;;  %v3318_v47 = vadd.f32 %v3317_v18, %v3233_v39 }
 0x635   : > { %v3353_v38 = vmax.f32 %v3318_v47, 0.0 }
 0x637   : > { %3813 = vmatpush.xpose.msk.msrb.mxu2 %vm744_vm1, %v3372_v44 }
 0x63a   : > { %v3320_v11 = vpop.f32.mrf.mxu1 }
 0x63b   : > { %3814 = vmatpush.xpose.msk.msrb.mxu2 %vm744_vm1, %v3371_v36  ;;  %v3321_v10 = vadd.f32 %v3320_v11, %v3233_v39 }
 0x63d   : > { %v3354_v5 = vmax.f32 %v3321_v10, 0.0 }
 0x63f   : > { %3815 = vmatpush.xpose.msk.msrb.mxu2 %vm744_vm1, %v3371_v36 }
 0x642   : > { %v3323_v48 = vpop.f32.mrf.mxu1  ;;  %3816 = vmatmul.msk.f32.vlgmr.msrb.gmra.mxu2 %vm744_vm1, %v3380_v45 }
 0x643   : > { %v3324_v58 = vadd.f32 %v3323_v48, %v3233_v39 }
 0x645   : > { %v3355_v52 = vmax.f32 %v3324_v58, 0.0 }
 0x64a   : > { %v3326_v33 = vpop.f32.mrf.mxu1 }
 0x64b   : > { %v3327_v8 = vadd.f32 %v3326_v33, %v3233_v39 }
 0x64d   : > { %v3356_v19 = vmax.f32 %v3327_v8, 0.0 }
 0x652   : > { %v3329_v54 = vpop.f32.mrf.mxu1 }
 0x653   : > { %v3330_v3 = vadd.f32 %v3329_v54, %v3233_v39 }
 0x655   : > { %v3357_v7 = vmax.f32 %v3330_v3, 0.0 }
 0x65a   : > { %v3332_v28 = vpop.f32.mrf.mxu1 }
 0x65b   : > { %v3333_v17 = vadd.f32 %v3332_v28, %v3233_v39 }
 0x65d   : > { %v3358_v63 = vmax.f32 %v3333_v17, 0.0 }
 0x662   : > { %v3335_v57 = vpop.f32.mrf.mxu1 }
 0x663   : > { %v3336_v22 = vadd.f32 %v3335_v57, %v3233_v39 }
 0x665   : > { %v3359_v16 = vmax.f32 %v3336_v22, 0.0 }
 0x66a   : > { %v3338_v23 = vpop.f32.mrf.mxu1 }
 0x66b   : > { %v3339_v61 = vadd.f32 %v3338_v23, %v3233_v39 }
 0x66d   : > { %v3360_v6 = vmax.f32 %v3339_v61, 0.0 }
 0x672   : > { %v3341_v30 = vpop.f32.mrf.mxu1 }
 0x673   : > { %v3342_v12 = vadd.f32 %v3341_v30, %v3233_v39 }
 0x675   : > { %v3361_v41 = vmax.f32 %v3342_v12, 0.0 }
 0x67a   : > { %v3344_v56 = vpop.f32.mrf.mxu1 }
 0x67b   : > { %v3345_v2 = vadd.f32 %v3344_v56, %v3233_v39 }
 0x67d   : > { %v3362_v40 = vmax.f32 %v3345_v2, 0.0 }
 0x67f   : > { %3817 = vmatpush.xpose.msk.msra.mxu0 %vm744_vm1, %v3362_v40 }
 0x683   : > { %3818 = vmatpush.xpose.msk.msra.mxu0 %vm744_vm1, %v3361_v41 }
 0x687   : > { %3819 = vmatpush.xpose.msk.msra.mxu0 %vm744_vm1, %v3360_v6 }
 0x68b   : > { %3820 = vmatpush.xpose.msk.msra.mxu0 %vm744_vm1, %v3359_v16 }
 0x68f   : > { %3821 = vmatpush.xpose.msk.msra.mxu0 %vm744_vm1, %v3358_v63 }
 0x693   : > { %3822 = vmatpush.xpose.msk.msra.mxu0 %vm744_vm1, %v3357_v7 }
 0x697   : > { %3823 = vmatpush.xpose.msk.msra.mxu0 %vm744_vm1, %v3356_v19 }
 0x69b   : > { %3824 = vmatpush.xpose.msk.msra.mxu0 %vm744_vm1, %v3355_v52 }
 0x69f   : > { %3825 = vmatpush.xpose.msk.msra.mxu0 %vm744_vm1, %v3354_v5 }
 0x6a3   : > { %3826 = vmatpush.xpose.msk.msra.mxu0 %vm744_vm1, %v3353_v38 }
 0x6a7   : > { %3827 = vmatpush.xpose.msk.msra.mxu0 %vm744_vm1, %v3352_v37 }
 0x6ab   : > { %3828 = vmatpush.xpose.msk.msra.mxu0 %vm744_vm1, %v3351_v15 }
 0x6af   : > { %3829 = vmatpush.xpose.msk.msra.mxu0 %vm744_vm1, %v3350_v42 }
 0x6b3   : > { %3830 = vmatpush.xpose.msk.msra.mxu0 %vm744_vm1, %v3349_v53 }
 0x6b7   : > { %3831 = vmatpush.xpose.msk.msra.mxu0 %vm744_vm1, %v3348_v20 }
 0x6bb   : > { %3832 = vmatpush.xpose.msk.msra.mxu0 %vm744_vm1, %v3347_v32 }
 0x6be   : > { %3833 = vmatmul.msk.f32.vlgmr.msra.gmra.mxu0 %vm744_vm1, %v3419_v50 }
 0x6c5   : > { %v3416_v9 = vpop.f32.mrf.mxu2 }
 0x73b   : > { %v3487_v31 = vpop.f32.mrf.mxu0 }
 0x73c   : > { %v3488_v34 = vadd.f32 %v3487_v31, %v3416_v9 }
 0x73e   : > { %v3495_v13 = vadd.f32 %v3493_v51, %v3488_v34 }
 0x740   : > { %3496 = vst [vmem:[%s223_s28] sm:$0x1] %v3495_v13 }
 0x741 PF: > { %s14_s15 = sadd.s32 1, %s3981_s15  }
 0x742   : > { %p11_p5 = scmp.ge.s32.totalorder %s14_s15, 6  }
 0x744   :  { %13 = sbr.rel (!%p11_p5) target bundleno = 1 (0x1), region = 76 }

</bundles_post_ra>
